<compile_context>
chip_gen: v7x
topology: tpu7x:2x2x1
jax: 0.10.0
libtpu: 0.0.40
codegen_flags: <defaults>
</compile_context>

<pallas_src>
import functools

import jax
import jax.numpy as jnp
from jax.experimental import pallas as pl
from jax.experimental.pallas import tpu as pltpu

HID = 512                 # fc1/fc2/fc4/fc5 hidden width
IMG = 28 * 28             # 784
OUT_RECON_PAD = 896       # round_up(784, 128): lane-dense recon width
STATS_PAD = 128           # fused [mu | logvar], padded to one full lane width
OUT_W = OUT_RECON_PAD + STATS_PAD   # 1024 = 8*128, single lane-dense output slab
DEC_PAD = 128             # decoder input [z (<=64) | c (<=64)] padded to 128 lanes
C_POS = 64                # lane offset of c inside the 128-wide decoder input


def _round_up(x, m):
    return (x + m - 1) // m * m


def _sigmoid(x):
    return 1.0 / (1.0 + jnp.exp(-x))


def _cvae_kernel(xcat_ref, cpad_ref, w1_ref, w25_ref, w3_ref, w4_ref, w6_ref,
                 b_ref, out_ref, *, latent_dim):
    f32 = jnp.float32
    bf16 = jnp.bfloat16

    # ---------------- encoder ----------------
    h = jnp.dot(xcat_ref[...], w1_ref[...], preferred_element_type=f32)
    h = jnp.maximum(h + b_ref[0:1, :HID], 0.0)                    # relu(fc1)

    h = jnp.dot(h.astype(bf16), w25_ref[0], preferred_element_type=f32)
    h = jnp.maximum(h + b_ref[1:2, :HID], 0.0)                    # relu(fc2)

    # fused fc31|fc32: stats[:, :L] = mu, stats[:, L:2L] = logvar
    stats = jnp.dot(h.astype(bf16), w3_ref[...], preferred_element_type=f32)
    stats = stats + b_ref[2:3, :STATS_PAD]

    # ------------- reparameterize (eval) + cat([z, c]) -------------
    # TODO(synk): training-mode reparameterization z = mu + eps*exp(0.5*logvar)
    # needs pltpu.prng_seed/prng_random_bits; eval mode (z = mu) matches the
    # PyTorch module with self.training == False.
    lane = jax.lax.broadcasted_iota(jnp.int32, stats.shape, 1)
    dec_in = jnp.where(lane < latent_dim, stats, cpad_ref[...])   # [z | c | 0]

    # ---------------- decoder ----------------
    h = jnp.dot(dec_in.astype(bf16), w4_ref[...], preferred_element_type=f32)
    h = jnp.maximum(h + b_ref[3:4, :HID], 0.0)                    # relu(fc4)

    h = jnp.dot(h.astype(bf16), w25_ref[1], preferred_element_type=f32)
    h = jnp.maximum(h + b_ref[4:5, :HID], 0.0)                    # relu(fc5)

    logits = jnp.dot(h.astype(bf16), w6_ref[...], preferred_element_type=f32)
    logits = logits + b_ref[5:6, :OUT_RECON_PAD]
    recon = _sigmoid(logits)                                      # sigmoid(fc6)

    # single lane-dense output slab: [recon_pad (896) | mu,logvar (128)]
    out_ref[:, :OUT_RECON_PAD] = recon
    out_ref[:, OUT_RECON_PAD:] = stats


def make_params(key, latent_dim=64, feature_dim=0):
    """Raw per-layer params (f32, stored as [in, out]), PyTorch-style init."""
    def linear(k, fan_in, fan_out):
        kw, kb = jax.random.split(k)
        bound = 1.0 / jnp.sqrt(jnp.asarray(fan_in, jnp.float32))
        w = jax.random.uniform(kw, (fan_in, fan_out), jnp.float32, -bound, bound)
        b = jax.random.uniform(kb, (fan_out,), jnp.float32, -bound, bound)
        return w, b

    keys = jax.random.split(key, 7)
    return {
        "fc1": linear(keys[0], IMG + feature_dim, HID),
        "fc2": linear(keys[1], HID, HID),
        "fc31": linear(keys[2], HID, latent_dim),
        "fc32": linear(keys[3], HID, latent_dim),
        "fc4": linear(keys[4], latent_dim + feature_dim, HID),
        "fc5": linear(keys[5], HID, HID),
        "fc6": linear(keys[6], HID, IMG),
    }


def pack_params(p, latent_dim, feature_dim):
    """Pack raw params into consolidated, 128-lane-padded, bf16 kernel operands."""
    assert latent_dim <= 64 and feature_dim <= 64
    in_dim = IMG + feature_dim
    in_pad = _round_up(in_dim, 128)
    bf16 = jnp.bfloat16

    w1 = jnp.zeros((in_pad, HID), jnp.float32).at[:in_dim].set(p["fc1"][0]).astype(bf16)
    w25 = jnp.stack([p["fc2"][0], p["fc5"][0]]).astype(bf16)          # [2, 512, 512]

    w3 = jnp.zeros((HID, STATS_PAD), jnp.float32)
    w3 = w3.at[:, :latent_dim].set(p["fc31"][0])
    w3 = w3.at[:, latent_dim:2 * latent_dim].set(p["fc32"][0]).astype(bf16)

    w4 = jnp.zeros((DEC_PAD, HID), jnp.float32)
    w4 = w4.at[:latent_dim].set(p["fc4"][0][:latent_dim])
    if feature_dim > 0:
        w4 = w4.at[C_POS:C_POS + feature_dim].set(p["fc4"][0][latent_dim:])
    w4 = w4.astype(bf16)

    w6 = jnp.zeros((HID, OUT_RECON_PAD), jnp.float32).at[:, :IMG].set(p["fc6"][0]).astype(bf16)

    biases = jnp.zeros((8, OUT_RECON_PAD), jnp.float32)
    biases = biases.at[0, :HID].set(p["fc1"][1])
    biases = biases.at[1, :HID].set(p["fc2"][1])
    biases = biases.at[2, :latent_dim].set(p["fc31"][1])
    biases = biases.at[2, latent_dim:2 * latent_dim].set(p["fc32"][1])
    biases = biases.at[3, :HID].set(p["fc4"][1])
    biases = biases.at[4, :HID].set(p["fc5"][1])
    biases = biases.at[5, :IMG].set(p["fc6"][1])

    return dict(w1=w1, w25=w25, w3=w3, w4=w4, w6=w6, biases=biases, in_pad=in_pad)


def cvae_forward(x, c, packed, *, latent_dim=64, feature_dim=0, block_b=512):
    """Returns (recon [B,1,28,28], mu [B,L], logvar [B,L]) — eval-mode forward."""
    B = x.shape[0]
    in_dim = IMG + feature_dim
    in_pad = packed["in_pad"]

    # Batch tiling: pick the largest tile <= block_b (weights stay resident).
    tb = min(block_b, _round_up(B, 8))
    b_pad = _round_up(B, tb)

    x_flat = x.reshape(B, IMG).astype(jnp.float32)
    xcat = jnp.zeros((b_pad, in_pad), jnp.float32).at[:B, :IMG].set(x_flat)
    if feature_dim > 0:
        xcat = xcat.at[:B, IMG:in_dim].set(c)
    xcat = xcat.astype(jnp.bfloat16)

    cpad = jnp.zeros((b_pad, STATS_PAD), jnp.float32)
    if feature_dim > 0:
        cpad = cpad.at[:B, C_POS:C_POS + feature_dim].set(c)

    kernel = functools.partial(_cvae_kernel, latent_dim=latent_dim)
    out = pl.pallas_call(
        kernel,
        out_shape=jax.ShapeDtypeStruct((b_pad, OUT_W), jnp.float32),
        grid_spec=pltpu.PrefetchScalarGridSpec(
            num_scalar_prefetch=0,
            grid=(b_pad // tb,),
            in_specs=[
                pl.BlockSpec((tb, in_pad), lambda i: (i, 0)),          # x||c (bf16)
                pl.BlockSpec((tb, STATS_PAD), lambda i: (i, 0)),       # c shifted to lanes 64+
                pl.BlockSpec((in_pad, HID), lambda i: (0, 0)),         # W1
                pl.BlockSpec((2, HID, HID), lambda i: (0, 0, 0)),      # W2|W5 stacked
                pl.BlockSpec((HID, STATS_PAD), lambda i: (0, 0)),      # W31|W32 fused
                pl.BlockSpec((DEC_PAD, HID), lambda i: (0, 0)),        # W4
                pl.BlockSpec((HID, OUT_RECON_PAD), lambda i: (0, 0)),  # W6
                pl.BlockSpec((8, OUT_RECON_PAD), lambda i: (0, 0)),    # all biases
            ],
            out_specs=pl.BlockSpec((tb, OUT_W), lambda i: (i, 0)),
        ),
        compiler_params=pltpu.CompilerParams(
            dimension_semantics=("parallel",)),
    )(xcat, cpad, packed["w1"], packed["w25"], packed["w3"], packed["w4"],
      packed["w6"], packed["biases"])

    recon = out[:B, :IMG].reshape(B, 1, 28, 28)
    mu = out[:B, OUT_RECON_PAD:OUT_RECON_PAD + latent_dim]
    logvar = out[:B, OUT_RECON_PAD + latent_dim:OUT_RECON_PAD + 2 * latent_dim]
    return recon, mu, logvar


def _reference_forward(x, c, p):
    """Pure-JAX reference with the same bf16-operand / f32-accumulate math."""
    bf16 = jnp.bfloat16

    def lin(a, w, b):
        return jnp.dot(a.astype(bf16), w.astype(bf16),
                       preferred_element_type=jnp.float32) + b

    B = x.shape[0]
    xcat = jnp.concatenate([x.reshape(B, IMG), c], axis=1)
    h = jnp.maximum(lin(xcat, *p["fc1"]), 0.0)
    h = jnp.maximum(lin(h, *p["fc2"]), 0.0)
    mu = lin(h, *p["fc31"])
    logvar = lin(h, *p["fc32"])
    z = mu  # eval-mode reparameterize
    inp = jnp.concatenate([z, c], axis=1)
    h = jnp.maximum(lin(inp, *p["fc4"]), 0.0)
    h = jnp.maximum(lin(h, *p["fc5"]), 0.0)
    recon = _sigmoid(lin(h, *p["fc6"]))
    return recon.reshape(B, 1, 28, 28), mu, logvar


if __name__ == "__main__":
    key = jax.random.PRNGKey(0)
    k_params, k_x, k_c = jax.random.split(key, 3)

    latent_dim, feature_dim, batch = 64, 10, 8
    params = make_params(k_params, latent_dim=latent_dim, feature_dim=feature_dim)
    packed = pack_params(params, latent_dim, feature_dim)

    x = jax.random.normal(k_x, (batch, 1, 28, 28), jnp.float32)
    c = jax.random.normal(k_c, (batch, feature_dim), jnp.float32)

    recon, mu, logvar = cvae_forward(x, c, packed,
                                     latent_dim=latent_dim, feature_dim=feature_dim)
    recon = jax.block_until_ready(recon)
    mu = jax.block_until_ready(mu)
    logvar = jax.block_until_ready(logvar)

    ref_recon, ref_mu, ref_logvar = _reference_forward(x, c, params)

    assert recon.shape == (batch, 1, 28, 28)
    assert mu.shape == (batch, latent_dim)
    assert logvar.shape == (batch, latent_dim)
    assert jnp.allclose(recon, ref_recon, atol=2e-3, rtol=2e-3), \
        float(jnp.max(jnp.abs(recon - ref_recon)))
    assert jnp.allclose(mu, ref_mu, atol=2e-3, rtol=2e-3), \
        float(jnp.max(jnp.abs(mu - ref_mu)))
    assert jnp.allclose(logvar, ref_logvar, atol=2e-3, rtol=2e-3), \
        float(jnp.max(jnp.abs(logvar - ref_logvar)))

    print("KERNEL_OK")
</pallas_src>

<mosaic_0001>
module attributes {stable_mosaic.version = 11 : i64} {
  func.func @_cvae_kernel(%arg0: i32, %arg1: memref<8x896xbf16, #tpu.memory_space<vmem>>, %arg2: memref<8x128xf32, #tpu.memory_space<vmem>>, %arg3: memref<896x512xbf16, #tpu.memory_space<vmem>>, %arg4: memref<2x512x512xbf16, #tpu.memory_space<vmem>>, %arg5: memref<512x128xbf16, #tpu.memory_space<vmem>>, %arg6: memref<128x512xbf16, #tpu.memory_space<vmem>>, %arg7: memref<512x896xbf16, #tpu.memory_space<vmem>>, %arg8: memref<8x896xf32, #tpu.memory_space<vmem>>, %arg9: memref<8x1024xf32, #tpu.memory_space<vmem>>) attributes {dimension_semantics = [#tpu.dimension_semantics<parallel>], iteration_bounds = array<i64: 1>, scalar_prefetch = 0 : i64, scratch_operands = 0 : i64, tpu.core_type = #tpu.core_type<tc>, window_params = [{transform_indices = @transform_0, window_bounds = array<i64: 8, 896>}, {transform_indices = @transform_1, window_bounds = array<i64: 8, 128>}, {pipeline_mode = #tpu.pipeline_mode<synchronous>, transform_indices = @transform_2, window_bounds = array<i64: 896, 512>}, {pipeline_mode = #tpu.pipeline_mode<synchronous>, transform_indices = @transform_3, window_bounds = array<i64: 2, 512, 512>}, {pipeline_mode = #tpu.pipeline_mode<synchronous>, transform_indices = @transform_4, window_bounds = array<i64: 512, 128>}, {pipeline_mode = #tpu.pipeline_mode<synchronous>, transform_indices = @transform_5, window_bounds = array<i64: 128, 512>}, {pipeline_mode = #tpu.pipeline_mode<synchronous>, transform_indices = @transform_6, window_bounds = array<i64: 512, 896>}, {pipeline_mode = #tpu.pipeline_mode<synchronous>, transform_indices = @transform_7, window_bounds = array<i64: 8, 896>}, {transform_indices = @transform_8, window_bounds = array<i64: 8, 1024>}]} {
    %c0 = arith.constant 0 : index
    %c0_0 = arith.constant 0 : index
    %0 = vector.load %arg1[%c0, %c0_0] : memref<8x896xbf16, #tpu.memory_space<vmem>>, vector<8x896xbf16>
    %c0_1 = arith.constant 0 : index
    %c0_2 = arith.constant 0 : index
    %1 = vector.load %arg3[%c0_1, %c0_2] : memref<896x512xbf16, #tpu.memory_space<vmem>>, vector<896x512xbf16>
    %cst = arith.constant dense<0.000000e+00> : vector<8x512xf32>
    %2 = tpu.matmul %0, %1, %cst {dimension_numbers = #tpu.dot_dimension_numbers<[1], [0], [0], [1], [0, 0, 1, 1], [], []>} : vector<8x896xbf16>, vector<896x512xbf16>, vector<8x512xf32> -> vector<8x512xf32>
    %c0_3 = arith.constant 0 : index
    %c0_4 = arith.constant 0 : index
    %3 = vector.load %arg8[%c0_3, %c0_4] : memref<8x896xf32, #tpu.memory_space<vmem>>, vector<1x512xf32>
    %4 = vector.broadcast %3 : vector<1x512xf32> to vector<8x512xf32>
    %5 = arith.addf %2, %4 : vector<8x512xf32>
    %cst_5 = arith.constant 0.000000e+00 : f32
    %6 = vector.broadcast %cst_5 : f32 to vector<8x512xf32>
    %7 = arith.maximumf %5, %6 : vector<8x512xf32>
    %8 = arith.truncf %7 : vector<8x512xf32> to vector<8x512xbf16>
    %c0_6 = arith.constant 0 : index
    %c0_7 = arith.constant 0 : index
    %c0_8 = arith.constant 0 : index
    %9 = vector.load %arg4[%c0_6, %c0_7, %c0_8] : memref<2x512x512xbf16, #tpu.memory_space<vmem>>, vector<1x512x512xbf16>
    %10 = vector.shape_cast %9 : vector<1x512x512xbf16> to vector<512x512xbf16>
    %cst_9 = arith.constant dense<0.000000e+00> : vector<8x512xf32>
    %11 = tpu.matmul %8, %10, %cst_9 {dimension_numbers = #tpu.dot_dimension_numbers<[1], [0], [0], [1], [0, 0, 1, 1], [], []>} : vector<8x512xbf16>, vector<512x512xbf16>, vector<8x512xf32> -> vector<8x512xf32>
    %c1 = arith.constant 1 : index
    %c0_10 = arith.constant 0 : index
    %12 = vector.load %arg8[%c1, %c0_10] : memref<8x896xf32, #tpu.memory_space<vmem>>, vector<1x512xf32>
    %13 = vector.broadcast %12 : vector<1x512xf32> to vector<8x512xf32>
    %14 = arith.addf %11, %13 : vector<8x512xf32>
    %cst_11 = arith.constant 0.000000e+00 : f32
    %15 = vector.broadcast %cst_11 : f32 to vector<8x512xf32>
    %16 = arith.maximumf %14, %15 : vector<8x512xf32>
    %17 = arith.truncf %16 : vector<8x512xf32> to vector<8x512xbf16>
    %c0_12 = arith.constant 0 : index
    %c0_13 = arith.constant 0 : index
    %18 = vector.load %arg5[%c0_12, %c0_13] : memref<512x128xbf16, #tpu.memory_space<vmem>>, vector<512x128xbf16>
    %cst_14 = arith.constant dense<0.000000e+00> : vector<8x128xf32>
    %19 = tpu.matmul %17, %18, %cst_14 {dimension_numbers = #tpu.dot_dimension_numbers<[1], [0], [0], [1], [0, 0, 1, 1], [], []>} : vector<8x512xbf16>, vector<512x128xbf16>, vector<8x128xf32> -> vector<8x128xf32>
    %c2 = arith.constant 2 : index
    %c0_15 = arith.constant 0 : index
    %20 = vector.load %arg8[%c2, %c0_15] : memref<8x896xf32, #tpu.memory_space<vmem>>, vector<1x128xf32>
    %21 = vector.broadcast %20 : vector<1x128xf32> to vector<8x128xf32>
    %22 = arith.addf %19, %21 : vector<8x128xf32>
    %23 = tpu.iota {dimensions = array<i32: 1>} : vector<8x128xi32>
    %c64_i32 = arith.constant 64 : i32
    %24 = vector.broadcast %c64_i32 : i32 to vector<8x128xi32>
    %25 = arith.cmpi slt, %23, %24 : vector<8x128xi32>
    %c0_16 = arith.constant 0 : index
    %c0_17 = arith.constant 0 : index
    %26 = vector.load %arg2[%c0_16, %c0_17] : memref<8x128xf32, #tpu.memory_space<vmem>>, vector<8x128xf32>
    %27 = arith.select %25, %22, %26 : vector<8x128xi1>, vector<8x128xf32>
    %28 = arith.truncf %27 : vector<8x128xf32> to vector<8x128xbf16>
    %c0_18 = arith.constant 0 : index
    %c0_19 = arith.constant 0 : index
    %29 = vector.load %arg6[%c0_18, %c0_19] : memref<128x512xbf16, #tpu.memory_space<vmem>>, vector<128x512xbf16>
    %cst_20 = arith.constant dense<0.000000e+00> : vector<8x512xf32>
    %30 = tpu.matmul %28, %29, %cst_20 {dimension_numbers = #tpu.dot_dimension_numbers<[1], [0], [0], [1], [0, 0, 1, 1], [], []>} : vector<8x128xbf16>, vector<128x512xbf16>, vector<8x512xf32> -> vector<8x512xf32>
    %c3 = arith.constant 3 : index
    %c0_21 = arith.constant 0 : index
    %31 = vector.load %arg8[%c3, %c0_21] : memref<8x896xf32, #tpu.memory_space<vmem>>, vector<1x512xf32>
    %32 = vector.broadcast %31 : vector<1x512xf32> to vector<8x512xf32>
    %33 = arith.addf %30, %32 : vector<8x512xf32>
    %cst_22 = arith.constant 0.000000e+00 : f32
    %34 = vector.broadcast %cst_22 : f32 to vector<8x512xf32>
    %35 = arith.maximumf %33, %34 : vector<8x512xf32>
    %36 = arith.truncf %35 : vector<8x512xf32> to vector<8x512xbf16>
    %c1_23 = arith.constant 1 : index
    %c0_24 = arith.constant 0 : index
    %c0_25 = arith.constant 0 : index
    %37 = vector.load %arg4[%c1_23, %c0_24, %c0_25] : memref<2x512x512xbf16, #tpu.memory_space<vmem>>, vector<1x512x512xbf16>
    %38 = vector.shape_cast %37 : vector<1x512x512xbf16> to vector<512x512xbf16>
    %cst_26 = arith.constant dense<0.000000e+00> : vector<8x512xf32>
    %39 = tpu.matmul %36, %38, %cst_26 {dimension_numbers = #tpu.dot_dimension_numbers<[1], [0], [0], [1], [0, 0, 1, 1], [], []>} : vector<8x512xbf16>, vector<512x512xbf16>, vector<8x512xf32> -> vector<8x512xf32>
    %c4 = arith.constant 4 : index
    %c0_27 = arith.constant 0 : index
    %40 = vector.load %arg8[%c4, %c0_27] : memref<8x896xf32, #tpu.memory_space<vmem>>, vector<1x512xf32>
    %41 = vector.broadcast %40 : vector<1x512xf32> to vector<8x512xf32>
    %42 = arith.addf %39, %41 : vector<8x512xf32>
    %cst_28 = arith.constant 0.000000e+00 : f32
    %43 = vector.broadcast %cst_28 : f32 to vector<8x512xf32>
    %44 = arith.maximumf %42, %43 : vector<8x512xf32>
    %45 = arith.truncf %44 : vector<8x512xf32> to vector<8x512xbf16>
    %c0_29 = arith.constant 0 : index
    %c0_30 = arith.constant 0 : index
    %46 = vector.load %arg7[%c0_29, %c0_30] : memref<512x896xbf16, #tpu.memory_space<vmem>>, vector<512x896xbf16>
    %cst_31 = arith.constant dense<0.000000e+00> : vector<8x896xf32>
    %47 = tpu.matmul %45, %46, %cst_31 {dimension_numbers = #tpu.dot_dimension_numbers<[1], [0], [0], [1], [0, 0, 1, 1], [], []>} : vector<8x512xbf16>, vector<512x896xbf16>, vector<8x896xf32> -> vector<8x896xf32>
    %c5 = arith.constant 5 : index
    %c0_32 = arith.constant 0 : index
    %48 = vector.load %arg8[%c5, %c0_32] : memref<8x896xf32, #tpu.memory_space<vmem>>, vector<1x896xf32>
    %49 = vector.broadcast %48 : vector<1x896xf32> to vector<8x896xf32>
    %50 = arith.addf %47, %49 : vector<8x896xf32>
    %cst_33 = arith.constant 0.000000e+00 : f32
    %51 = vector.broadcast %cst_33 : f32 to vector<8x896xf32>
    %52 = arith.subf %51, %50 : vector<8x896xf32>
    %53 = math.exp %52 : vector<8x896xf32>
    %cst_34 = arith.constant 1.000000e+00 : f32
    %54 = vector.broadcast %cst_34 : f32 to vector<8x896xf32>
    %55 = arith.addf %54, %53 : vector<8x896xf32>
    %cst_35 = arith.constant 1.000000e+00 : f32
    %56 = vector.broadcast %cst_35 : f32 to vector<8x896xf32>
    %57 = arith.divf %56, %55 : vector<8x896xf32>
    %c0_36 = arith.constant 0 : index
    %c0_37 = arith.constant 0 : index
    %58 = vector.load %arg9[%c0_36, %c0_37] : memref<8x1024xf32, #tpu.memory_space<vmem>>, vector<8x896xf32>
    tpu.vector_store %arg9[%c0_36, %c0_37], %57 {strides = array<i32>} : memref<8x1024xf32, #tpu.memory_space<vmem>>, vector<8x896xf32>,
    %c0_38 = arith.constant 0 : index
    %c896 = arith.constant 896 : index
    %59 = vector.load %arg9[%c0_38, %c896] : memref<8x1024xf32, #tpu.memory_space<vmem>>, vector<8x128xf32>
    tpu.vector_store %arg9[%c0_38, %c896], %22 {strides = array<i32>} : memref<8x1024xf32, #tpu.memory_space<vmem>>, vector<8x128xf32>,
    return
  }
  func.func @transform_0(%arg0: i32) -> (i32, i32) {
    %c0_i32 = arith.constant 0 : i32
    %c0_i32_0 = arith.constant 0 : i32
    return %arg0, %c0_i32 : i32, i32
  }
  func.func @transform_1(%arg0: i32) -> (i32, i32) {
    %c0_i32 = arith.constant 0 : i32
    %c0_i32_0 = arith.constant 0 : i32
    return %arg0, %c0_i32 : i32, i32
  }
  func.func @transform_2(%arg0: i32) -> (i32, i32) {
    %c0_i32 = arith.constant 0 : i32
    %c0_i32_0 = arith.constant 0 : i32
    %c0_i32_1 = arith.constant 0 : i32
    return %c0_i32, %c0_i32_0 : i32, i32
  }
  func.func @transform_3(%arg0: i32) -> (i32, i32, i32) {
    %c0_i32 = arith.constant 0 : i32
    %c0_i32_0 = arith.constant 0 : i32
    %c0_i32_1 = arith.constant 0 : i32
    %c0_i32_2 = arith.constant 0 : i32
    return %c0_i32, %c0_i32_0, %c0_i32_1 : i32, i32, i32
  }
  func.func @transform_4(%arg0: i32) -> (i32, i32) {
    %c0_i32 = arith.constant 0 : i32
    %c0_i32_0 = arith.constant 0 : i32
    %c0_i32_1 = arith.constant 0 : i32
    return %c0_i32, %c0_i32_0 : i32, i32
  }
  func.func @transform_5(%arg0: i32) -> (i32, i32) {
    %c0_i32 = arith.constant 0 : i32
    %c0_i32_0 = arith.constant 0 : i32
    %c0_i32_1 = arith.constant 0 : i32
    return %c0_i32, %c0_i32_0 : i32, i32
  }
  func.func @transform_6(%arg0: i32) -> (i32, i32) {
    %c0_i32 = arith.constant 0 : i32
    %c0_i32_0 = arith.constant 0 : i32
    %c0_i32_1 = arith.constant 0 : i32
    return %c0_i32, %c0_i32_0 : i32, i32
  }
  func.func @transform_7(%arg0: i32) -> (i32, i32) {
    %c0_i32 = arith.constant 0 : i32
    %c0_i32_0 = arith.constant 0 : i32
    %c0_i32_1 = arith.constant 0 : i32
    return %c0_i32, %c0_i32_0 : i32, i32
  }
  func.func @transform_8(%arg0: i32) -> (i32, i32) {
    %c0_i32 = arith.constant 0 : i32
    %c0_i32_0 = arith.constant 0 : i32
    return %arg0, %c0_i32 : i32, i32
  }
}

</mosaic_0001>

<bundles_post_ra>
// kernel: tpu_custom_call.1
= control target key start
LH: loop header
LB: loop body
LE: loop exit
PB: predicated region body
PF: predicated region fallthrough
CT: control target
= control target key end

     0   :  { %13 = vsyncpa [#allocation3], 0  ;;  %s8908_s0 = inlined_call_operand.hbm [shape: bf16[8,896], index: 0, kind: input, shape index: {}]   ;;  %s8909_s1 = inlined_call_operand.hbm [shape: f32[8,128], index: 1, kind: input, shape index: {}]   ;;  %s8910_s2 = inlined_call_operand.hbm [shape: bf16[896,512], index: 2, kind: input, shape index: {}]   ;;  %s8911_s3 = inlined_call_operand.hbm [shape: bf16[2,512,512], index: 3, kind: input, shape index: {}]   ;;  %s8912_s4 = inlined_call_operand.hbm [shape: bf16[512,128], index: 4, kind: input, shape index: {}]   ;;  %s8913_s5 = inlined_call_operand.hbm [shape: bf16[128,512], index: 5, kind: input, shape index: {}]   ;;  %s8914_s6 = inlined_call_operand.hbm [shape: bf16[512,896], index: 6, kind: input, shape index: {}]   ;;  %s8915_s7 = inlined_call_operand.hbm [shape: f32[8,896], index: 7, kind: input, shape index: {}]   ;;  %s8916_s8 = inlined_call_operand.hbm [shape: f32[8,1024], index: 8, kind: output, shape index: {}]  }
   0x1   :  { %14 = vsyncpa [#allocation6], 0 }
   0x2   :  { %15 = vsyncpa [#allocation9], 0 }
   0x3   :  { %16 = vsyncpa [#allocation12], 0 }
   0x4   :  { %17 = vsyncpa [#allocation15], 0 }
   0x5   :  { %18 = vsyncpa [#allocation4], 0  ;;  %s8596_s27 = smov [#allocation5]   ;;  %s8386_s9 = scalar_lea.hbm %s8909_s1, 128 }
   0x6   :  { %s35_s28 = sshll.u32 %s8596_s27, 4  ;;  %p8387_p0 = scmp.ne.s32.totalorder %s8909_s1, %s8386_s9  ;;  %s36_s28 = int_to_ptr.vmem [resolvable:$true] %s35_s28 }
   0x7   :  { %p8390_p1 = scmp.lt.u32.totalorder %s8386_s9, %s8909_s1 }
   0x9   :  { %p8392_p2 = pnand %p8390_p1, %p8387_p0 }
   0xb   :  { %8395 = shalt.err (!%p8392_p2)
}
   0xc   :  { %s8396_s14 = scalar_lea.vmem %s36_s28, 128  ;;  %p8401_p4 = scmp.lt.s32.totalorder %s36_s28, %s36_s28 }
   0xd   :  { %p8397_p3 = scmp.ne.s32.totalorder %s36_s28, %s8396_s14  ;;  %p8402_p5 = scmp.lt.s32.totalorder %s8396_s14, %s8396_s14 }
   0xf   :  { %p8403_p6 = por %p8402_p5, %p8401_p4 }
  0x11   :  { %p8404_p7 = pnand %p8403_p6, %p8397_p3 }
  0x13   :  { %8407 = shalt.err (!%p8404_p7)
}
  0x14   :  { %38 = dma.hbm_to_vmem [thread:$0]  %s8909_s1, 128, %s36_s28, [#allocation6]  }
  0x15   :  { %s8597_s17 = smov [#allocation8]   ;;  %s8598_s19 = smov [#allocation11]  }
  0x16   :  { %s56_s18 = sshll.u32 %s8597_s17, 4  ;;  %s80_s20 = sshll.u32 %s8598_s19, 4  ;;  %s57_s18 = int_to_ptr.vmem [resolvable:$true] %s56_s18  ;;  %s81_s20 = int_to_ptr.vmem [resolvable:$true] %s80_s20 }
  0x17   :  { %s8408_s23 = scalar_lea.hbm %s8911_s3, 32768 }
  0x18   :  { %p8409_p8 = scmp.ne.s32.totalorder %s8911_s3, %s8408_s23  ;;  %p8412_p9 = scmp.lt.u32.totalorder %s8408_s23, %s8911_s3 }
  0x1a   :  { %p8414_p10 = pnand %p8412_p9, %p8409_p8 }
  0x1c   :  { %8417 = shalt.err (!%p8414_p10)
}
  0x1d   :  { %s8418_s1 = scalar_lea.vmem %s57_s18, 32768  ;;  %p8423_p12 = scmp.lt.s32.totalorder %s57_s18, %s57_s18 }
  0x1e   :  { %p8419_p11 = scmp.ne.s32.totalorder %s57_s18, %s8418_s1  ;;  %p8424_p13 = scmp.lt.s32.totalorder %s8418_s1, %s8418_s1 }
  0x20   :  { %p8425_p0 = por %p8424_p13, %p8423_p12 }
  0x22   :  { %p8426_p1 = pnand %p8425_p0, %p8419_p11 }
  0x24   :  { %8429 = shalt.err (!%p8426_p1)
}
  0x25   :  { %s8599_s28 = smov 256   ;;  %s8600_s29 = smov 16  }
  0x26   :  { %62 = dma.hbm_to_vmem [thread:$0]  %s8911_s3, 32768, %s57_s18, [#allocation9], %s8599_s28, %s8599_s28, %s8600_s29  }
  0x27   :  { %s8430_s12 = scalar_lea.hbm %s8913_s5, 4096 }
  0x28   :  { %p8431_p2 = scmp.ne.s32.totalorder %s8913_s5, %s8430_s12  ;;  %p8434_p3 = scmp.lt.u32.totalorder %s8430_s12, %s8913_s5 }
  0x2a   :  { %p8436_p4 = pnand %p8434_p3, %p8431_p2 }
  0x2c   :  { %8439 = shalt.err (!%p8436_p4)
}
  0x2d   :  { %s8440_s17 = scalar_lea.vmem %s81_s20, 4096  ;;  %p8445_p6 = scmp.lt.s32.totalorder %s81_s20, %s81_s20 }
  0x2e   :  { %p8441_p5 = scmp.ne.s32.totalorder %s81_s20, %s8440_s17  ;;  %p8446_p7 = scmp.lt.s32.totalorder %s8440_s17, %s8440_s17 }
  0x30   :  { %p8447_p8 = por %p8446_p7, %p8445_p6 }
  0x32   :  { %p8448_p9 = pnand %p8447_p8, %p8441_p5 }
  0x34   :  { %8451 = shalt.err (!%p8448_p9)
}
  0x35   :  { %86 = dma.hbm_to_vmem [thread:$0]  %s8913_s5, 4096, %s81_s20, [#allocation12], %s8599_s28, %s8599_s28, %s8600_s29  }
  0x36   :  { %s8601_s19 = smov [#allocation2]   ;;  %s8602_s22 = smov [#allocation7]  }
  0x37   :  { %s25_s21 = sshll.u32 %s8601_s19, 4  ;;  %s44_s23 = sshll.u32 %s8602_s22, 4  ;;  %s26_s21 = int_to_ptr.vmem [resolvable:$true] %s25_s21  ;;  %s45_s23 = int_to_ptr.vmem [resolvable:$true] %s44_s23 }
  0x38   :  { %s8452_s26 = scalar_lea.hbm %s8908_s0, 448 }
  0x39   :  { %p8453_p10 = scmp.ne.s32.totalorder %s8908_s0, %s8452_s26  ;;  %p8456_p11 = scmp.lt.u32.totalorder %s8452_s26, %s8908_s0 }
  0x3b   :  { %p8458_p12 = pnand %p8456_p11, %p8453_p10 }
  0x3d   :  { %8461 = shalt.err (!%p8458_p12)
}
  0x3e   :  { %s8462_s5 = scalar_lea.vmem %s26_s21, 448  ;;  %p8467_p0 = scmp.lt.s32.totalorder %s26_s21, %s26_s21 }
  0x3f   :  { %p8463_p13 = scmp.ne.s32.totalorder %s26_s21, %s8462_s5  ;;  %p8468_p1 = scmp.lt.s32.totalorder %s8462_s5, %s8462_s5 }
  0x41   :  { %p8469_p2 = por %p8468_p1, %p8467_p0 }
  0x43   :  { %p8470_p3 = pnand %p8469_p2, %p8463_p13 }
  0x45   :  { %8473 = shalt.err (!%p8470_p3)
}
  0x46   :  { %28 = dma.hbm_to_vmem [thread:$0]  %s8908_s0, 448, %s26_s21, [#allocation3]  }
  0x47   :  { %s8474_s13 = scalar_lea.hbm %s8910_s2, 28672 }
  0x48   :  { %p8475_p4 = scmp.ne.s32.totalorder %s8910_s2, %s8474_s13  ;;  %p8478_p5 = scmp.lt.u32.totalorder %s8474_s13, %s8910_s2 }
  0x4a   :  { %p8480_p6 = pnand %p8478_p5, %p8475_p4 }
  0x4c   :  { %8483 = shalt.err (!%p8480_p6)
}
  0x4d   :  { %s8484_s3 = scalar_lea.vmem %s45_s23, 28672  ;;  %p8489_p8 = scmp.lt.s32.totalorder %s45_s23, %s45_s23 }
  0x4e   :  { %p8485_p7 = scmp.ne.s32.totalorder %s45_s23, %s8484_s3  ;;  %p8490_p9 = scmp.lt.s32.totalorder %s8484_s3, %s8484_s3 }
  0x50   :  { %p8491_p10 = por %p8490_p9, %p8489_p8 }
  0x52   :  { %p8492_p11 = pnand %p8491_p10, %p8485_p7 }
  0x54   :  { %8495 = shalt.err (!%p8492_p11)
}
  0x55   :  { %50 = dma.hbm_to_vmem [thread:$0]  %s8910_s2, 28672, %s45_s23, [#allocation6], %s8599_s28, %s8599_s28, %s8600_s29  }
  0x56   :  { %s8603_s19 = smov [#allocation10]   ;;  %s8496_s25 = scalar_lea.hbm %s8912_s4, 4096 }
  0x57   :  { %s68_s21 = sshll.u32 %s8603_s19, 4  ;;  %p8497_p12 = scmp.ne.s32.totalorder %s8912_s4, %s8496_s25  ;;  %s69_s21 = int_to_ptr.vmem [resolvable:$true] %s68_s21 }
  0x58   :  { %p8500_p13 = scmp.lt.u32.totalorder %s8496_s25, %s8912_s4 }
  0x5a   :  { %p8502_p0 = pnand %p8500_p13, %p8497_p12 }
  0x5c   :  { %8505 = shalt.err (!%p8502_p0)
}
  0x5d   :  { %s8506_s9 = scalar_lea.vmem %s69_s21, 4096  ;;  %p8511_p2 = scmp.lt.s32.totalorder %s69_s21, %s69_s21 }
  0x5e   :  { %p8507_p1 = scmp.ne.s32.totalorder %s69_s21, %s8506_s9  ;;  %p8512_p3 = scmp.lt.s32.totalorder %s8506_s9, %s8506_s9 }
  0x60   :  { %p8513_p4 = por %p8512_p3, %p8511_p2 }
  0x62   :  { %p8514_p5 = pnand %p8513_p4, %p8507_p1 }
  0x64   :  { %8517 = shalt.err (!%p8514_p5)
}
  0x65   :  { %s8604_s2 = smov 64   ;;  %s8605_s28 = smov 4  }
  0x66   :  { %74 = dma.hbm_to_vmem [thread:$0]  %s8912_s4, 4096, %s69_s21, [#allocation9], %s8604_s2, %s8604_s2, %s8605_s28  }
  0x67   :  { %s8606_s5 = smov [#allocation13]   ;;  %s8518_s12 = scalar_lea.hbm %s8914_s6, 28672 }
  0x68   :  { %s92_s20 = sshll.u32 %s8606_s5, 4  ;;  %p8519_p6 = scmp.ne.s32.totalorder %s8914_s6, %s8518_s12  ;;  %s93_s20 = int_to_ptr.vmem [resolvable:$true] %s92_s20 }
  0x69   :  { %p8522_p7 = scmp.lt.u32.totalorder %s8518_s12, %s8914_s6 }
  0x6b   :  { %p8524_p8 = pnand %p8522_p7, %p8519_p6 }
  0x6d   :  { %8527 = shalt.err (!%p8524_p8)
}
  0x6e   :  { %s8528_s17 = scalar_lea.vmem %s93_s20, 28672  ;;  %p8533_p10 = scmp.lt.s32.totalorder %s93_s20, %s93_s20 }
  0x6f   :  { %p8529_p9 = scmp.ne.s32.totalorder %s93_s20, %s8528_s17  ;;  %p8534_p11 = scmp.lt.s32.totalorder %s8528_s17, %s8528_s17 }
  0x71   :  { %p8535_p12 = por %p8534_p11, %p8533_p10 }
  0x73   :  { %p8536_p13 = pnand %p8535_p12, %p8529_p9 }
  0x75   :  { %8539 = shalt.err (!%p8536_p13)
}
  0x76   :  { %s8607_s4 = smov 448   ;;  %s8608_s3 = smov 28  }
  0x77   :  { %98 = dma.hbm_to_vmem [thread:$0]  %s8914_s6, 28672, %s93_s20, [#allocation12], %s8607_s4, %s8607_s4, %s8608_s3  }
  0x78   :  { %s8609_s19 = smov [#allocation14]   ;;  %s8540_s25 = scalar_lea.hbm %s8915_s7, 896 }
  0x79   :  { %s105_s21 = sshll.u32 %s8609_s19, 4  ;;  %p8541_p0 = scmp.ne.s32.totalorder %s8915_s7, %s8540_s25  ;;  %s106_s21 = int_to_ptr.vmem [resolvable:$true] %s105_s21 }
  0x7a   :  { %p8544_p1 = scmp.lt.u32.totalorder %s8540_s25, %s8915_s7 }
  0x7c   :  { %p8546_p2 = pnand %p8544_p1, %p8541_p0 }
  0x7e   :  { %8549 = shalt.err (!%p8546_p2)
}
  0x7f   :  { %s8550_s9 = scalar_lea.vmem %s106_s21, 896  ;;  %p8555_p4 = scmp.lt.s32.totalorder %s106_s21, %s106_s21 }
  0x80   :  { %p8551_p3 = scmp.ne.s32.totalorder %s106_s21, %s8550_s9  ;;  %p8556_p5 = scmp.lt.s32.totalorder %s8550_s9, %s8550_s9 }
  0x82   :  { %p8557_p6 = por %p8556_p5, %p8555_p4 }
  0x84   :  { %p8558_p7 = pnand %p8557_p6, %p8551_p3 }
  0x86   :  { %8561 = shalt.err (!%p8558_p7)
}
  0x87   :  { %108 = dma.hbm_to_vmem [thread:$0]  %s8915_s7, 896, %s106_s21, [#allocation15]  }
  0x88   :  { %8584 = dma.done.wait [#allocation3], 448  }
  0x89   :  { %8585 = vsyncadd [#allocation3], 4294966848 }
  0x8a   :  { %8586 = dma.done.wait [#allocation6], 28800  }
  0x8b   :  { %8587 = vsyncadd [#allocation6], 4294938496 }
  0x8c   :  { %8588 = dma.done.wait [#allocation9], 36864  }
  0x8d   :  { %8589 = vsyncadd [#allocation9], 4294930432 }
  0x8e   :  { %8590 = dma.done.wait [#allocation12], 32768  }
  0x8f   :  { %8591 = vsyncadd [#allocation12], 4294934528 }
  0x90   :  { %8592 = dma.done.wait [#allocation15], 896  }
  0x91   :  { %8593 = vsyncadd [#allocation15], 4294966400  ;;  %v8610_v0 = vmov 0   ;;  %v7230_v1 = vld [vmem:[#allocation7 + $0x4] ss:$16 sps:$4 sm:$0xff]   ;;  %v134_v49 = vld [vmem:[#allocation2] sm:$0xff] }
  0x92   :  { %1684 = vmatprep.mubr.bf16.mxu1 %v8610_v0  ;;  %v7232_v2 = vld [vmem:[#allocation7 + $0x604] ss:$16 sps:$4 sm:$0xff]   ;;  %1529 = vmatprep.subr.bf16.mxu0 %v7230_v1  ;;  %v7234_v3 = vld [vmem:[#allocation7] ss:$16 sps:$4 sm:$0xff]   ;;  %v7283_v34 = vld [vmem:[#allocation7 + $0xc] ss:$16 sps:$4 sm:$0xff]   ;;  %v6284_v52 = vcombine.high %v134_v49, %v134_v49 }
  0x93   :  { %v7235_v4 = vld [vmem:[#allocation7 + $0x600] ss:$16 sps:$4 sm:$0xff]   ;;  %1652 = vmatprep.subr.bf16.mxu1 %v7232_v2  ;;  %v7236_v5 = vld [vmem:[#allocation7 + $0x24] ss:$16 sps:$4 sm:$0xff]   ;;  %1530 = vmatpush1.bf16.msra.mxu0 %v7234_v3  ;;  %v7281_v36 = vld [vmem:[#allocation7 + $0x8] ss:$16 sps:$4 sm:$0xff]  }
  0x94   :  { %1653 = vmatpush1.bf16.msra.mxu1 %v7235_v4  ;;  %v7238_v6 = vld [vmem:[#allocation7 + $0x624] ss:$16 sps:$4 sm:$0xff]   ;;  %v7240_v7 = vld [vmem:[#allocation7 + $0x20] ss:$16 sps:$4 sm:$0xff]   ;;  %1531 = vmatprep.subr.bf16.mxu0 %v7236_v5  ;;  %v7289_v39 = vld [vmem:[#allocation7 + $0x2c] ss:$16 sps:$4 sm:$0xff]  }
  0x95   :  { %v7241_v8 = vld [vmem:[#allocation7 + $0x620] ss:$16 sps:$4 sm:$0xff]   ;;  %1654 = vmatprep.subr.bf16.mxu1 %v7238_v6  ;;  %v7242_v9 = vld [vmem:[#allocation7 + $0x44] ss:$16 sps:$4 sm:$0xff]   ;;  %v7287_v40 = vld [vmem:[#allocation7 + $0x28] ss:$16 sps:$4 sm:$0xff]   ;;  %1561 = vmatprep.mubr.bf16.mxu0 %v6284_v52 }
  0x96   :  { %v7244_v10 = vld [vmem:[#allocation7 + $0x644] ss:$16 sps:$4 sm:$0xff]   ;;  %v7246_v11 = vld [vmem:[#allocation7 + $0x40] ss:$16 sps:$4 sm:$0xff]   ;;  %v7295_v43 = vld [vmem:[#allocation7 + $0x4c] ss:$16 sps:$4 sm:$0xff]  }
  0x97   :  { %v7247_v12 = vld [vmem:[#allocation7 + $0x640] ss:$16 sps:$4 sm:$0xff]   ;;  %1532 = vmatpush1.bf16.msra.mxu0 %v7240_v7  ;;  %v7248_v13 = vld [vmem:[#allocation7 + $0x64] ss:$16 sps:$4 sm:$0xff]   ;;  %v7293_v44 = vld [vmem:[#allocation7 + $0x48] ss:$16 sps:$4 sm:$0xff]   ;;  %v8763_v7 = vcombine.low %v134_v49, %v134_v49 }
  0x98   :  { %1655 = vmatpush1.bf16.msra.mxu1 %v7241_v8  ;;  %1533 = vmatprep.subr.bf16.mxu0 %v7242_v9  ;;  %v7250_v14 = vld [vmem:[#allocation7 + $0x664] ss:$16 sps:$4 sm:$0xff]   ;;  %v7252_v15 = vld [vmem:[#allocation7 + $0x60] ss:$16 sps:$4 sm:$0xff]   ;;  %v7301_v47 = vld [vmem:[#allocation7 + $0x6c] ss:$16 sps:$4 sm:$0xff]  }
  0x99   :  { %1656 = vmatprep.subr.bf16.mxu1 %v7244_v10  ;;  %v7253_v16 = vld [vmem:[#allocation7 + $0x660] ss:$16 sps:$4 sm:$0xff]   ;;  %v7254_v17 = vld [vmem:[#allocation7 + $0x84] ss:$16 sps:$4 sm:$0xff]   ;;  %v7299_v48 = vld [vmem:[#allocation7 + $0x68] ss:$16 sps:$4 sm:$0xff]  }
  0x9a   :  { %v7256_v18 = vld [vmem:[#allocation7 + $0x684] ss:$16 sps:$4 sm:$0xff]   ;;  %v7258_v19 = vld [vmem:[#allocation7 + $0x80] ss:$16 sps:$4 sm:$0xff]   ;;  %v7307_v53 = vld [vmem:[#allocation7 + $0x8c] ss:$16 sps:$4 sm:$0xff]  }
  0x9b   :  { %1534 = vmatpush1.bf16.msra.mxu0 %v7246_v11  ;;  %v7259_v20 = vld [vmem:[#allocation7 + $0x680] ss:$16 sps:$4 sm:$0xff]   ;;  %v7260_v21 = vld [vmem:[#allocation7 + $0xa4] ss:$16 sps:$4 sm:$0xff]   ;;  %v7305_v54 = vld [vmem:[#allocation7 + $0x88] ss:$16 sps:$4 sm:$0xff]  }
  0x9c   :  { %1657 = vmatpush1.bf16.msra.mxu1 %v7247_v12  ;;  %1535 = vmatprep.subr.bf16.mxu0 %v7248_v13  ;;  %v7262_v22 = vld [vmem:[#allocation7 + $0x6a4] ss:$16 sps:$4 sm:$0xff]   ;;  %v7264_v23 = vld [vmem:[#allocation7 + $0xa0] ss:$16 sps:$4 sm:$0xff]   ;;  %v7313_v57 = vld [vmem:[#allocation7 + $0xac] ss:$16 sps:$4 sm:$0xff]  }
  0x9d   :  { %1658 = vmatprep.subr.bf16.mxu1 %v7250_v14  ;;  %v7265_v24 = vld [vmem:[#allocation7 + $0x6a0] ss:$16 sps:$4 sm:$0xff]   ;;  %v7266_v25 = vld [vmem:[#allocation7 + $0xc4] ss:$16 sps:$4 sm:$0xff]   ;;  %v7311_v58 = vld [vmem:[#allocation7 + $0xa8] ss:$16 sps:$4 sm:$0xff]  }
  0x9e   :  { %v7268_v26 = vld [vmem:[#allocation7 + $0x6c4] ss:$16 sps:$4 sm:$0xff]   ;;  %v7270_v27 = vld [vmem:[#allocation7 + $0xc0] ss:$16 sps:$4 sm:$0xff]   ;;  %v7319_v61 = vld [vmem:[#allocation7 + $0xcc] ss:$16 sps:$4 sm:$0xff]  }
  0x9f   :  { %1536 = vmatpush1.bf16.msra.mxu0 %v7252_v15  ;;  %v7271_v28 = vld [vmem:[#allocation7 + $0x6c0] ss:$16 sps:$4 sm:$0xff]   ;;  %v7272_v29 = vld [vmem:[#allocation7 + $0xe4] ss:$16 sps:$4 sm:$0xff]   ;;  %v7317_v62 = vld [vmem:[#allocation7 + $0xc8] ss:$16 sps:$4 sm:$0xff]  }
  0xa0   :  { %1659 = vmatpush1.bf16.msra.mxu1 %v7253_v16  ;;  %1537 = vmatprep.subr.bf16.mxu0 %v7254_v17  ;;  %v7274_v30 = vld [vmem:[#allocation7 + $0x6e4] ss:$16 sps:$4 sm:$0xff]   ;;  %v7276_v31 = vld [vmem:[#allocation7 + $0xe0] ss:$16 sps:$4 sm:$0xff]   ;;  %v7325_v2 = vld [vmem:[#allocation7 + $0xec] ss:$16 sps:$4 sm:$0xff]  }
  0xa1   :  { %1660 = vmatprep.subr.bf16.mxu1 %v7256_v18  ;;  %v7277_v32 = vld [vmem:[#allocation7 + $0x6e0] ss:$16 sps:$4 sm:$0xff]   ;;  %v7278_v33 = vld [vmem:[#allocation7 + $0x104] ss:$16 sps:$4 sm:$0xff]   ;;  %v7323_v3 = vld [vmem:[#allocation7 + $0xe8] ss:$16 sps:$4 sm:$0xff]  }
  0xa2   :  { %v7280_v35 = vld [vmem:[#allocation2 + $0x18] ss:$0 sps:$4 sm:$0xff]   ;;  %v7284_v37 = vld [vmem:[#allocation7 + $0x100] ss:$16 sps:$4 sm:$0xff]   ;;  %v7334_v6 = vld [vmem:[#allocation7 + $0x10c] ss:$16 sps:$4 sm:$0xff]  }
  0xa3   :  { %1538 = vmatpush1.bf16.msra.mxu0 %v7258_v19  ;;  %v7285_v38 = vld [vmem:[#allocation7 + $0x124] ss:$16 sps:$4 sm:$0xff]   ;;  %v7290_v41 = vld [vmem:[#allocation7 + $0x120] ss:$16 sps:$4 sm:$0xff]   ;;  %v7332_v9 = vld [vmem:[#allocation7 + $0x108] ss:$16 sps:$4 sm:$0xff]  }
  0xa4   :  { %1661 = vmatpush1.bf16.msra.mxu1 %v7259_v20  ;;  %1539 = vmatprep.subr.bf16.mxu0 %v7260_v21  ;;  %v7291_v42 = vld [vmem:[#allocation7 + $0x144] ss:$16 sps:$4 sm:$0xff]   ;;  %v7296_v45 = vld [vmem:[#allocation7 + $0x140] ss:$16 sps:$4 sm:$0xff]   ;;  %v7340_v11 = vld [vmem:[#allocation7 + $0x12c] ss:$16 sps:$4 sm:$0xff]  }
  0xa5   :  { %1662 = vmatprep.subr.bf16.mxu1 %v7262_v22  ;;  %v7297_v46 = vld [vmem:[#allocation7 + $0x164] ss:$16 sps:$4 sm:$0xff]   ;;  %v7302_v50 = vld [vmem:[#allocation7 + $0x160] ss:$16 sps:$4 sm:$0xff]   ;;  %v7338_v13 = vld [vmem:[#allocation7 + $0x128] ss:$16 sps:$4 sm:$0xff]  }
  0xa6   :  { %v7303_v51 = vld [vmem:[#allocation7 + $0x184] ss:$16 sps:$4 sm:$0xff]   ;;  %v7308_v55 = vld [vmem:[#allocation7 + $0x180] ss:$16 sps:$4 sm:$0xff]   ;;  %v7346_v15 = vld [vmem:[#allocation7 + $0x14c] ss:$16 sps:$4 sm:$0xff]  }
  0xa7   :  { %1540 = vmatpush1.bf16.msra.mxu0 %v7264_v23  ;;  %v7309_v56 = vld [vmem:[#allocation7 + $0x1a4] ss:$16 sps:$4 sm:$0xff]   ;;  %v7314_v59 = vld [vmem:[#allocation7 + $0x1a0] ss:$16 sps:$4 sm:$0xff]   ;;  %v7344_v17 = vld [vmem:[#allocation7 + $0x148] ss:$16 sps:$4 sm:$0xff]  }
  0xa8   :  { %1663 = vmatpush1.bf16.msra.mxu1 %v7265_v24  ;;  %1541 = vmatprep.subr.bf16.mxu0 %v7266_v25  ;;  %v7315_v60 = vld [vmem:[#allocation7 + $0x1c4] ss:$16 sps:$4 sm:$0xff]   ;;  %v7320_v63 = vld [vmem:[#allocation7 + $0x1c0] ss:$16 sps:$4 sm:$0xff]   ;;  %v7352_v19 = vld [vmem:[#allocation7 + $0x16c] ss:$16 sps:$4 sm:$0xff]  }
  0xa9   :  { %1664 = vmatprep.subr.bf16.mxu1 %v7268_v26  ;;  %v7321_v1 = vld [vmem:[#allocation7 + $0x1e4] ss:$16 sps:$4 sm:$0xff]   ;;  %v7326_v4 = vld [vmem:[#allocation7 + $0x1e0] ss:$16 sps:$4 sm:$0xff]   ;;  %v7350_v21 = vld [vmem:[#allocation7 + $0x168] ss:$16 sps:$4 sm:$0xff]  }
  0xaa   :  { %v7331_v5 = vld [vmem:[#allocation7 + $0x204] ss:$16 sps:$4 sm:$0xff]   ;;  %v7329_v8 = vld [vmem:[#allocation7 + $0x200] ss:$16 sps:$4 sm:$0xff]   ;;  %v7358_v23 = vld [vmem:[#allocation7 + $0x18c] ss:$16 sps:$4 sm:$0xff]  }
  0xab   :  { %1542 = vmatpush1.bf16.msra.mxu0 %v7270_v27  ;;  %v7337_v10 = vld [vmem:[#allocation7 + $0x224] ss:$16 sps:$4 sm:$0xff]   ;;  %v7335_v12 = vld [vmem:[#allocation7 + $0x220] ss:$16 sps:$4 sm:$0xff]   ;;  %v7356_v25 = vld [vmem:[#allocation7 + $0x188] ss:$16 sps:$4 sm:$0xff]  }
  0xac   :  { %1665 = vmatpush1.bf16.msra.mxu1 %v7271_v28  ;;  %1543 = vmatprep.subr.bf16.mxu0 %v7272_v29  ;;  %v7343_v14 = vld [vmem:[#allocation7 + $0x244] ss:$16 sps:$4 sm:$0xff]   ;;  %v7341_v16 = vld [vmem:[#allocation7 + $0x240] ss:$16 sps:$4 sm:$0xff]   ;;  %v7364_v27 = vld [vmem:[#allocation7 + $0x1ac] ss:$16 sps:$4 sm:$0xff]  }
  0xad   :  { %1666 = vmatprep.subr.bf16.mxu1 %v7274_v30  ;;  %v7349_v18 = vld [vmem:[#allocation7 + $0x264] ss:$16 sps:$4 sm:$0xff]   ;;  %v7347_v20 = vld [vmem:[#allocation7 + $0x260] ss:$16 sps:$4 sm:$0xff]   ;;  %v7362_v29 = vld [vmem:[#allocation7 + $0x1a8] ss:$16 sps:$4 sm:$0xff]  }
  0xae   :  { %v7355_v22 = vld [vmem:[#allocation7 + $0x284] ss:$16 sps:$4 sm:$0xff]   ;;  %v7353_v24 = vld [vmem:[#allocation7 + $0x280] ss:$16 sps:$4 sm:$0xff]   ;;  %v7394_v49 = vld [vmem:[#allocation7 + $0x24c] ss:$16 sps:$4 sm:$0xff]  }
  0xaf   :  { %1544 = vmatpush1.bf16.msra.mxu0 %v7276_v31  ;;  %v7361_v26 = vld [vmem:[#allocation7 + $0x2a4] ss:$16 sps:$4 sm:$0xff]   ;;  %v7359_v28 = vld [vmem:[#allocation7 + $0x2a0] ss:$16 sps:$4 sm:$0xff]   ;;  %v7370_v31 = vld [vmem:[#allocation7 + $0x1cc] ss:$16 sps:$4 sm:$0xff]  }
  0xb0   :  { %1667 = vmatpush1.bf16.msra.mxu1 %v7277_v32  ;;  %1545 = vmatprep.subr.bf16.mxu0 %v7278_v33  ;;  %v7367_v30 = vld [vmem:[#allocation7 + $0x2c4] ss:$16 sps:$4 sm:$0xff]   ;;  %v7365_v33 = vld [vmem:[#allocation7 + $0x2c0] ss:$16 sps:$4 sm:$0xff]   ;;  %s8611_s7 = smov [#allocation16]  }
  0xb1   :  { %1693 = vmatprep.subr.bf16.mxu1 %v7283_v34  ;;  %v8766_v32 = vld [vmem:[#allocation2 + $0x8] sm:$0xff]  ;;  %s6270_s28 = sshll.u32 %s8611_s7, 4  ;;  %s6271_s28 = int_to_ptr.vmem [resolvable:$true] %s6270_s28 }
  0xb2   :  { %v7368_v34 = vld [vmem:[#allocation7 + $0x1c8] ss:$16 sps:$4 sm:$0xff]   ;;  %s8562_s29 = scalar_lea.vmem %s6271_s28, 1024  ;;  %p8567_p9 = scmp.lt.s32.totalorder %s6271_s28, %s6271_s28 }
  0xb3   :  { %1685 = vmatmul.mubr.bf16.vlgmr.msra.gmra.mrb[0].mxu1 %v7280_v35  ;;  %1546 = vmatpush1.bf16.msra.mxu0 %v7284_v37  ;;  %v6286_v35 = vcombine.high %v8766_v32, %v8766_v32  ;;  %v7376_v37 = vld [vmem:[#allocation7 + $0x1ec] ss:$16 sps:$4 sm:$0xff]   ;;  %p8563_p8 = scmp.ne.s32.totalorder %s6271_s28, %s8562_s29  ;;  %p8568_p10 = scmp.lt.s32.totalorder %s8562_s29, %s8562_s29 }
  0xb4   :  { %1694 = vmatpush1.bf16.msra.mxu1 %v7281_v36  ;;  %1547 = vmatprep.subr.bf16.mxu0 %v7285_v38  ;;  %v7373_v36 = vld [vmem:[#allocation7 + $0x2e4] ss:$16 sps:$4 sm:$0xff]   ;;  %v7371_v38 = vld [vmem:[#allocation7 + $0x2e0] ss:$16 sps:$4 sm:$0xff]  }
  0xb5   :  { %1695 = vmatprep.subr.bf16.mxu1 %v7289_v39  ;;  %1725 = vmatprep.mubr.bf16.mxu1 %v6284_v52  ;;  %v7374_v39 = vld [vmem:[#allocation7 + $0x1e8] ss:$16 sps:$4 sm:$0xff]   ;;  %v7397_v52 = vld [vmem:[#allocation7 + $0x364] ss:$16 sps:$4 sm:$0xff]   ;;  %p8569_p11 = por %p8568_p10, %p8567_p9 }
  0xb7   :  { %1548 = vmatpush1.bf16.msra.mxu0 %v7290_v41  ;;  %v7382_v41 = vld [vmem:[#allocation7 + $0x20c] ss:$16 sps:$4 sm:$0xff]   ;;  %p8570_p12 = pnand %p8569_p11, %p8563_p8 }
  0xb8   :  { %1696 = vmatpush1.bf16.msra.mxu1 %v7287_v40  ;;  %1549 = vmatprep.subr.bf16.mxu0 %v7291_v42  ;;  %v7379_v40 = vld [vmem:[#allocation7 + $0x304] ss:$16 sps:$4 sm:$0xff]   ;;  %v7377_v42 = vld [vmem:[#allocation7 + $0x300] ss:$16 sps:$4 sm:$0xff]  }
  0xb9   :  { %1697 = vmatprep.subr.bf16.mxu1 %v7295_v43  ;;  %v7380_v43 = vld [vmem:[#allocation7 + $0x208] ss:$16 sps:$4 sm:$0xff]  }
  0xbb   :  { %1550 = vmatpush1.bf16.msra.mxu0 %v7296_v45  ;;  %v7388_v45 = vld [vmem:[#allocation7 + $0x22c] ss:$16 sps:$4 sm:$0xff]  }
  0xbc   :  { %1698 = vmatpush1.bf16.msra.mxu1 %v7293_v44  ;;  %1551 = vmatprep.subr.bf16.mxu0 %v7297_v46  ;;  %v7385_v44 = vld [vmem:[#allocation7 + $0x324] ss:$16 sps:$4 sm:$0xff]   ;;  %v7383_v46 = vld [vmem:[#allocation7 + $0x320] ss:$16 sps:$4 sm:$0xff]  }
  0xbd   :  { %1699 = vmatprep.subr.bf16.mxu1 %v7301_v47  ;;  %v7386_v47 = vld [vmem:[#allocation7 + $0x228] ss:$16 sps:$4 sm:$0xff]  }
  0xbf   :  { %1552 = vmatpush1.bf16.msra.mxu0 %v7302_v50  ;;  %v7389_v50 = vld [vmem:[#allocation7 + $0x340] ss:$16 sps:$4 sm:$0xff]  }
  0xc0   :  { %1700 = vmatpush1.bf16.msra.mxu1 %v7299_v48  ;;  %1553 = vmatprep.subr.bf16.mxu0 %v7303_v51  ;;  %v7391_v48 = vld [vmem:[#allocation7 + $0x344] ss:$16 sps:$4 sm:$0xff]   ;;  %v7392_v51 = vld [vmem:[#allocation7 + $0x248] ss:$16 sps:$4 sm:$0xff]  }
  0xc1   :  { %1701 = vmatprep.subr.bf16.mxu1 %v7307_v53  ;;  %v7400_v53 = vld [vmem:[#allocation7 + $0x26c] ss:$16 sps:$4 sm:$0xff]  }
  0xc3   :  { %1554 = vmatpush1.bf16.msra.mxu0 %v7308_v55  ;;  %v7398_v55 = vld [vmem:[#allocation7 + $0x268] ss:$16 sps:$4 sm:$0xff]  }
  0xc4   :  { %1702 = vmatpush1.bf16.msra.mxu1 %v7305_v54  ;;  %1555 = vmatprep.subr.bf16.mxu0 %v7309_v56  ;;  %v7395_v54 = vld [vmem:[#allocation7 + $0x360] ss:$16 sps:$4 sm:$0xff]   ;;  %v7403_v56 = vld [vmem:[#allocation7 + $0x384] ss:$16 sps:$4 sm:$0xff]  }
  0xc5   :  { %1703 = vmatprep.subr.bf16.mxu1 %v7313_v57  ;;  %v7406_v57 = vld [vmem:[#allocation7 + $0x28c] ss:$16 sps:$4 sm:$0xff]  }
  0xc7   :  { %1556 = vmatpush1.bf16.msra.mxu0 %v7314_v59  ;;  %v7404_v59 = vld [vmem:[#allocation7 + $0x288] ss:$16 sps:$4 sm:$0xff]  }
  0xc8   :  { %1704 = vmatpush1.bf16.msra.mxu1 %v7311_v58  ;;  %1557 = vmatprep.subr.bf16.mxu0 %v7315_v60  ;;  %v7401_v58 = vld [vmem:[#allocation7 + $0x380] ss:$16 sps:$4 sm:$0xff]   ;;  %v7409_v60 = vld [vmem:[#allocation7 + $0x3a4] ss:$16 sps:$4 sm:$0xff]  }
  0xc9   :  { %1705 = vmatprep.subr.bf16.mxu1 %v7319_v61  ;;  %v7412_v61 = vld [vmem:[#allocation7 + $0x2ac] ss:$16 sps:$4 sm:$0xff]  }
  0xcb   :  { %1558 = vmatpush1.bf16.msra.mxu0 %v7320_v63  ;;  %v7410_v63 = vld [vmem:[#allocation7 + $0x2a8] ss:$16 sps:$4 sm:$0xff]  }
  0xcc   :  { %1706 = vmatpush1.bf16.msra.mxu1 %v7317_v62  ;;  %1559 = vmatprep.subr.bf16.mxu0 %v7321_v1  ;;  %v7407_v62 = vld [vmem:[#allocation7 + $0x3a0] ss:$16 sps:$4 sm:$0xff]   ;;  %v7415_v1 = vld [vmem:[#allocation7 + $0x3c4] ss:$16 sps:$4 sm:$0xff]  }
  0xcd   :  { %1707 = vmatprep.subr.bf16.mxu1 %v7325_v2  ;;  %v7418_v2 = vld [vmem:[#allocation7 + $0x2cc] ss:$16 sps:$4 sm:$0xff]  }
  0xcf   :  { %1560 = vmatpush1.bf16.msra.mxu0 %v7326_v4  ;;  %v7416_v4 = vld [vmem:[#allocation7 + $0x2c8] ss:$16 sps:$4 sm:$0xff]  }
  0xd0   :  { %1708 = vmatpush1.bf16.msra.mxu1 %v7323_v3  ;;  %1570 = vmatprep.subr.bf16.mxu0 %v7331_v5  ;;  %v7413_v3 = vld [vmem:[#allocation7 + $0x3c0] ss:$16 sps:$4 sm:$0xff]   ;;  %v7421_v5 = vld [vmem:[#allocation7 + $0x3e4] ss:$16 sps:$4 sm:$0xff]  }
  0xd1   :  { %1709 = vmatprep.subr.bf16.mxu1 %v7334_v6  ;;  %v7424_v6 = vld [vmem:[#allocation7 + $0x2ec] ss:$16 sps:$4 sm:$0xff]  }
  0xd2   :  { %1562 = vmatmul.mubr.bf16.vlgmr.msra.gmra.mrb[0].mxu0 %v8763_v7 }
  0xd3   :  { %1571 = vmatpush1.bf16.msra.mxu0 %v7329_v8  ;;  %1602 = vmatprep.mubr.bf16.mxu0 %v6286_v35  ;;  %v7422_v8 = vld [vmem:[#allocation7 + $0x2e8] ss:$16 sps:$4 sm:$0xff]  }
  0xd4   :  { %1710 = vmatpush1.bf16.msra.mxu1 %v7332_v9  ;;  %1572 = vmatprep.subr.bf16.mxu0 %v7337_v10  ;;  %v7429_v9 = vld [vmem:[#allocation7 + $0x404] ss:$16 sps:$4 sm:$0xff]   ;;  %v7432_v10 = vld [vmem:[#allocation7 + $0x30c] ss:$16 sps:$4 sm:$0xff]  }
  0xd5   :  { %1711 = vmatprep.subr.bf16.mxu1 %v7340_v11  ;;  %v8773_v11 = vcombine.low %v8766_v32, %v8766_v32  ;;  %v7459_v32 = vld [vmem:[#allocation7 + $0x4a4] ss:$16 sps:$4 sm:$0xff]  }
  0xd7   :  { %1573 = vmatpush1.bf16.msra.mxu0 %v7335_v12  ;;  %v7427_v12 = vld [vmem:[#allocation7 + $0x400] ss:$16 sps:$4 sm:$0xff]  }
  0xd8   :  { %1712 = vmatpush1.bf16.msra.mxu1 %v7338_v13  ;;  %1574 = vmatprep.subr.bf16.mxu0 %v7343_v14  ;;  %v7430_v13 = vld [vmem:[#allocation7 + $0x308] ss:$16 sps:$4 sm:$0xff]   ;;  %v7435_v14 = vld [vmem:[#allocation7 + $0x424] ss:$16 sps:$4 sm:$0xff]  }
  0xd9   :  { %1713 = vmatprep.subr.bf16.mxu1 %v7346_v15  ;;  %v7438_v15 = vld [vmem:[#allocation7 + $0x32c] ss:$16 sps:$4 sm:$0xff]  }
  0xdb   :  { %1575 = vmatpush1.bf16.msra.mxu0 %v7341_v16  ;;  %v8775_v16 = vld [vmem:[#allocation2 + $0x10] sm:$0xff] }
  0xdc   :  { %1714 = vmatpush1.bf16.msra.mxu1 %v7344_v17  ;;  %1576 = vmatprep.subr.bf16.mxu0 %v7349_v18  ;;  %v8779_v17 = vcombine.high %v8775_v16, %v8775_v16  ;;  %v7433_v18 = vld [vmem:[#allocation7 + $0x420] ss:$16 sps:$4 sm:$0xff]  }
  0xdd   :  { %1715 = vmatprep.subr.bf16.mxu1 %v7352_v19  ;;  %v7436_v19 = vld [vmem:[#allocation7 + $0x328] ss:$16 sps:$4 sm:$0xff]  }
  0xdf   :  { %1577 = vmatpush1.bf16.msra.mxu0 %v7347_v20  ;;  %v7441_v20 = vld [vmem:[#allocation7 + $0x444] ss:$16 sps:$4 sm:$0xff]  }
  0xe0   :  { %1716 = vmatpush1.bf16.msra.mxu1 %v7350_v21  ;;  %1578 = vmatprep.subr.bf16.mxu0 %v7355_v22  ;;  %v7444_v21 = vld [vmem:[#allocation7 + $0x34c] ss:$16 sps:$4 sm:$0xff]   ;;  %v7439_v22 = vld [vmem:[#allocation7 + $0x440] ss:$16 sps:$4 sm:$0xff]  }
  0xe1   :  { %1717 = vmatprep.subr.bf16.mxu1 %v7358_v23  ;;  %v7442_v23 = vld [vmem:[#allocation7 + $0x348] ss:$16 sps:$4 sm:$0xff]  }
  0xe3   :  { %1579 = vmatpush1.bf16.msra.mxu0 %v7353_v24  ;;  %v7447_v24 = vld [vmem:[#allocation7 + $0x464] ss:$16 sps:$4 sm:$0xff]  }
  0xe4   :  { %1718 = vmatpush1.bf16.msra.mxu1 %v7356_v25  ;;  %1580 = vmatprep.subr.bf16.mxu0 %v7361_v26  ;;  %v7450_v25 = vld [vmem:[#allocation7 + $0x36c] ss:$16 sps:$4 sm:$0xff]   ;;  %v7445_v26 = vld [vmem:[#allocation7 + $0x460] ss:$16 sps:$4 sm:$0xff]  }
  0xe5   :  { %1719 = vmatprep.subr.bf16.mxu1 %v7364_v27  ;;  %v7448_v27 = vld [vmem:[#allocation7 + $0x368] ss:$16 sps:$4 sm:$0xff]  }
  0xe7   :  { %1581 = vmatpush1.bf16.msra.mxu0 %v7359_v28  ;;  %v7453_v28 = vld [vmem:[#allocation7 + $0x484] ss:$16 sps:$4 sm:$0xff]  }
  0xe8   :  { %1720 = vmatpush1.bf16.msra.mxu1 %v7362_v29  ;;  %1582 = vmatprep.subr.bf16.mxu0 %v7367_v30  ;;  %v7456_v29 = vld [vmem:[#allocation7 + $0x38c] ss:$16 sps:$4 sm:$0xff]   ;;  %v7451_v30 = vld [vmem:[#allocation7 + $0x480] ss:$16 sps:$4 sm:$0xff]  }
  0xe9   :  { %1721 = vmatprep.subr.bf16.mxu1 %v7370_v31  ;;  %v7454_v31 = vld [vmem:[#allocation7 + $0x388] ss:$16 sps:$4 sm:$0xff]  }
  0xeb   :  { %1583 = vmatpush1.bf16.msra.mxu0 %v7365_v33  ;;  %v7462_v33 = vld [vmem:[#allocation7 + $0x3ac] ss:$16 sps:$4 sm:$0xff]  }
  0xec   :  { %1722 = vmatpush1.bf16.msra.mxu1 %v7368_v34  ;;  %1584 = vmatprep.subr.bf16.mxu0 %v7373_v36  ;;  %v7457_v34 = vld [vmem:[#allocation7 + $0x4a0] ss:$16 sps:$4 sm:$0xff]   ;;  %v7465_v36 = vld [vmem:[#allocation7 + $0x4c4] ss:$16 sps:$4 sm:$0xff]  }
  0xed   :  { %1723 = vmatprep.subr.bf16.mxu1 %v7376_v37  ;;  %v7468_v37 = vld [vmem:[#allocation7 + $0x3cc] ss:$16 sps:$4 sm:$0xff]  }
  0xef   :  { %1585 = vmatpush1.bf16.msra.mxu0 %v7371_v38  ;;  %v7463_v38 = vld [vmem:[#allocation7 + $0x4c0] ss:$16 sps:$4 sm:$0xff]  }
  0xf0   :  { %1724 = vmatpush1.bf16.msra.mxu1 %v7374_v39  ;;  %1586 = vmatprep.subr.bf16.mxu0 %v7379_v40  ;;  %v7466_v39 = vld [vmem:[#allocation7 + $0x3c8] ss:$16 sps:$4 sm:$0xff]   ;;  %v7471_v40 = vld [vmem:[#allocation7 + $0x4e4] ss:$16 sps:$4 sm:$0xff]  }
  0xf1   :  { %1734 = vmatprep.subr.bf16.mxu1 %v7382_v41  ;;  %v7474_v41 = vld [vmem:[#allocation7 + $0x3ec] ss:$16 sps:$4 sm:$0xff]  }
  0xf3   :  { %1726 = vmatmul.mubr.bf16.vlgmr.msra.gmra.mrb[4].mxu1 %v8763_v7  ;;  %1587 = vmatpush1.bf16.msra.mxu0 %v7377_v42  ;;  %v7419_v7 = vld [vmem:[#allocation7 + $0x3e0] ss:$16 sps:$4 sm:$0xff]  }
  0xf4   :  { %1735 = vmatpush1.bf16.msra.mxu1 %v7380_v43  ;;  %1588 = vmatprep.subr.bf16.mxu0 %v7385_v44  ;;  %v7469_v42 = vld [vmem:[#allocation7 + $0x4e0] ss:$16 sps:$4 sm:$0xff]   ;;  %v7472_v43 = vld [vmem:[#allocation7 + $0x3e8] ss:$16 sps:$4 sm:$0xff]   ;;  %v7477_v44 = vld [vmem:[#allocation7 + $0x504] ss:$16 sps:$4 sm:$0xff]  }
  0xf5   :  { %1736 = vmatprep.subr.bf16.mxu1 %v7388_v45  ;;  %1766 = vmatprep.mubr.bf16.mxu1 %v6286_v35  ;;  %v7460_v35 = vld [vmem:[#allocation7 + $0x3a8] ss:$16 sps:$4 sm:$0xff]   ;;  %v7480_v45 = vld [vmem:[#allocation7 + $0x40c] ss:$16 sps:$4 sm:$0xff]  }
  0xf7   :  { %1589 = vmatpush1.bf16.msra.mxu0 %v7383_v46  ;;  %v7475_v46 = vld [vmem:[#allocation7 + $0x500] ss:$16 sps:$4 sm:$0xff]  }
  0xf8   :  { %1737 = vmatpush1.bf16.msra.mxu1 %v7386_v47  ;;  %1590 = vmatprep.subr.bf16.mxu0 %v7391_v48  ;;  %v7478_v47 = vld [vmem:[#allocation7 + $0x408] ss:$16 sps:$4 sm:$0xff]   ;;  %v7483_v48 = vld [vmem:[#allocation7 + $0x524] ss:$16 sps:$4 sm:$0xff]  }
  0xf9   :  { %1738 = vmatprep.subr.bf16.mxu1 %v7394_v49  ;;  %v7486_v49 = vld [vmem:[#allocation7 + $0x42c] ss:$16 sps:$4 sm:$0xff]  }
  0xfb   :  { %1591 = vmatpush1.bf16.msra.mxu0 %v7389_v50  ;;  %v7481_v50 = vld [vmem:[#allocation7 + $0x520] ss:$16 sps:$4 sm:$0xff]  }
  0xfc   :  { %1739 = vmatpush1.bf16.msra.mxu1 %v7392_v51  ;;  %1592 = vmatprep.subr.bf16.mxu0 %v7397_v52  ;;  %v7484_v51 = vld [vmem:[#allocation7 + $0x428] ss:$16 sps:$4 sm:$0xff]   ;;  %v7489_v52 = vld [vmem:[#allocation7 + $0x544] ss:$16 sps:$4 sm:$0xff]  }
  0xfd   :  { %1740 = vmatprep.subr.bf16.mxu1 %v7400_v53  ;;  %v7492_v53 = vld [vmem:[#allocation7 + $0x44c] ss:$16 sps:$4 sm:$0xff]  }
  0xff   :  { %1593 = vmatpush1.bf16.msra.mxu0 %v7395_v54  ;;  %v7487_v54 = vld [vmem:[#allocation7 + $0x540] ss:$16 sps:$4 sm:$0xff]  }
 0x100   :  { %1741 = vmatpush1.bf16.msra.mxu1 %v7398_v55  ;;  %1594 = vmatprep.subr.bf16.mxu0 %v7403_v56  ;;  %v7490_v55 = vld [vmem:[#allocation7 + $0x448] ss:$16 sps:$4 sm:$0xff]   ;;  %v7495_v56 = vld [vmem:[#allocation7 + $0x564] ss:$16 sps:$4 sm:$0xff]  }
 0x101   :  { %1742 = vmatprep.subr.bf16.mxu1 %v7406_v57  ;;  %v7498_v57 = vld [vmem:[#allocation7 + $0x46c] ss:$16 sps:$4 sm:$0xff]  }
 0x103   :  { %1595 = vmatpush1.bf16.msra.mxu0 %v7401_v58  ;;  %v7493_v58 = vld [vmem:[#allocation7 + $0x560] ss:$16 sps:$4 sm:$0xff]  }
 0x104   :  { %1743 = vmatpush1.bf16.msra.mxu1 %v7404_v59  ;;  %1596 = vmatprep.subr.bf16.mxu0 %v7409_v60  ;;  %v7496_v59 = vld [vmem:[#allocation7 + $0x468] ss:$16 sps:$4 sm:$0xff]   ;;  %v7501_v60 = vld [vmem:[#allocation7 + $0x584] ss:$16 sps:$4 sm:$0xff]  }
 0x105   :  { %1744 = vmatprep.subr.bf16.mxu1 %v7412_v61  ;;  %v7504_v61 = vld [vmem:[#allocation7 + $0x48c] ss:$16 sps:$4 sm:$0xff]  }
 0x107   :  { %1597 = vmatpush1.bf16.msra.mxu0 %v7407_v62  ;;  %v7499_v62 = vld [vmem:[#allocation7 + $0x580] ss:$16 sps:$4 sm:$0xff]  }
 0x108   :  { %1745 = vmatpush1.bf16.msra.mxu1 %v7410_v63  ;;  %1598 = vmatprep.subr.bf16.mxu0 %v7415_v1  ;;  %v7502_v63 = vld [vmem:[#allocation7 + $0x488] ss:$16 sps:$4 sm:$0xff]   ;;  %v7507_v1 = vld [vmem:[#allocation7 + $0x5a4] ss:$16 sps:$4 sm:$0xff]  }
 0x109   :  { %1746 = vmatprep.subr.bf16.mxu1 %v7418_v2  ;;  %v7510_v2 = vld [vmem:[#allocation7 + $0x4ac] ss:$16 sps:$4 sm:$0xff]  }
 0x10b   :  { %1599 = vmatpush1.bf16.msra.mxu0 %v7413_v3  ;;  %v7505_v3 = vld [vmem:[#allocation7 + $0x5a0] ss:$16 sps:$4 sm:$0xff]  }
 0x10c   :  { %1747 = vmatpush1.bf16.msra.mxu1 %v7416_v4  ;;  %1600 = vmatprep.subr.bf16.mxu0 %v7421_v5  ;;  %v7508_v4 = vld [vmem:[#allocation7 + $0x4a8] ss:$16 sps:$4 sm:$0xff]   ;;  %v7513_v5 = vld [vmem:[#allocation7 + $0x5c4] ss:$16 sps:$4 sm:$0xff]  }
 0x10d   :  { %1748 = vmatprep.subr.bf16.mxu1 %v7424_v6  ;;  %v7516_v6 = vld [vmem:[#allocation7 + $0x4cc] ss:$16 sps:$4 sm:$0xff]  }
 0x10f   :  { %1601 = vmatpush1.bf16.msra.mxu0 %v7419_v7  ;;  %v7511_v7 = vld [vmem:[#allocation7 + $0x5c0] ss:$16 sps:$4 sm:$0xff]  }
 0x110   :  { %1749 = vmatpush1.bf16.msra.mxu1 %v7422_v8  ;;  %1611 = vmatprep.subr.bf16.mxu0 %v7429_v9  ;;  %v7514_v8 = vld [vmem:[#allocation7 + $0x4c8] ss:$16 sps:$4 sm:$0xff]   ;;  %v7519_v9 = vld [vmem:[#allocation7 + $0x5e4] ss:$16 sps:$4 sm:$0xff]  }
 0x111   :  { %1750 = vmatprep.subr.bf16.mxu1 %v7432_v10  ;;  %v7522_v10 = vld [vmem:[#allocation7 + $0x4ec] ss:$16 sps:$4 sm:$0xff]  }
 0x112   :  { %1603 = vmatmul.mubr.bf16.vlgmr.msra.gmra.mrb[0].mxu0 %v8773_v11 }
 0x113   :  { %1612 = vmatpush1.bf16.msra.mxu0 %v7427_v12  ;;  %1643 = vmatprep.mubr.bf16.mxu0 %v8779_v17  ;;  %v7520_v12 = vld [vmem:[#allocation7 + $0x4e8] ss:$16 sps:$4 sm:$0xff]  }
 0x114   :  { %1751 = vmatpush1.bf16.msra.mxu1 %v7430_v13  ;;  %1613 = vmatprep.subr.bf16.mxu0 %v7435_v14  ;;  %v7527_v13 = vld [vmem:[#allocation7 + $0x50c] ss:$16 sps:$4 sm:$0xff]   ;;  %v7575_v14 = vld [vmem:[#allocation8 + $0x4] ss:$16 sps:$4 sm:$0xff]  }
 0x115   :  { %1752 = vmatprep.subr.bf16.mxu1 %v7438_v15  ;;  %v7525_v15 = vld [vmem:[#allocation7 + $0x508] ss:$16 sps:$4 sm:$0xff]  }
 0x117   :  { %1614 = vmatpush1.bf16.msra.mxu0 %v7433_v18  ;;  %v8787_v18 = vcombine.low %v8775_v16, %v8775_v16  ;;  %v7536_v16 = vld [vmem:[#allocation7 + $0x56c] ss:$16 sps:$4 sm:$0xff]  }
 0x118   :  { %1753 = vmatpush1.bf16.msra.mxu1 %v7436_v19  ;;  %1615 = vmatprep.subr.bf16.mxu0 %v7441_v20  ;;  %v7530_v19 = vld [vmem:[#allocation7 + $0x52c] ss:$16 sps:$4 sm:$0xff]   ;;  %v7581_v20 = vld [vmem:[#allocation8 + $0x24] ss:$16 sps:$4 sm:$0xff]  }
 0x119   :  { %1754 = vmatprep.subr.bf16.mxu1 %v7444_v21  ;;  %v7528_v21 = vld [vmem:[#allocation7 + $0x528] ss:$16 sps:$4 sm:$0xff]  }
 0x11b   :  { %1616 = vmatpush1.bf16.msra.mxu0 %v7439_v22  ;;  %v7579_v22 = vld [vmem:[#allocation8 + $0x20] ss:$16 sps:$4 sm:$0xff]  }
 0x11c   :  { %1755 = vmatpush1.bf16.msra.mxu1 %v7442_v23  ;;  %1617 = vmatprep.subr.bf16.mxu0 %v7447_v24  ;;  %v7533_v23 = vld [vmem:[#allocation7 + $0x54c] ss:$16 sps:$4 sm:$0xff]   ;;  %v7587_v24 = vld [vmem:[#allocation8 + $0x44] ss:$16 sps:$4 sm:$0xff]  }
 0x11d   :  { %1756 = vmatprep.subr.bf16.mxu1 %v7450_v25  ;;  %v7531_v25 = vld [vmem:[#allocation7 + $0x548] ss:$16 sps:$4 sm:$0xff]  }
 0x11f   :  { %1618 = vmatpush1.bf16.msra.mxu0 %v7445_v26  ;;  %v7585_v26 = vld [vmem:[#allocation8 + $0x40] ss:$16 sps:$4 sm:$0xff]  }
 0x120   :  { %1757 = vmatpush1.bf16.msra.mxu1 %v7448_v27  ;;  %1619 = vmatprep.subr.bf16.mxu0 %v7453_v28  ;;  %v7593_v27 = vld [vmem:[#allocation8 + $0x64] ss:$16 sps:$4 sm:$0xff]   ;;  %v7534_v28 = vld [vmem:[#allocation7 + $0x568] ss:$16 sps:$4 sm:$0xff]  }
 0x121   :  { %1758 = vmatprep.subr.bf16.mxu1 %v7456_v29  ;;  %v7591_v29 = vld [vmem:[#allocation8 + $0x60] ss:$16 sps:$4 sm:$0xff]  }
 0x123   :  { %1620 = vmatpush1.bf16.msra.mxu0 %v7451_v30  ;;  %v7539_v30 = vld [vmem:[#allocation7 + $0x58c] ss:$16 sps:$4 sm:$0xff]  }
 0x124   :  { %1759 = vmatpush1.bf16.msra.mxu1 %v7454_v31  ;;  %1621 = vmatprep.subr.bf16.mxu0 %v7459_v32  ;;  %v7599_v31 = vld [vmem:[#allocation8 + $0x84] ss:$16 sps:$4 sm:$0xff]   ;;  %v7537_v32 = vld [vmem:[#allocation7 + $0x588] ss:$16 sps:$4 sm:$0xff]  }
 0x125   :  { %1760 = vmatprep.subr.bf16.mxu1 %v7462_v33  ;;  %v7597_v33 = vld [vmem:[#allocation8 + $0x80] ss:$16 sps:$4 sm:$0xff]  }
 0x127   :  { %1622 = vmatpush1.bf16.msra.mxu0 %v7457_v34  ;;  %v7542_v34 = vld [vmem:[#allocation7 + $0x5ac] ss:$16 sps:$4 sm:$0xff]  }
 0x128   :  { %1761 = vmatpush1.bf16.msra.mxu1 %v7460_v35  ;;  %1623 = vmatprep.subr.bf16.mxu0 %v7465_v36  ;;  %v7605_v35 = vld [vmem:[#allocation8 + $0xa4] ss:$16 sps:$4 sm:$0xff]   ;;  %v7540_v36 = vld [vmem:[#allocation7 + $0x5a8] ss:$16 sps:$4 sm:$0xff]  }
 0x129   :  { %1762 = vmatprep.subr.bf16.mxu1 %v7468_v37  ;;  %v7603_v37 = vld [vmem:[#allocation8 + $0xa0] ss:$16 sps:$4 sm:$0xff]  }
 0x12b   :  { %1624 = vmatpush1.bf16.msra.mxu0 %v7463_v38  ;;  %v7545_v38 = vld [vmem:[#allocation7 + $0x5cc] ss:$16 sps:$4 sm:$0xff]  }
 0x12c   :  { %1763 = vmatpush1.bf16.msra.mxu1 %v7466_v39  ;;  %1625 = vmatprep.subr.bf16.mxu0 %v7471_v40  ;;  %v7611_v39 = vld [vmem:[#allocation8 + $0xc4] ss:$16 sps:$4 sm:$0xff]   ;;  %v7543_v40 = vld [vmem:[#allocation7 + $0x5c8] ss:$16 sps:$4 sm:$0xff]  }
 0x12d   :  { %1764 = vmatprep.subr.bf16.mxu1 %v7474_v41  ;;  %v7609_v41 = vld [vmem:[#allocation8 + $0xc0] ss:$16 sps:$4 sm:$0xff]  }
 0x12f   :  { %1626 = vmatpush1.bf16.msra.mxu0 %v7469_v42  ;;  %v7548_v42 = vld [vmem:[#allocation7 + $0x5ec] ss:$16 sps:$4 sm:$0xff]  }
 0x130   :  { %1765 = vmatpush1.bf16.msra.mxu1 %v7472_v43  ;;  %1627 = vmatprep.subr.bf16.mxu0 %v7477_v44  ;;  %v7617_v43 = vld [vmem:[#allocation8 + $0xe4] ss:$16 sps:$4 sm:$0xff]   ;;  %v7546_v44 = vld [vmem:[#allocation7 + $0x5e8] ss:$16 sps:$4 sm:$0xff]  }
 0x131   :  { %1775 = vmatprep.subr.bf16.mxu1 %v7480_v45  ;;  %v7615_v45 = vld [vmem:[#allocation8 + $0xe0] ss:$16 sps:$4 sm:$0xff]  }
 0x133   :  { %1767 = vmatmul.mubr.bf16.vlgmr.msra.gmra.mrb[4].mxu1 %v8773_v11  ;;  %1628 = vmatpush1.bf16.msra.mxu0 %v7475_v46  ;;  %v7517_v11 = vld [vmem:[#allocation7 + $0x5e0] ss:$16 sps:$4 sm:$0xff]   ;;  %v7551_v46 = vld [vmem:[#allocation7 + $0x60c] ss:$16 sps:$4 sm:$0xff]  }
 0x134   :  { %1776 = vmatpush1.bf16.msra.mxu1 %v7478_v47  ;;  %1629 = vmatprep.subr.bf16.mxu0 %v7483_v48  ;;  %v7623_v47 = vld [vmem:[#allocation8 + $0x104] ss:$16 sps:$4 sm:$0xff]   ;;  %v7549_v48 = vld [vmem:[#allocation7 + $0x608] ss:$16 sps:$4 sm:$0xff]  }
 0x135   :  { %1777 = vmatprep.subr.bf16.mxu1 %v7486_v49  ;;  %1807 = vmatprep.mubr.bf16.mxu1 %v8779_v17  ;;  %v7573_v17 = vld [vmem:[#allocation8] ss:$16 sps:$4 sm:$0xff]   ;;  %v7554_v49 = vld [vmem:[#allocation7 + $0x62c] ss:$16 sps:$4 sm:$0xff]  }
 0x137   :  { %1630 = vmatpush1.bf16.msra.mxu0 %v7481_v50  ;;  %v7621_v50 = vld [vmem:[#allocation8 + $0x100] ss:$16 sps:$4 sm:$0xff]  }
 0x138   :  { %1778 = vmatpush1.bf16.msra.mxu1 %v7484_v51  ;;  %1631 = vmatprep.subr.bf16.mxu0 %v7489_v52  ;;  %v7629_v51 = vld [vmem:[#allocation8 + $0x124] ss:$16 sps:$4 sm:$0xff]   ;;  %v7552_v52 = vld [vmem:[#allocation7 + $0x628] ss:$16 sps:$4 sm:$0xff]  }
 0x139   :  { %1779 = vmatprep.subr.bf16.mxu1 %v7492_v53  ;;  %v7557_v53 = vld [vmem:[#allocation7 + $0x64c] ss:$16 sps:$4 sm:$0xff]  }
 0x13b   :  { %1632 = vmatpush1.bf16.msra.mxu0 %v7487_v54  ;;  %v7627_v54 = vld [vmem:[#allocation8 + $0x120] ss:$16 sps:$4 sm:$0xff]  }
 0x13c   :  { %1780 = vmatpush1.bf16.msra.mxu1 %v7490_v55  ;;  %1633 = vmatprep.subr.bf16.mxu0 %v7495_v56  ;;  %v7635_v55 = vld [vmem:[#allocation8 + $0x144] ss:$16 sps:$4 sm:$0xff]   ;;  %v7555_v56 = vld [vmem:[#allocation7 + $0x648] ss:$16 sps:$4 sm:$0xff]  }
 0x13d   :  { %1781 = vmatprep.subr.bf16.mxu1 %v7498_v57  ;;  %v7560_v57 = vld [vmem:[#allocation7 + $0x66c] ss:$16 sps:$4 sm:$0xff]  }
 0x13f   :  { %1634 = vmatpush1.bf16.msra.mxu0 %v7493_v58  ;;  %v7633_v58 = vld [vmem:[#allocation8 + $0x140] ss:$16 sps:$4 sm:$0xff]  }
 0x140   :  { %1782 = vmatpush1.bf16.msra.mxu1 %v7496_v59  ;;  %1635 = vmatprep.subr.bf16.mxu0 %v7501_v60  ;;  %v7641_v59 = vld [vmem:[#allocation8 + $0x164] ss:$16 sps:$4 sm:$0xff]   ;;  %v7558_v60 = vld [vmem:[#allocation7 + $0x668] ss:$16 sps:$4 sm:$0xff]  }
 0x141   :  { %1783 = vmatprep.subr.bf16.mxu1 %v7504_v61  ;;  %v7563_v61 = vld [vmem:[#allocation7 + $0x68c] ss:$16 sps:$4 sm:$0xff]  }
 0x143   :  { %1636 = vmatpush1.bf16.msra.mxu0 %v7499_v62  ;;  %v7639_v62 = vld [vmem:[#allocation8 + $0x160] ss:$16 sps:$4 sm:$0xff]  }
 0x144   :  { %1784 = vmatpush1.bf16.msra.mxu1 %v7502_v63  ;;  %1637 = vmatprep.subr.bf16.mxu0 %v7507_v1  ;;  %v7647_v63 = vld [vmem:[#allocation8 + $0x184] ss:$16 sps:$4 sm:$0xff]   ;;  %v7561_v1 = vld [vmem:[#allocation7 + $0x688] ss:$16 sps:$4 sm:$0xff]  }
 0x145   :  { %1785 = vmatprep.subr.bf16.mxu1 %v7510_v2  ;;  %v7566_v2 = vld [vmem:[#allocation7 + $0x6ac] ss:$16 sps:$4 sm:$0xff]  }
 0x147   :  { %1638 = vmatpush1.bf16.msra.mxu0 %v7505_v3  ;;  %v7645_v3 = vld [vmem:[#allocation8 + $0x180] ss:$16 sps:$4 sm:$0xff]  }
 0x148   :  { %1786 = vmatpush1.bf16.msra.mxu1 %v7508_v4  ;;  %1639 = vmatprep.subr.bf16.mxu0 %v7513_v5  ;;  %v7653_v4 = vld [vmem:[#allocation8 + $0x1a4] ss:$16 sps:$4 sm:$0xff]   ;;  %v7564_v5 = vld [vmem:[#allocation7 + $0x6a8] ss:$16 sps:$4 sm:$0xff]  }
 0x149   :  { %1787 = vmatprep.subr.bf16.mxu1 %v7516_v6  ;;  %v7569_v6 = vld [vmem:[#allocation7 + $0x6cc] ss:$16 sps:$4 sm:$0xff]  }
 0x14b   :  { %1640 = vmatpush1.bf16.msra.mxu0 %v7511_v7  ;;  %v7651_v7 = vld [vmem:[#allocation8 + $0x1a0] ss:$16 sps:$4 sm:$0xff]  }
 0x14c   :  { %1788 = vmatpush1.bf16.msra.mxu1 %v7514_v8  ;;  %1641 = vmatprep.subr.bf16.mxu0 %v7519_v9  ;;  %v7567_v9 = vld [vmem:[#allocation7 + $0x6c8] ss:$16 sps:$4 sm:$0xff]  }
 0x14d   :  { %1789 = vmatprep.subr.bf16.mxu1 %v7522_v10 }
 0x14f   :  { %1642 = vmatpush1.bf16.msra.mxu0 %v7517_v11  ;;  %v7572_v11 = vld [vmem:[#allocation7 + $0x6ec] ss:$16 sps:$4 sm:$0xff]  }
 0x150   :  { %1790 = vmatpush1.bf16.msra.mxu1 %v7520_v12  ;;  %2656 = vmatprep.subr.bf16.mxu0 %v7575_v14  ;;  %v7570_v14 = vld [vmem:[#allocation7 + $0x6e8] ss:$16 sps:$4 sm:$0xff]  }
 0x151   :  { %1791 = vmatprep.subr.bf16.mxu1 %v7527_v13 }
 0x152   :  { %1644 = vmatmul.mubr.bf16.vlgmr.msra.gmra.mrb[0].mxu0 %v8787_v18 }
 0x153   :  { %2657 = vmatpush1.bf16.msra.mxu0 %v7573_v17  ;;  %v7576_v17 = vld [vmem:[#allocation8 + $0x8] ss:$16 sps:$4 sm:$0xff]  }
 0x154   :  { %1792 = vmatpush1.bf16.msra.mxu1 %v7525_v15  ;;  %2658 = vmatprep.subr.bf16.mxu0 %v7581_v20  ;;  %v7578_v15 = vld [vmem:[#allocation8 + $0xc] ss:$16 sps:$4 sm:$0xff]   ;;  %v8385_v20 = vld [vmem:[#allocation2 + $0x18] ss:$0 sps:$4 sm:$0xff]  }
 0x155   :  { %1793 = vmatprep.subr.bf16.mxu1 %v7530_v19  ;;  %v7582_v19 = vld [vmem:[#allocation8 + $0x28] ss:$16 sps:$4 sm:$0xff]  }
 0x157   :  { %2659 = vmatpush1.bf16.msra.mxu0 %v7579_v22  ;;  %v7588_v22 = vld [vmem:[#allocation8 + $0x48] ss:$16 sps:$4 sm:$0xff]  }
 0x158   :  { %1794 = vmatpush1.bf16.msra.mxu1 %v7528_v21  ;;  %2660 = vmatprep.subr.bf16.mxu0 %v7587_v24  ;;  %v7590_v21 = vld [vmem:[#allocation8 + $0x4c] ss:$16 sps:$4 sm:$0xff]   ;;  %v7594_v24 = vld [vmem:[#allocation8 + $0x68] ss:$16 sps:$4 sm:$0xff]  }
 0x159   :  { %1795 = vmatprep.subr.bf16.mxu1 %v7533_v23  ;;  %v7596_v23 = vld [vmem:[#allocation8 + $0x6c] ss:$16 sps:$4 sm:$0xff]  }
 0x15b   :  { %2661 = vmatpush1.bf16.msra.mxu0 %v7585_v26  ;;  %v7600_v26 = vld [vmem:[#allocation8 + $0x88] ss:$16 sps:$4 sm:$0xff]  }
 0x15c   :  { %1796 = vmatpush1.bf16.msra.mxu1 %v7531_v25  ;;  %2662 = vmatprep.subr.bf16.mxu0 %v7593_v27  ;;  %v7602_v25 = vld [vmem:[#allocation8 + $0x8c] ss:$16 sps:$4 sm:$0xff]   ;;  %v7606_v27 = vld [vmem:[#allocation8 + $0xa8] ss:$16 sps:$4 sm:$0xff]  }
 0x15d   :  { %1797 = vmatprep.subr.bf16.mxu1 %v7536_v16  ;;  %v7608_v16 = vld [vmem:[#allocation8 + $0xac] ss:$16 sps:$4 sm:$0xff]  }
 0x15f   :  { %2663 = vmatpush1.bf16.msra.mxu0 %v7591_v29  ;;  %v7612_v29 = vld [vmem:[#allocation8 + $0xc8] ss:$16 sps:$4 sm:$0xff]  }
 0x160   :  { %1798 = vmatpush1.bf16.msra.mxu1 %v7534_v28  ;;  %2664 = vmatprep.subr.bf16.mxu0 %v7599_v31  ;;  %v7614_v28 = vld [vmem:[#allocation8 + $0xcc] ss:$16 sps:$4 sm:$0xff]  }
 0x161   :  { %1799 = vmatprep.subr.bf16.mxu1 %v7539_v30  ;;  %v7659_v30 = vld [vmem:[#allocation8 + $0x1c4] ss:$16 sps:$4 sm:$0xff]   ;;  %v7620_v31 = vld [vmem:[#allocation8 + $0xec] ss:$16 sps:$4 sm:$0xff]  }
 0x163   :  { %2665 = vmatpush1.bf16.msra.mxu0 %v7597_v33  ;;  %v7618_v33 = vld [vmem:[#allocation8 + $0xe8] ss:$16 sps:$4 sm:$0xff]  }
 0x164   :  { %1800 = vmatpush1.bf16.msra.mxu1 %v7537_v32  ;;  %2666 = vmatprep.subr.bf16.mxu0 %v7605_v35  ;;  %v7657_v32 = vld [vmem:[#allocation8 + $0x1c0] ss:$16 sps:$4 sm:$0xff]   ;;  %v7626_v35 = vld [vmem:[#allocation8 + $0x10c] ss:$16 sps:$4 sm:$0xff]  }
 0x165   :  { %1801 = vmatprep.subr.bf16.mxu1 %v7542_v34  ;;  %v7665_v34 = vld [vmem:[#allocation8 + $0x1e4] ss:$16 sps:$4 sm:$0xff]  }
 0x167   :  { %2667 = vmatpush1.bf16.msra.mxu0 %v7603_v37  ;;  %v7671_v37 = vld [vmem:[#allocation8 + $0x204] ss:$16 sps:$4 sm:$0xff]  }
 0x168   :  { %1802 = vmatpush1.bf16.msra.mxu1 %v7540_v36  ;;  %2668 = vmatprep.subr.bf16.mxu0 %v7611_v39  ;;  %v7663_v36 = vld [vmem:[#allocation8 + $0x1e0] ss:$16 sps:$4 sm:$0xff]   ;;  %v7632_v39 = vld [vmem:[#allocation8 + $0x12c] ss:$16 sps:$4 sm:$0xff]  }
 0x169   :  { %1803 = vmatprep.subr.bf16.mxu1 %v7545_v38  ;;  %v7624_v38 = vld [vmem:[#allocation8 + $0x108] ss:$16 sps:$4 sm:$0xff]  }
 0x16b   :  { %2669 = vmatpush1.bf16.msra.mxu0 %v7609_v41  ;;  %v7638_v41 = vld [vmem:[#allocation8 + $0x14c] ss:$16 sps:$4 sm:$0xff]  }
 0x16c   :  { %1804 = vmatpush1.bf16.msra.mxu1 %v7543_v40  ;;  %2670 = vmatprep.subr.bf16.mxu0 %v7617_v43  ;;  %v7630_v40 = vld [vmem:[#allocation8 + $0x128] ss:$16 sps:$4 sm:$0xff]   ;;  %v7644_v43 = vld [vmem:[#allocation8 + $0x16c] ss:$16 sps:$4 sm:$0xff]  }
 0x16d   :  { %1805 = vmatprep.subr.bf16.mxu1 %v7548_v42  ;;  %v7636_v42 = vld [vmem:[#allocation8 + $0x148] ss:$16 sps:$4 sm:$0xff]  }
 0x16f   :  { %2671 = vmatpush1.bf16.msra.mxu0 %v7615_v45  ;;  %v7650_v45 = vld [vmem:[#allocation8 + $0x18c] ss:$16 sps:$4 sm:$0xff]  }
 0x170   :  { %1806 = vmatpush1.bf16.msra.mxu1 %v7546_v44  ;;  %2672 = vmatprep.subr.bf16.mxu0 %v7623_v47  ;;  %v7642_v44 = vld [vmem:[#allocation8 + $0x168] ss:$16 sps:$4 sm:$0xff]   ;;  %v7656_v47 = vld [vmem:[#allocation8 + $0x1ac] ss:$16 sps:$4 sm:$0xff]  }
 0x171   :  { %1816 = vmatprep.subr.bf16.mxu1 %v7551_v46  ;;  %v7648_v46 = vld [vmem:[#allocation8 + $0x188] ss:$16 sps:$4 sm:$0xff]  }
 0x173   :  { %1808 = vmatmul.mubr.bf16.vlgmr.msra.gmra.mrb[4].mxu1 %v8787_v18  ;;  %2673 = vmatpush1.bf16.msra.mxu0 %v7621_v50  ;;  %v7584_v18 = vld [vmem:[#allocation8 + $0x2c] ss:$16 sps:$4 sm:$0xff]   ;;  %v7660_v50 = vld [vmem:[#allocation8 + $0x1c8] ss:$16 sps:$4 sm:$0xff]  }
 0x174   :  { %1817 = vmatpush1.bf16.msra.mxu1 %v7549_v48  ;;  %1848 = vmatprep.mubr.bf16.mxu1 %v8610_v0  ;;  %v7654_v48 = vld [vmem:[#allocation8 + $0x1a8] ss:$16 sps:$4 sm:$0xff]  }
 0x175   :  { %1818 = vmatprep.subr.bf16.mxu1 %v7554_v49  ;;  %2674 = vmatprep.subr.bf16.mxu0 %v7629_v51  ;;  %v7662_v49 = vld [vmem:[#allocation8 + $0x1cc] ss:$16 sps:$4 sm:$0xff]  }
 0x176   :  { %v7668_v51 = vld [vmem:[#allocation8 + $0x1ec] ss:$16 sps:$4 sm:$0xff]  }
 0x177   :  { %2675 = vmatpush1.bf16.msra.mxu0 %v7627_v54  ;;  %v364_v54 = vlaneseq }
 0x178   :  { %1819 = vmatpush1.bf16.msra.mxu1 %v7552_v52  ;;  %2676 = vmatprep.subr.bf16.mxu0 %v7635_v55  ;;  %v7666_v52 = vld [vmem:[#allocation8 + $0x1e8] ss:$16 sps:$4 sm:$0xff]  }
 0x179   :  { %1820 = vmatprep.subr.bf16.mxu1 %v7557_v53  ;;  %v7674_v53 = vld [vmem:[#allocation8 + $0x20c] ss:$16 sps:$4 sm:$0xff]   ;;  %v8797_v55 = vshrl.u32 %v364_v54, 7 }
 0x17b   :  { %2677 = vmatpush1.bf16.msra.mxu0 %v7633_v58  ;;  %v8805_v58 = vsub.s32 1, %v8797_v55 }
 0x17c   :  { %1821 = vmatpush1.bf16.msra.mxu1 %v7555_v56  ;;  %2678 = vmatprep.subr.bf16.mxu0 %v7641_v59  ;;  %v8799_v56 = vld [vmem:[#allocation14] ss:$8 sm:$0xf] }
 0x17d   :  { %1822 = vmatprep.subr.bf16.mxu1 %v7560_v57  ;;  %v8802_v57 = vsub.s32 0, %v8797_v55 }
 0x17f   :  { %2679 = vmatpush1.bf16.msra.mxu0 %v7639_v62  ;;  %v367_v59 = vrot.slane %v8799_v56, %v8802_v57 }
 0x180   :  { %1823 = vmatpush1.bf16.msra.mxu1 %v7558_v60  ;;  %2680 = vmatprep.subr.bf16.mxu0 %v7647_v63  ;;  %v371_v60 = vrot.slane %v8799_v56, %v8805_v58 }
 0x181   :  { %1824 = vmatprep.subr.bf16.mxu1 %v7563_v61 }
 0x183   :  { %2681 = vmatpush1.bf16.msra.mxu0 %v7645_v3 }
 0x184   :  { %1825 = vmatpush1.bf16.msra.mxu1 %v7561_v1  ;;  %2682 = vmatprep.subr.bf16.mxu0 %v7653_v4 }
 0x185   :  { %1826 = vmatprep.subr.bf16.mxu1 %v7566_v2 }
 0x186   :  { %v8792_v8 = vpop.f32.mrb[0].mxu1 }
 0x187   :  { %v8794_v10 = vpop.f32.mrb[1].mxu1  ;;  %2683 = vmatpush1.bf16.msra.mxu0 %v7651_v7 }
 0x188   :  { %v1690_v12 = vpop.f32.mrb[2].mxu1  ;;  %1827 = vmatpush1.bf16.msra.mxu1 %v7564_v5  ;;  %2684 = vmatprep.subr.bf16.mxu0 %v7659_v30  ;;  %v7699_v30 = vld [vmem:[#allocation8 + $0x2a0] ss:$16 sps:$4 sm:$0xff]  }
 0x189   :  { %v1691_v13 = vpop.f32.mrb[3].mxu1  ;;  %1828 = vmatprep.subr.bf16.mxu1 %v7569_v6  ;;  %v7672_v12 = vld [vmem:[#allocation8 + $0x208] ss:$16 sps:$4 sm:$0xff]  }
 0x18b   :  { %2685 = vmatpush1.bf16.msra.mxu0 %v7657_v32  ;;  %v7707_v32 = vld [vmem:[#allocation8 + $0x2c4] ss:$16 sps:$4 sm:$0xff]  }
 0x18c   :  { %1829 = vmatpush1.bf16.msra.mxu1 %v7567_v9  ;;  %2686 = vmatprep.subr.bf16.mxu0 %v7665_v34  ;;  %v7705_v34 = vld [vmem:[#allocation8 + $0x2c0] ss:$16 sps:$4 sm:$0xff]  }
 0x18d   :  { %1830 = vmatprep.subr.bf16.mxu1 %v7572_v11  ;;  %v7669_v11 = vld [vmem:[#allocation8 + $0x200] ss:$16 sps:$4 sm:$0xff]  }
 0x18f   :  { %2687 = vmatpush1.bf16.msra.mxu0 %v7663_v36  ;;  %v7713_v36 = vld [vmem:[#allocation8 + $0x2e4] ss:$16 sps:$4 sm:$0xff]  }
 0x190   :  { %1831 = vmatpush1.bf16.msra.mxu1 %v7570_v14  ;;  %2697 = vmatprep.subr.bf16.mxu0 %v7671_v37  ;;  %v7677_v14 = vld [vmem:[#allocation8 + $0x224] ss:$16 sps:$4 sm:$0xff]   ;;  %v7716_v37 = vld [vmem:[#allocation8 + $0x2ec] ss:$16 sps:$4 sm:$0xff]  }
 0x191   :  { %2738 = vmatprep.subr.bf16.mxu1 %v7578_v15  ;;  %v7680_v15 = vld [vmem:[#allocation8 + $0x22c] ss:$16 sps:$4 sm:$0xff]  }
 0x193   :  { %1849 = vmatmul.mubr.bf16.vlgmr.msra.gmra.mrb[4].mxu1 %v8385_v20  ;;  %v7684_v20 = vld [vmem:[#allocation8 + $0x248] ss:$16 sps:$4 sm:$0xff]  }
 0x194   :  { %2739 = vmatpush1.bf16.msra.mxu1 %v7576_v17  ;;  %v7675_v17 = vld [vmem:[#allocation8 + $0x220] ss:$16 sps:$4 sm:$0xff]  }
 0x195   :  { %2740 = vmatprep.subr.bf16.mxu1 %v7584_v18  ;;  %v7678_v18 = vld [vmem:[#allocation8 + $0x228] ss:$16 sps:$4 sm:$0xff]  }
 0x198   :  { %2741 = vmatpush1.bf16.msra.mxu1 %v7582_v19  ;;  %v7681_v19 = vld [vmem:[#allocation8 + $0x240] ss:$16 sps:$4 sm:$0xff]  }
 0x199   :  { %2742 = vmatprep.subr.bf16.mxu1 %v7590_v21  ;;  %v7689_v21 = vld [vmem:[#allocation8 + $0x264] ss:$16 sps:$4 sm:$0xff]  }
 0x19c   :  { %2743 = vmatpush1.bf16.msra.mxu1 %v7588_v22  ;;  %v7692_v22 = vld [vmem:[#allocation8 + $0x26c] ss:$16 sps:$4 sm:$0xff]  }
 0x19d   :  { %2744 = vmatprep.subr.bf16.mxu1 %v7596_v23  ;;  %v7687_v23 = vld [vmem:[#allocation8 + $0x260] ss:$16 sps:$4 sm:$0xff]  }
 0x1a0   :  { %2745 = vmatpush1.bf16.msra.mxu1 %v7594_v24  ;;  %v7690_v24 = vld [vmem:[#allocation8 + $0x268] ss:$16 sps:$4 sm:$0xff]  }
 0x1a1   :  { %2746 = vmatprep.subr.bf16.mxu1 %v7602_v25  ;;  %v7695_v25 = vld [vmem:[#allocation8 + $0x284] ss:$16 sps:$4 sm:$0xff]  }
 0x1a4   :  { %2747 = vmatpush1.bf16.msra.mxu1 %v7600_v26  ;;  %v7698_v26 = vld [vmem:[#allocation8 + $0x28c] ss:$16 sps:$4 sm:$0xff]  }
 0x1a5   :  { %2748 = vmatprep.subr.bf16.mxu1 %v7608_v16  ;;  %v7693_v16 = vld [vmem:[#allocation8 + $0x280] ss:$16 sps:$4 sm:$0xff]  }
 0x1a8   :  { %2749 = vmatpush1.bf16.msra.mxu1 %v7606_v27  ;;  %v7696_v27 = vld [vmem:[#allocation8 + $0x288] ss:$16 sps:$4 sm:$0xff]  }
 0x1a9   :  { %2750 = vmatprep.subr.bf16.mxu1 %v7614_v28  ;;  %v7701_v28 = vld [vmem:[#allocation8 + $0x2a4] ss:$16 sps:$4 sm:$0xff]  }
 0x1ac   :  { %2751 = vmatpush1.bf16.msra.mxu1 %v7612_v29  ;;  %v7704_v29 = vld [vmem:[#allocation8 + $0x2ac] ss:$16 sps:$4 sm:$0xff]  }
 0x1ad   :  { %2752 = vmatprep.subr.bf16.mxu1 %v7620_v31  ;;  %v7702_v31 = vld [vmem:[#allocation8 + $0x2a8] ss:$16 sps:$4 sm:$0xff]  }
 0x1b0   :  { %2753 = vmatpush1.bf16.msra.mxu1 %v7618_v33  ;;  %v7710_v33 = vld [vmem:[#allocation8 + $0x2cc] ss:$16 sps:$4 sm:$0xff]  }
 0x1b1   :  { %2754 = vmatprep.subr.bf16.mxu1 %v7626_v35  ;;  %v7708_v35 = vld [vmem:[#allocation8 + $0x2c8] ss:$16 sps:$4 sm:$0xff]  }
 0x1b4   :  { %2755 = vmatpush1.bf16.msra.mxu1 %v7624_v38  ;;  %v7711_v38 = vld [vmem:[#allocation8 + $0x2e0] ss:$16 sps:$4 sm:$0xff]  }
 0x1b5   :  { %2756 = vmatprep.subr.bf16.mxu1 %v7632_v39  ;;  %v7714_v39 = vld [vmem:[#allocation8 + $0x2e8] ss:$16 sps:$4 sm:$0xff]  }
 0x1b8   :  { %2757 = vmatpush1.bf16.msra.mxu1 %v7630_v40  ;;  %v7719_v40 = vld [vmem:[#allocation8 + $0x304] ss:$16 sps:$4 sm:$0xff]  }
 0x1b9   :  { %2758 = vmatprep.subr.bf16.mxu1 %v7638_v41  ;;  %v7722_v41 = vld [vmem:[#allocation8 + $0x30c] ss:$16 sps:$4 sm:$0xff]  }
 0x1bc   :  { %2759 = vmatpush1.bf16.msra.mxu1 %v7636_v42  ;;  %v7717_v42 = vld [vmem:[#allocation8 + $0x300] ss:$16 sps:$4 sm:$0xff]  }
 0x1bd   :  { %2760 = vmatprep.subr.bf16.mxu1 %v7644_v43  ;;  %v7720_v43 = vld [vmem:[#allocation8 + $0x308] ss:$16 sps:$4 sm:$0xff]  }
 0x1c0   :  { %2761 = vmatpush1.bf16.msra.mxu1 %v7642_v44  ;;  %v7725_v44 = vld [vmem:[#allocation8 + $0x324] ss:$16 sps:$4 sm:$0xff]  }
 0x1c1   :  { %2762 = vmatprep.subr.bf16.mxu1 %v7650_v45  ;;  %v7728_v45 = vld [vmem:[#allocation8 + $0x32c] ss:$16 sps:$4 sm:$0xff]  }
 0x1c4   :  { %2763 = vmatpush1.bf16.msra.mxu1 %v7648_v46  ;;  %v7723_v46 = vld [vmem:[#allocation8 + $0x320] ss:$16 sps:$4 sm:$0xff]  }
 0x1c5   :  { %2764 = vmatprep.subr.bf16.mxu1 %v7656_v47  ;;  %v7726_v47 = vld [vmem:[#allocation8 + $0x328] ss:$16 sps:$4 sm:$0xff]  }
 0x1c8   :  { %2765 = vmatpush1.bf16.msra.mxu1 %v7654_v48  ;;  %v7731_v48 = vld [vmem:[#allocation8 + $0x344] ss:$16 sps:$4 sm:$0xff]  }
 0x1c9   :  { %2766 = vmatprep.subr.bf16.mxu1 %v7662_v49  ;;  %v7734_v49 = vld [vmem:[#allocation8 + $0x34c] ss:$16 sps:$4 sm:$0xff]  }
 0x1cc   :  { %2767 = vmatpush1.bf16.msra.mxu1 %v7660_v50  ;;  %v7729_v50 = vld [vmem:[#allocation8 + $0x340] ss:$16 sps:$4 sm:$0xff]  }
 0x1cd   :  { %2768 = vmatprep.subr.bf16.mxu1 %v7668_v51  ;;  %v7732_v51 = vld [vmem:[#allocation8 + $0x348] ss:$16 sps:$4 sm:$0xff]  }
 0x1d0   :  { %2769 = vmatpush1.bf16.msra.mxu1 %v7666_v52  ;;  %v7737_v52 = vld [vmem:[#allocation8 + $0x364] ss:$16 sps:$4 sm:$0xff]  }
 0x1d1   :  { %2779 = vmatprep.subr.bf16.mxu1 %v7674_v53  ;;  %v7740_v53 = vld [vmem:[#allocation8 + $0x36c] ss:$16 sps:$4 sm:$0xff]  }
 0x225   :  { %v1645_v61 = vpop.f32.mrb[0].mxu0 }
 0x226   :  { %v7146_v62 = vadd.f32 %v1645_v61, %v367_v59  ;;  %v1647_v63 = vpop.f32.mrb[1].mxu0  ;;  %v7735_v59 = vld [vmem:[#allocation8 + $0x360] ss:$16 sps:$4 sm:$0xff]   ;;  %v7743_v61 = vld [vmem:[#allocation8 + $0x384] ss:$16 sps:$4 sm:$0xff]  }
 0x227   :  { %v7148_v1 = vadd.f32 %v1647_v63, %v371_v60  ;;  %v1649_v2 = vpop.f32.mrb[2].mxu0  ;;  %v7738_v60 = vld [vmem:[#allocation8 + $0x368] ss:$16 sps:$4 sm:$0xff]   ;;  %v7741_v63 = vld [vmem:[#allocation8 + $0x380] ss:$16 sps:$4 sm:$0xff]  }
 0x228   :  { %v7147_v3 = vadd.f32 %v7146_v62, %v8792_v8  ;;  %v1650_v4 = vpop.f32.mrb[3].mxu0  ;;  %v7683_v8 = vld [vmem:[#allocation8 + $0x244] ss:$16 sps:$4 sm:$0xff]   ;;  %v7746_v62 = vld [vmem:[#allocation8 + $0x38c] ss:$16 sps:$4 sm:$0xff]  }
 0x229   :  { %v7149_v5 = vadd.f32 %v7148_v1, %v8794_v10  ;;  %v7686_v10 = vld [vmem:[#allocation8 + $0x24c] ss:$16 sps:$4 sm:$0xff]   ;;  %v7744_v1 = vld [vmem:[#allocation8 + $0x388] ss:$16 sps:$4 sm:$0xff]   ;;  %v7749_v2 = vld [vmem:[#allocation8 + $0x3a4] ss:$16 sps:$4 sm:$0xff]  }
 0x22a   :  { %v1857_v6 = vmax.f32 %v7147_v3, 0.0  ;;  %v7752_v3 = vld [vmem:[#allocation8 + $0x3ac] ss:$16 sps:$4 sm:$0xff]   ;;  %v8814_v4 = vsub.s32 2, %v8797_v55 }
 0x22b   :  { %v1858_v7 = vmax.f32 %v7149_v5, 0.0  ;;  %v8817_v5 = vsub.s32 3, %v8797_v55 }
 0x22c   :  { %v1861_v13 = vpack.c.bf16 %v1857_v6, %v1857_v6  ;;  %v7747_v6 = vld [vmem:[#allocation8 + $0x3a0] ss:$16 sps:$4 sm:$0xff]  }
 0x22d   :  { %v1862_v9 = vpack.c.bf16 %v1858_v7, %v1858_v7  ;;  %v7750_v7 = vld [vmem:[#allocation8 + $0x3a8] ss:$16 sps:$4 sm:$0xff]  }
 0x22f   :  { %2688 = vmatprep.mubr.bf16.mxu0 %v1862_v9  ;;  %2770 = vmatprep.mubr.bf16.mxu1 %v1862_v9  ;;  %v375_v9 = vrot.slane %v8799_v56, %v8814_v4 }
 0x230   :  { %2689 = vmatmul.mubr.bf16.vlgmr.msra.gmra.mrb[4].mxu0 %v1861_v13  ;;  %2771 = vmatmul.mubr.bf16.vlgmr.msra.gmra.mrb[8].mxu1 %v1861_v13  ;;  %v379_v13 = vrot.slane %v8799_v56, %v8817_v5 }
 0x231   :  { %2698 = vmatpush1.bf16.msra.mxu0 %v7669_v11  ;;  %2780 = vmatpush1.bf16.msra.mxu1 %v7672_v12  ;;  %v7755_v11 = vld [vmem:[#allocation8 + $0x3c4] ss:$16 sps:$4 sm:$0xff]   ;;  %v7758_v12 = vld [vmem:[#allocation8 + $0x3cc] ss:$16 sps:$4 sm:$0xff]  }
 0x232   :  { %2699 = vmatprep.subr.bf16.mxu0 %v7677_v14  ;;  %2781 = vmatprep.subr.bf16.mxu1 %v7680_v15  ;;  %v7753_v15 = vld [vmem:[#allocation8 + $0x3c0] ss:$16 sps:$4 sm:$0xff]  }
 0x235   :  { %2700 = vmatpush1.bf16.msra.mxu0 %v7675_v17  ;;  %2782 = vmatpush1.bf16.msra.mxu1 %v7678_v18  ;;  %v7756_v17 = vld [vmem:[#allocation8 + $0x3c8] ss:$16 sps:$4 sm:$0xff]  }
 0x236   :  { %2701 = vmatprep.subr.bf16.mxu0 %v7683_v8  ;;  %2783 = vmatprep.subr.bf16.mxu1 %v7686_v10  ;;  %v7761_v10 = vld [vmem:[#allocation8 + $0x3e4] ss:$16 sps:$4 sm:$0xff]  }
 0x239   :  { %2702 = vmatpush1.bf16.msra.mxu0 %v7681_v19  ;;  %2784 = vmatpush1.bf16.msra.mxu1 %v7684_v20  ;;  %v7764_v19 = vld [vmem:[#allocation8 + $0x3ec] ss:$16 sps:$4 sm:$0xff]  }
 0x23a   :  { %2703 = vmatprep.subr.bf16.mxu0 %v7689_v21  ;;  %2785 = vmatprep.subr.bf16.mxu1 %v7692_v22 }
 0x23d   :  { %2704 = vmatpush1.bf16.msra.mxu0 %v7687_v23  ;;  %2786 = vmatpush1.bf16.msra.mxu1 %v7690_v24  ;;  %v7759_v24 = vld [vmem:[#allocation8 + $0x3e0] ss:$16 sps:$4 sm:$0xff]  }
 0x23e   :  { %2705 = vmatprep.subr.bf16.mxu0 %v7695_v25  ;;  %2787 = vmatprep.subr.bf16.mxu1 %v7698_v26  ;;  %v7762_v25 = vld [vmem:[#allocation8 + $0x3e8] ss:$16 sps:$4 sm:$0xff]  }
 0x241   :  { %2706 = vmatpush1.bf16.msra.mxu0 %v7693_v16  ;;  %2788 = vmatpush1.bf16.msra.mxu1 %v7696_v27  ;;  %v7765_v16 = vld [vmem:[#allocation10 + $0x40] sm:$0xff]  }
 0x242   :  { %2707 = vmatprep.subr.bf16.mxu0 %v7701_v28  ;;  %2789 = vmatprep.subr.bf16.mxu1 %v7704_v29  ;;  %v7766_v27 = vld [vmem:[#allocation10 + $0xc0] sm:$0xff]  }
 0x243   :  { %v7767_v28 = vld [vmem:[#allocation10] sm:$0xff]  }
 0x244   :  { %v7768_v29 = vld [vmem:[#allocation10 + $0x80] sm:$0xff]  }
 0x245   :  { %2708 = vmatpush1.bf16.msra.mxu0 %v7699_v30  ;;  %2790 = vmatpush1.bf16.msra.mxu1 %v7702_v31  ;;  %v7769_v31 = vld [vmem:[#allocation10 + $0x48] sm:$0xff]  }
 0x246   :  { %2709 = vmatprep.subr.bf16.mxu0 %v7707_v32  ;;  %2791 = vmatprep.subr.bf16.mxu1 %v7710_v33  ;;  %v7770_v32 = vld [vmem:[#allocation10 + $0xc8] sm:$0xff]  }
 0x247   :  { %v7771_v33 = vld [vmem:[#allocation10 + $0x8] sm:$0xff]  }
 0x249   :  { %2710 = vmatpush1.bf16.msra.mxu0 %v7705_v34  ;;  %2792 = vmatpush1.bf16.msra.mxu1 %v7708_v35  ;;  %v7772_v34 = vld [vmem:[#allocation10 + $0x88] sm:$0xff]   ;;  %v7773_v35 = vld [vmem:[#allocation10 + $0x50] sm:$0xff]  }
 0x24a   :  { %2711 = vmatprep.subr.bf16.mxu0 %v7713_v36  ;;  %2793 = vmatprep.subr.bf16.mxu1 %v7716_v37  ;;  %v7774_v36 = vld [vmem:[#allocation10 + $0xd0] sm:$0xff]  }
 0x24b   :  { %v7775_v37 = vld [vmem:[#allocation10 + $0x10] sm:$0xff]  }
 0x24d   :  { %2712 = vmatpush1.bf16.msra.mxu0 %v7711_v38  ;;  %2794 = vmatpush1.bf16.msra.mxu1 %v7714_v39  ;;  %v7776_v38 = vld [vmem:[#allocation10 + $0x90] sm:$0xff]   ;;  %v7777_v39 = vld [vmem:[#allocation10 + $0x58] sm:$0xff]  }
 0x24e   :  { %2713 = vmatprep.subr.bf16.mxu0 %v7719_v40  ;;  %2795 = vmatprep.subr.bf16.mxu1 %v7722_v41  ;;  %v7778_v40 = vld [vmem:[#allocation10 + $0xd8] sm:$0xff]  }
 0x24f   :  { %v7779_v41 = vld [vmem:[#allocation10 + $0x18] sm:$0xff]  }
 0x251   :  { %2714 = vmatpush1.bf16.msra.mxu0 %v7717_v42  ;;  %2796 = vmatpush1.bf16.msra.mxu1 %v7720_v43  ;;  %v7780_v42 = vld [vmem:[#allocation10 + $0x98] sm:$0xff]   ;;  %v7781_v43 = vld [vmem:[#allocation10 + $0x60] sm:$0xff]  }
 0x252   :  { %2715 = vmatprep.subr.bf16.mxu0 %v7725_v44  ;;  %2797 = vmatprep.subr.bf16.mxu1 %v7728_v45  ;;  %v7782_v44 = vld [vmem:[#allocation10 + $0xe0] sm:$0xff]  }
 0x253   :  { %v7783_v45 = vld [vmem:[#allocation10 + $0x20] sm:$0xff]  }
 0x255   :  { %2716 = vmatpush1.bf16.msra.mxu0 %v7723_v46  ;;  %2798 = vmatpush1.bf16.msra.mxu1 %v7726_v47  ;;  %v7784_v46 = vld [vmem:[#allocation10 + $0xa0] sm:$0xff]   ;;  %v7785_v47 = vld [vmem:[#allocation10 + $0x68] sm:$0xff]  }
 0x256   :  { %2717 = vmatprep.subr.bf16.mxu0 %v7731_v48  ;;  %2799 = vmatprep.subr.bf16.mxu1 %v7734_v49  ;;  %v7786_v48 = vld [vmem:[#allocation10 + $0xe8] sm:$0xff]  }
 0x257   :  { %v7787_v49 = vld [vmem:[#allocation10 + $0x28] sm:$0xff]  }
 0x259   :  { %2718 = vmatpush1.bf16.msra.mxu0 %v7729_v50  ;;  %2800 = vmatpush1.bf16.msra.mxu1 %v7732_v51  ;;  %v7788_v50 = vld [vmem:[#allocation10 + $0xa8] sm:$0xff]   ;;  %v7789_v51 = vld [vmem:[#allocation10 + $0x70] sm:$0xff]  }
 0x25a   :  { %2719 = vmatprep.subr.bf16.mxu0 %v7737_v52  ;;  %2801 = vmatprep.subr.bf16.mxu1 %v7740_v53  ;;  %v7790_v52 = vld [vmem:[#allocation10 + $0xf0] sm:$0xff]  }
 0x25b   :  { %v7791_v53 = vld [vmem:[#allocation10 + $0x30] sm:$0xff]  }
 0x25d   :  { %2720 = vmatpush1.bf16.msra.mxu0 %v7735_v59  ;;  %2802 = vmatpush1.bf16.msra.mxu1 %v7738_v60  ;;  %v7792_v59 = vld [vmem:[#allocation10 + $0xb0] sm:$0xff]   ;;  %v7793_v60 = vld [vmem:[#allocation10 + $0x78] sm:$0xff]  }
 0x25e   :  { %2721 = vmatprep.subr.bf16.mxu0 %v7743_v61  ;;  %2803 = vmatprep.subr.bf16.mxu1 %v7746_v62  ;;  %v7794_v61 = vld [vmem:[#allocation10 + $0xf8] sm:$0xff]  }
 0x25f   :  { %v7795_v62 = vld [vmem:[#allocation10 + $0x38] sm:$0xff]  }
 0x261   :  { %2722 = vmatpush1.bf16.msra.mxu0 %v7741_v63  ;;  %2804 = vmatpush1.bf16.msra.mxu1 %v7744_v1  ;;  %v7796_v63 = vld [vmem:[#allocation10 + $0xb8] sm:$0xff]   ;;  %v7799_v1 = vld [vmem:[#allocation11 + $0x4] ss:$16 sps:$4 sm:$0xff]  }
 0x262   :  { %2723 = vmatprep.subr.bf16.mxu0 %v7749_v2  ;;  %2805 = vmatprep.subr.bf16.mxu1 %v7752_v3  ;;  %v7802_v2 = vld [vmem:[#allocation11 + $0xc] ss:$16 sps:$4 sm:$0xff]   ;;  %v1994_v3 = vld [vmem:[#allocation14 + $0x1] ss:$8 sm:$0xf] }
 0x265   :  { %2724 = vmatpush1.bf16.msra.mxu0 %v7747_v6  ;;  %2806 = vmatpush1.bf16.msra.mxu1 %v7750_v7  ;;  %v1999_v6 = vrot.slane %v1994_v3, %v8802_v57  ;;  %v2007_v7 = vrot.slane %v1994_v3, %v8814_v4 }
 0x266   :  { %v1850_v14 = vpop.f32.mrb[4].mxu1  ;;  %2725 = vmatprep.subr.bf16.mxu0 %v7755_v11  ;;  %2807 = vmatprep.subr.bf16.mxu1 %v7758_v12  ;;  %v2011_v11 = vrot.slane %v1994_v3, %v8817_v5 }
 0x267   :  { %v7150_v18 = vadd.f32 %v1850_v14, %v375_v9  ;;  %v1852_v8 = vpop.f32.mrb[5].mxu1  ;;  %v2003_v9 = vrot.slane %v1994_v3, %v8805_v58 }
 0x268   :  { %v7151_v20 = vadd.f32 %v1852_v8, %v379_v13  ;;  %v1854_v21 = vpop.f32.mrb[6].mxu1 }
 0x269   :  { %v1855_v22 = vpop.f32.mrb[7].mxu1  ;;  %2726 = vmatpush1.bf16.msra.mxu0 %v7753_v15  ;;  %2808 = vmatpush1.bf16.msra.mxu1 %v7756_v17  ;;  %v1859_v56 = vmax.f32 %v7150_v18, 0.0 }
 0x26a   :  { %v1860_v23 = vmax.f32 %v7151_v20, 0.0  ;;  %2727 = vmatprep.subr.bf16.mxu0 %v7761_v10  ;;  %2809 = vmatprep.subr.bf16.mxu1 %v7764_v19 }
 0x26b   :  { %v1863_v30 = vpack.c.bf16 %v1859_v56, %v1859_v56 }
 0x26c   :  { %v1864_v26 = vpack.c.bf16 %v1860_v23, %v1860_v23 }
 0x26d   :  { %2728 = vmatpush1.bf16.msra.mxu0 %v7759_v24  ;;  %2810 = vmatpush1.bf16.msra.mxu1 %v7762_v25 }
 0x26e   :  { %2729 = vmatprep.mubr.bf16.mxu0 %v1864_v26  ;;  %2811 = vmatprep.mubr.bf16.mxu1 %v1864_v26 }
 0x26f   :  { %7058 = vmatprep.subr.bf16.mxu0 %v7765_v16  ;;  %7080 = vmatprep.subr.bf16.mxu1 %v7766_v27  ;;  %v7797_v27 = vld [vmem:[#allocation11] ss:$16 sps:$4 sm:$0xff]  }
 0x270   :  { %2730 = vmatmul.mubr.bf16.vlgmr.msra.gmra.mrb[4].mxu0 %v1863_v30  ;;  %2812 = vmatmul.mubr.bf16.vlgmr.msra.gmra.mrb[8].mxu1 %v1863_v30 }
 0x271   :  { %7059 = vmatpush3.bf16.msra.mxu0 %v7767_v28  ;;  %7081 = vmatpush3.bf16.msra.mxu1 %v7768_v29  ;;  %v7800_v28 = vld [vmem:[#allocation11 + $0x8] ss:$16 sps:$4 sm:$0xff]  }
 0x272   :  { %7060 = vmatprep.subr.bf16.mxu0 %v7769_v31  ;;  %7082 = vmatprep.subr.bf16.mxu1 %v7770_v32  ;;  %v7805_v31 = vld [vmem:[#allocation11 + $0x24] ss:$16 sps:$4 sm:$0xff]   ;;  %v7808_v32 = vld [vmem:[#allocation11 + $0x2c] ss:$16 sps:$4 sm:$0xff]  }
 0x275   :  { %7061 = vmatpush3.bf16.msra.mxu0 %v7771_v33  ;;  %7083 = vmatpush3.bf16.msra.mxu1 %v7772_v34  ;;  %v7803_v33 = vld [vmem:[#allocation11 + $0x20] ss:$16 sps:$4 sm:$0xff]   ;;  %v7806_v34 = vld [vmem:[#allocation11 + $0x28] ss:$16 sps:$4 sm:$0xff]  }
 0x276   :  { %7062 = vmatprep.subr.bf16.mxu0 %v7773_v35  ;;  %7084 = vmatprep.subr.bf16.mxu1 %v7774_v36  ;;  %v7811_v35 = vld [vmem:[#allocation11 + $0x44] ss:$16 sps:$4 sm:$0xff]   ;;  %v7814_v36 = vld [vmem:[#allocation11 + $0x4c] ss:$16 sps:$4 sm:$0xff]  }
 0x279   :  { %7063 = vmatpush3.bf16.msra.mxu0 %v7775_v37  ;;  %7085 = vmatpush3.bf16.msra.mxu1 %v7776_v38  ;;  %v7809_v37 = vld [vmem:[#allocation11 + $0x40] ss:$16 sps:$4 sm:$0xff]   ;;  %v7812_v38 = vld [vmem:[#allocation11 + $0x48] ss:$16 sps:$4 sm:$0xff]  }
 0x27a   :  { %7064 = vmatprep.subr.bf16.mxu0 %v7777_v39  ;;  %7086 = vmatprep.subr.bf16.mxu1 %v7778_v40  ;;  %v7817_v39 = vld [vmem:[#allocation11 + $0x64] ss:$16 sps:$4 sm:$0xff]   ;;  %v7820_v40 = vld [vmem:[#allocation11 + $0x6c] ss:$16 sps:$4 sm:$0xff]  }
 0x27d   :  { %7065 = vmatpush3.bf16.msra.mxu0 %v7779_v41  ;;  %7087 = vmatpush3.bf16.msra.mxu1 %v7780_v42  ;;  %v7815_v41 = vld [vmem:[#allocation11 + $0x60] ss:$16 sps:$4 sm:$0xff]   ;;  %v7818_v42 = vld [vmem:[#allocation11 + $0x68] ss:$16 sps:$4 sm:$0xff]  }
 0x27e   :  { %7066 = vmatprep.subr.bf16.mxu0 %v7781_v43  ;;  %7088 = vmatprep.subr.bf16.mxu1 %v7782_v44  ;;  %v7823_v43 = vld [vmem:[#allocation11 + $0x84] ss:$16 sps:$4 sm:$0xff]   ;;  %v7826_v44 = vld [vmem:[#allocation11 + $0x8c] ss:$16 sps:$4 sm:$0xff]  }
 0x281   :  { %7067 = vmatpush3.bf16.msra.mxu0 %v7783_v45  ;;  %7089 = vmatpush3.bf16.msra.mxu1 %v7784_v46  ;;  %v7821_v45 = vld [vmem:[#allocation11 + $0x80] ss:$16 sps:$4 sm:$0xff]   ;;  %v7829_v46 = vld [vmem:[#allocation11 + $0xa4] ss:$16 sps:$4 sm:$0xff]  }
 0x282   :  { %7068 = vmatprep.subr.bf16.mxu0 %v7785_v47  ;;  %7090 = vmatprep.subr.bf16.mxu1 %v7786_v48  ;;  %v7832_v47 = vld [vmem:[#allocation11 + $0xac] ss:$16 sps:$4 sm:$0xff]   ;;  %v7827_v48 = vld [vmem:[#allocation11 + $0xa0] ss:$16 sps:$4 sm:$0xff]  }
 0x285   :  { %7069 = vmatpush3.bf16.msra.mxu0 %v7787_v49  ;;  %7091 = vmatpush3.bf16.msra.mxu1 %v7788_v50  ;;  %v7830_v49 = vld [vmem:[#allocation11 + $0xa8] ss:$16 sps:$4 sm:$0xff]   ;;  %v7835_v50 = vld [vmem:[#allocation11 + $0xc4] ss:$16 sps:$4 sm:$0xff]  }
 0x286   :  { %7070 = vmatprep.subr.bf16.mxu0 %v7789_v51  ;;  %7092 = vmatprep.subr.bf16.mxu1 %v7790_v52  ;;  %v7838_v51 = vld [vmem:[#allocation11 + $0xcc] ss:$16 sps:$4 sm:$0xff]   ;;  %v7833_v52 = vld [vmem:[#allocation11 + $0xc0] ss:$16 sps:$4 sm:$0xff]  }
 0x289   :  { %7071 = vmatpush3.bf16.msra.mxu0 %v7791_v53  ;;  %7093 = vmatpush3.bf16.msra.mxu1 %v7792_v59  ;;  %v7836_v53 = vld [vmem:[#allocation11 + $0xc8] ss:$16 sps:$4 sm:$0xff]   ;;  %v7841_v59 = vld [vmem:[#allocation11 + $0xe4] ss:$16 sps:$4 sm:$0xff]  }
 0x28a   :  { %7072 = vmatprep.subr.bf16.mxu0 %v7793_v60  ;;  %7094 = vmatprep.subr.bf16.mxu1 %v7794_v61  ;;  %v7844_v60 = vld [vmem:[#allocation11 + $0xec] ss:$16 sps:$4 sm:$0xff]   ;;  %v7839_v61 = vld [vmem:[#allocation11 + $0xe0] ss:$16 sps:$4 sm:$0xff]  }
 0x28d   :  { %7073 = vmatpush3.bf16.msra.mxu0 %v7795_v62  ;;  %7095 = vmatpush3.bf16.msra.mxu1 %v7796_v63  ;;  %v7842_v62 = vld [vmem:[#allocation11 + $0xe8] ss:$16 sps:$4 sm:$0xff]   ;;  %v7847_v63 = vld [vmem:[#allocation8 + $0x404] ss:$16 sps:$4 sm:$0xff]  }
 0x28e   :  { %3386 = vmatprep.subr.bf16.mxu0 %v7799_v1  ;;  %3427 = vmatprep.subr.bf16.mxu1 %v7802_v2  ;;  %v7850_v1 = vld [vmem:[#allocation8 + $0x40c] ss:$16 sps:$4 sm:$0xff]  }
 0x343   :  { %v2731_v12 = vpop.f32.mrb[4].mxu0  ;;  %v2813_v13 = vpop.f32.mrb[8].mxu1 }
 0x344   :  { %v7152_v14 = vadd.f32 %v2731_v12, %v1999_v6  ;;  %v7154_v15 = vadd.f32 %v2813_v13, %v2007_v7  ;;  %v2733_v17 = vpop.f32.mrb[5].mxu0  ;;  %v2815_v18 = vpop.f32.mrb[9].mxu1  ;;  %v2892_v6 = vld [vmem:[#allocation14 + $0x2] ss:$0 sm:$0xff] }
 0x345   :  { %v7153_v8 = vadd.f32 %v2733_v17, %v2003_v9  ;;  %v7155_v10 = vadd.f32 %v2815_v18, %v2011_v11  ;;  %v2735_v19 = vpop.f32.mrb[6].mxu0  ;;  %v2817_v20 = vpop.f32.mrb[10].mxu1  ;;  %v3166_v11 = vand.u32 127, %v364_v54  ;;  %v7851_v54 = vld [vmem:[#allocation8 + $0x420] ss:$16 sps:$4 sm:$0xff]  }
 0x346   :  { %v2820_v21 = vmax.f32 %v7152_v14, 0.0  ;;  %v2822_v22 = vmax.f32 %v7154_v15, 0.0  ;;  %v2736_v23 = vpop.f32.mrb[7].mxu0  ;;  %v2818_v24 = vpop.f32.mrb[11].mxu1 }
 0x347   :  { %v2821_v25 = vmax.f32 %v7153_v8, 0.0  ;;  %v2823_v56 = vmax.f32 %v7155_v10, 0.0  ;;  %vm3167_vm0 = vcmp.lt.s32.totalorder %v3166_v11, 64  ;;  %v3168_v10 = vld [vmem:[#allocation5] sm:$0xff]  ;;  %v7853_v24 = vld [vmem:[#allocation8 + $0x424] ss:$16 sps:$4 sm:$0xff]  }
 0x348   :  { %v2824_v29 = vpack.c.bf16 %v2820_v21, %v2820_v21  ;;  %v2826_v30 = vpack.c.bf16 %v2822_v22, %v2822_v22  ;;  %v7845_v21 = vld [vmem:[#allocation8 + $0x400] ss:$16 sps:$4 sm:$0xff]   ;;  %v7848_v22 = vld [vmem:[#allocation8 + $0x408] ss:$16 sps:$4 sm:$0xff]   ;;  %v7922_v11 = vld [vmem:[#allocation8 + $0x58c] ss:$16 sps:$4 sm:$0xff]  }
 0x349   :  { %v2825_v26 = vpack.c.bf16 %v2821_v25, %v2821_v25  ;;  %v2827_v16 = vpack.c.bf16 %v2823_v56, %v2823_v56  ;;  %v7856_v25 = vld [vmem:[#allocation8 + $0x42c] ss:$16 sps:$4 sm:$0xff]   ;;  %v7854_v56 = vld [vmem:[#allocation8 + $0x428] ss:$16 sps:$4 sm:$0xff]  }
 0x34b   :  { %3117 = vmatprep.mubr.bf16.mxu0 %v2825_v26  ;;  %3157 = vmatprep.mubr.bf16.mxu1 %v2827_v16  ;;  %v7859_v26 = vld [vmem:[#allocation8 + $0x444] ss:$16 sps:$4 sm:$0xff]   ;;  %v7862_v16 = vld [vmem:[#allocation8 + $0x44c] ss:$16 sps:$4 sm:$0xff]  }
 0x34c   :  { %3118 = vmatmul.mubr.bf16.vlgmr.msra.gmra.mrb[8].mxu0 %v2824_v29  ;;  %3158 = vmatmul.mubr.bf16.vlgmr.msra.gmra.mrb[12].mxu1 %v2826_v30  ;;  %v7865_v29 = vld [vmem:[#allocation8 + $0x464] ss:$16 sps:$4 sm:$0xff]   ;;  %v7868_v30 = vld [vmem:[#allocation8 + $0x46c] ss:$16 sps:$4 sm:$0xff]  }
 0x34d   :  { %3387 = vmatpush1.bf16.msra.mxu0 %v7797_v27  ;;  %3428 = vmatpush1.bf16.msra.mxu1 %v7800_v28  ;;  %v7857_v27 = vld [vmem:[#allocation8 + $0x440] ss:$16 sps:$4 sm:$0xff]   ;;  %v7860_v28 = vld [vmem:[#allocation8 + $0x448] ss:$16 sps:$4 sm:$0xff]  }
 0x34e   :  { %3388 = vmatprep.subr.bf16.mxu0 %v7805_v31  ;;  %3429 = vmatprep.subr.bf16.mxu1 %v7808_v32  ;;  %v7863_v31 = vld [vmem:[#allocation8 + $0x460] ss:$16 sps:$4 sm:$0xff]   ;;  %v7866_v32 = vld [vmem:[#allocation8 + $0x468] ss:$16 sps:$4 sm:$0xff]  }
 0x34f   :  { %3418 = vmatprep.mubr.bf16.mxu0 %v8610_v0  ;;  %3459 = vmatprep.mubr.bf16.mxu1 %v8610_v0  ;;  %v7824_v0 = vld [vmem:[#allocation11 + $0x88] ss:$16 sps:$4 sm:$0xff]  }
 0x351   :  { %3389 = vmatpush1.bf16.msra.mxu0 %v7803_v33  ;;  %3430 = vmatpush1.bf16.msra.mxu1 %v7806_v34  ;;  %v7871_v33 = vld [vmem:[#allocation8 + $0x484] ss:$16 sps:$4 sm:$0xff]   ;;  %v7874_v34 = vld [vmem:[#allocation8 + $0x48c] ss:$16 sps:$4 sm:$0xff]  }
 0x352   :  { %3390 = vmatprep.subr.bf16.mxu0 %v7811_v35  ;;  %3431 = vmatprep.subr.bf16.mxu1 %v7814_v36  ;;  %v7869_v35 = vld [vmem:[#allocation8 + $0x480] ss:$16 sps:$4 sm:$0xff]   ;;  %v7872_v36 = vld [vmem:[#allocation8 + $0x488] ss:$16 sps:$4 sm:$0xff]  }
 0x355   :  { %3391 = vmatpush1.bf16.msra.mxu0 %v7809_v37  ;;  %3432 = vmatpush1.bf16.msra.mxu1 %v7812_v38  ;;  %v7877_v37 = vld [vmem:[#allocation8 + $0x4a4] ss:$16 sps:$4 sm:$0xff]   ;;  %v7880_v38 = vld [vmem:[#allocation8 + $0x4ac] ss:$16 sps:$4 sm:$0xff]  }
 0x356   :  { %3392 = vmatprep.subr.bf16.mxu0 %v7817_v39  ;;  %3433 = vmatprep.subr.bf16.mxu1 %v7820_v40  ;;  %v7875_v39 = vld [vmem:[#allocation8 + $0x4a0] ss:$16 sps:$4 sm:$0xff]   ;;  %v7878_v40 = vld [vmem:[#allocation8 + $0x4a8] ss:$16 sps:$4 sm:$0xff]  }
 0x359   :  { %3393 = vmatpush1.bf16.msra.mxu0 %v7815_v41  ;;  %3434 = vmatpush1.bf16.msra.mxu1 %v7818_v42  ;;  %v7883_v41 = vld [vmem:[#allocation8 + $0x4c4] ss:$16 sps:$4 sm:$0xff]   ;;  %v7886_v42 = vld [vmem:[#allocation8 + $0x4cc] ss:$16 sps:$4 sm:$0xff]  }
 0x35a   :  { %3394 = vmatprep.subr.bf16.mxu0 %v7823_v43  ;;  %3435 = vmatprep.subr.bf16.mxu1 %v7826_v44  ;;  %v7881_v43 = vld [vmem:[#allocation8 + $0x4c0] ss:$16 sps:$4 sm:$0xff]   ;;  %v7884_v44 = vld [vmem:[#allocation8 + $0x4c8] ss:$16 sps:$4 sm:$0xff]  }
 0x35d   :  { %3395 = vmatpush1.bf16.msra.mxu0 %v7821_v45  ;;  %3436 = vmatpush1.bf16.msra.mxu1 %v7824_v0  ;;  %v7889_v45 = vld [vmem:[#allocation8 + $0x4e4] ss:$16 sps:$4 sm:$0xff]   ;;  %v7892_v0 = vld [vmem:[#allocation8 + $0x4ec] ss:$16 sps:$4 sm:$0xff]  }
 0x35e   :  { %3396 = vmatprep.subr.bf16.mxu0 %v7829_v46  ;;  %3437 = vmatprep.subr.bf16.mxu1 %v7832_v47  ;;  %v7887_v46 = vld [vmem:[#allocation8 + $0x4e0] ss:$16 sps:$4 sm:$0xff]   ;;  %v7890_v47 = vld [vmem:[#allocation8 + $0x4e8] ss:$16 sps:$4 sm:$0xff]  }
 0x361   :  { %3397 = vmatpush1.bf16.msra.mxu0 %v7827_v48  ;;  %3438 = vmatpush1.bf16.msra.mxu1 %v7830_v49  ;;  %v7895_v48 = vld [vmem:[#allocation8 + $0x504] ss:$16 sps:$4 sm:$0xff]   ;;  %v7898_v49 = vld [vmem:[#allocation8 + $0x50c] ss:$16 sps:$4 sm:$0xff]  }
 0x362   :  { %3398 = vmatprep.subr.bf16.mxu0 %v7835_v50  ;;  %3439 = vmatprep.subr.bf16.mxu1 %v7838_v51  ;;  %v7893_v50 = vld [vmem:[#allocation8 + $0x500] ss:$16 sps:$4 sm:$0xff]   ;;  %v7896_v51 = vld [vmem:[#allocation8 + $0x508] ss:$16 sps:$4 sm:$0xff]  }
 0x365   :  { %3399 = vmatpush1.bf16.msra.mxu0 %v7833_v52  ;;  %3440 = vmatpush1.bf16.msra.mxu1 %v7836_v53  ;;  %v7901_v52 = vld [vmem:[#allocation8 + $0x524] ss:$16 sps:$4 sm:$0xff]   ;;  %v7904_v53 = vld [vmem:[#allocation8 + $0x52c] ss:$16 sps:$4 sm:$0xff]  }
 0x366   :  { %3400 = vmatprep.subr.bf16.mxu0 %v7841_v59  ;;  %3441 = vmatprep.subr.bf16.mxu1 %v7844_v60  ;;  %v7899_v59 = vld [vmem:[#allocation8 + $0x520] ss:$16 sps:$4 sm:$0xff]   ;;  %v7902_v60 = vld [vmem:[#allocation8 + $0x528] ss:$16 sps:$4 sm:$0xff]  }
 0x369   :  { %3401 = vmatpush1.bf16.msra.mxu0 %v7839_v61  ;;  %3442 = vmatpush1.bf16.msra.mxu1 %v7842_v62  ;;  %v7907_v61 = vld [vmem:[#allocation8 + $0x544] ss:$16 sps:$4 sm:$0xff]   ;;  %v7910_v62 = vld [vmem:[#allocation8 + $0x54c] ss:$16 sps:$4 sm:$0xff]  }
 0x36a   :  { %4268 = vmatprep.subr.bf16.mxu0 %v7847_v63  ;;  %4350 = vmatprep.subr.bf16.mxu1 %v7850_v1  ;;  %v7905_v63 = vld [vmem:[#allocation8 + $0x540] ss:$16 sps:$4 sm:$0xff]   ;;  %v7908_v1 = vld [vmem:[#allocation8 + $0x548] ss:$16 sps:$4 sm:$0xff]  }
 0x41f   :  { %v7074_v2 = vpop.f32.mrb[8].mxu0  ;;  %v7096_v3 = vpop.f32.mrb[12].mxu1 }
 0x420   :  { %v7075_v7 = vpop.f32.mrb[9].mxu0  ;;  %v7097_v9 = vpop.f32.mrb[13].mxu1 }
 0x421   :  { %v7076_v12 = vadd.f32 %v7075_v7, %v7074_v2  ;;  %v7098_v13 = vadd.f32 %v7097_v9, %v7096_v3  ;;  %v7077_v14 = vpop.f32.mrb[10].mxu0  ;;  %v7099_v15 = vpop.f32.mrb[14].mxu1  ;;  %v7913_v2 = vld [vmem:[#allocation8 + $0x564] ss:$16 sps:$4 sm:$0xff]   ;;  %v7916_v3 = vld [vmem:[#allocation8 + $0x56c] ss:$16 sps:$4 sm:$0xff]  }
 0x422   :  { %v7078_v17 = vpop.f32.mrb[11].mxu0  ;;  %v7100_v18 = vpop.f32.mrb[15].mxu1  ;;  %v7914_v7 = vld [vmem:[#allocation8 + $0x568] ss:$16 sps:$4 sm:$0xff]   ;;  %v7919_v9 = vld [vmem:[#allocation8 + $0x584] ss:$16 sps:$4 sm:$0xff]  }
 0x423   :  { %v3120_v8 = vadd.f32 %v7076_v12, %v2892_v6  ;;  %v7911_v6 = vld [vmem:[#allocation8 + $0x560] ss:$16 sps:$4 sm:$0xff]   ;;  %v7925_v14 = vld [vmem:[#allocation8 + $0x5a4] ss:$16 sps:$4 sm:$0xff]   ;;  %v7928_v15 = vld [vmem:[#allocation8 + $0x5ac] ss:$16 sps:$4 sm:$0xff]  }
 0x424   :  { %v7917_v12 = vld [vmem:[#allocation8 + $0x580] ss:$16 sps:$4 sm:$0xff]   ;;  %v7926_v18 = vld [vmem:[#allocation8 + $0x5a8] ss:$16 sps:$4 sm:$0xff]  }
 0x425   :  { %v3160_v19 = vadd.f32 %v7098_v13, %v3120_v8  ;;  %v7920_v13 = vld [vmem:[#allocation8 + $0x588] ss:$16 sps:$4 sm:$0xff]   ;;  %v7923_v17 = vld [vmem:[#allocation8 + $0x5a0] ss:$16 sps:$4 sm:$0xff]   ;;  %v7931_v8 = vld [vmem:[#allocation8 + $0x5c4] ss:$16 sps:$4 sm:$0xff]  }
 0x427   :  { %v3169_v20 = vsel %vm3167_vm0, %v3160_v19, %v3168_v10  ;;  %6263 = vst [vmem:[#allocation16 + $0x38] sm:$0xff] %v3160_v19  ;;  %v7934_v10 = vld [vmem:[#allocation8 + $0x5cc] ss:$16 sps:$4 sm:$0xff]   ;;  %v7929_v19 = vld [vmem:[#allocation8 + $0x5c0] ss:$16 sps:$4 sm:$0xff]  }
 0x428   :  { %v3170_v23 = vpack.c.bf16 %v3169_v20, %v3169_v20  ;;  %v7932_v20 = vld [vmem:[#allocation8 + $0x5c8] ss:$16 sps:$4 sm:$0xff]  }
 0x42a   :  { %3419 = vmatmul.mubr.bf16.vlgmr.msra.gmra.mrb[12].mxu0 %v3170_v23  ;;  %3460 = vmatmul.mubr.bf16.vlgmr.msra.gmra.mrb[16].mxu1 %v3170_v23  ;;  %v7935_v23 = vld [vmem:[#allocation8 + $0x5e0] ss:$16 sps:$4 sm:$0xff]  }
 0x42b   :  { %4269 = vmatpush1.bf16.msra.mxu0 %v7845_v21  ;;  %4351 = vmatpush1.bf16.msra.mxu1 %v7848_v22  ;;  %v7937_v21 = vld [vmem:[#allocation8 + $0x5e4] ss:$16 sps:$4 sm:$0xff]   ;;  %v7940_v22 = vld [vmem:[#allocation8 + $0x5ec] ss:$16 sps:$4 sm:$0xff]  }
 0x42c   :  { %4270 = vmatprep.subr.bf16.mxu0 %v7853_v24  ;;  %4352 = vmatprep.subr.bf16.mxu1 %v7856_v25  ;;  %v7938_v24 = vld [vmem:[#allocation8 + $0x5e8] ss:$16 sps:$4 sm:$0xff]   ;;  %v7943_v25 = vld [vmem:[#allocation8 + $0x604] ss:$16 sps:$4 sm:$0xff]  }
 0x42f   :  { %4271 = vmatpush1.bf16.msra.mxu0 %v7851_v54  ;;  %4353 = vmatpush1.bf16.msra.mxu1 %v7854_v56  ;;  %v7946_v54 = vld [vmem:[#allocation8 + $0x60c] ss:$16 sps:$4 sm:$0xff]   ;;  %v8830_v56 = vld [vmem:[#allocation14 + $0x3] ss:$8 sm:$0xf] }
 0x430   :  { %4272 = vmatprep.subr.bf16.mxu0 %v7859_v26  ;;  %4354 = vmatprep.subr.bf16.mxu1 %v7862_v16  ;;  %v3209_v26 = vrot.slane %v8830_v56, %v8802_v57  ;;  %v3213_v16 = vrot.slane %v8830_v56, %v8805_v58 }
 0x433   :  { %4273 = vmatpush1.bf16.msra.mxu0 %v7857_v27  ;;  %4355 = vmatpush1.bf16.msra.mxu1 %v7860_v28  ;;  %v3221_v27 = vrot.slane %v8830_v56, %v8817_v5 }
 0x434   :  { %4274 = vmatprep.subr.bf16.mxu0 %v7865_v29  ;;  %4356 = vmatprep.subr.bf16.mxu1 %v7868_v30 }
 0x437   :  { %4275 = vmatpush1.bf16.msra.mxu0 %v7863_v31  ;;  %4357 = vmatpush1.bf16.msra.mxu1 %v7866_v32 }
 0x438   :  { %4276 = vmatprep.subr.bf16.mxu0 %v7871_v33  ;;  %4358 = vmatprep.subr.bf16.mxu1 %v7874_v34 }
 0x43b   :  { %4277 = vmatpush1.bf16.msra.mxu0 %v7869_v35  ;;  %4359 = vmatpush1.bf16.msra.mxu1 %v7872_v36 }
 0x43c   :  { %4278 = vmatprep.subr.bf16.mxu0 %v7877_v37  ;;  %4360 = vmatprep.subr.bf16.mxu1 %v7880_v38 }
 0x43f   :  { %4279 = vmatpush1.bf16.msra.mxu0 %v7875_v39  ;;  %4361 = vmatpush1.bf16.msra.mxu1 %v7878_v40 }
 0x440   :  { %4280 = vmatprep.subr.bf16.mxu0 %v7883_v41  ;;  %4362 = vmatprep.subr.bf16.mxu1 %v7886_v42 }
 0x443   :  { %4281 = vmatpush1.bf16.msra.mxu0 %v7881_v43  ;;  %4363 = vmatpush1.bf16.msra.mxu1 %v7884_v44  ;;  %v7941_v43 = vld [vmem:[#allocation8 + $0x600] ss:$16 sps:$4 sm:$0xff]   ;;  %v7944_v44 = vld [vmem:[#allocation8 + $0x608] ss:$16 sps:$4 sm:$0xff]  }
 0x444   :  { %4282 = vmatprep.subr.bf16.mxu0 %v7889_v45  ;;  %4364 = vmatprep.subr.bf16.mxu1 %v7892_v0  ;;  %v7949_v0 = vld [vmem:[#allocation8 + $0x624] ss:$16 sps:$4 sm:$0xff]  }
 0x447   :  { %4283 = vmatpush1.bf16.msra.mxu0 %v7887_v46  ;;  %4365 = vmatpush1.bf16.msra.mxu1 %v7890_v47  ;;  %v7952_v46 = vld [vmem:[#allocation8 + $0x62c] ss:$16 sps:$4 sm:$0xff]  }
 0x448   :  { %4284 = vmatprep.subr.bf16.mxu0 %v7895_v48  ;;  %4366 = vmatprep.subr.bf16.mxu1 %v7898_v49  ;;  %v7947_v48 = vld [vmem:[#allocation8 + $0x620] ss:$16 sps:$4 sm:$0xff]   ;;  %v7950_v49 = vld [vmem:[#allocation8 + $0x628] ss:$16 sps:$4 sm:$0xff]  }
 0x44b   :  { %4285 = vmatpush1.bf16.msra.mxu0 %v7893_v50  ;;  %4367 = vmatpush1.bf16.msra.mxu1 %v7896_v51  ;;  %v7955_v50 = vld [vmem:[#allocation8 + $0x644] ss:$16 sps:$4 sm:$0xff]   ;;  %v7958_v51 = vld [vmem:[#allocation8 + $0x64c] ss:$16 sps:$4 sm:$0xff]  }
 0x44c   :  { %4286 = vmatprep.subr.bf16.mxu0 %v7901_v52  ;;  %4368 = vmatprep.subr.bf16.mxu1 %v7904_v53  ;;  %v7953_v52 = vld [vmem:[#allocation8 + $0x640] ss:$16 sps:$4 sm:$0xff]   ;;  %v7956_v53 = vld [vmem:[#allocation8 + $0x648] ss:$16 sps:$4 sm:$0xff]  }
 0x44f   :  { %4287 = vmatpush1.bf16.msra.mxu0 %v7899_v59  ;;  %4369 = vmatpush1.bf16.msra.mxu1 %v7902_v60  ;;  %v7961_v59 = vld [vmem:[#allocation8 + $0x664] ss:$16 sps:$4 sm:$0xff]   ;;  %v7964_v60 = vld [vmem:[#allocation8 + $0x66c] ss:$16 sps:$4 sm:$0xff]  }
 0x450   :  { %4288 = vmatprep.subr.bf16.mxu0 %v7907_v61  ;;  %4370 = vmatprep.subr.bf16.mxu1 %v7910_v62  ;;  %v7959_v61 = vld [vmem:[#allocation8 + $0x660] ss:$16 sps:$4 sm:$0xff]   ;;  %v7962_v62 = vld [vmem:[#allocation8 + $0x668] ss:$16 sps:$4 sm:$0xff]  }
 0x453   :  { %4289 = vmatpush1.bf16.msra.mxu0 %v7905_v63  ;;  %4371 = vmatpush1.bf16.msra.mxu1 %v7908_v1  ;;  %v7967_v63 = vld [vmem:[#allocation8 + $0x684] ss:$16 sps:$4 sm:$0xff]   ;;  %v7970_v1 = vld [vmem:[#allocation8 + $0x68c] ss:$16 sps:$4 sm:$0xff]  }
 0x454   :  { %4290 = vmatprep.subr.bf16.mxu0 %v7913_v2  ;;  %4372 = vmatprep.subr.bf16.mxu1 %v7916_v3  ;;  %v7965_v2 = vld [vmem:[#allocation8 + $0x680] ss:$16 sps:$4 sm:$0xff]   ;;  %v7968_v3 = vld [vmem:[#allocation8 + $0x688] ss:$16 sps:$4 sm:$0xff]  }
 0x457   :  { %4291 = vmatpush1.bf16.msra.mxu0 %v7911_v6  ;;  %4373 = vmatpush1.bf16.msra.mxu1 %v7914_v7  ;;  %v7973_v6 = vld [vmem:[#allocation8 + $0x6a4] ss:$16 sps:$4 sm:$0xff]   ;;  %v7976_v7 = vld [vmem:[#allocation8 + $0x6ac] ss:$16 sps:$4 sm:$0xff]  }
 0x458   :  { %4292 = vmatprep.subr.bf16.mxu0 %v7919_v9  ;;  %4374 = vmatprep.subr.bf16.mxu1 %v7922_v11  ;;  %v7971_v9 = vld [vmem:[#allocation8 + $0x6a0] ss:$16 sps:$4 sm:$0xff]   ;;  %v7974_v11 = vld [vmem:[#allocation8 + $0x6a8] ss:$16 sps:$4 sm:$0xff]  }
 0x45b   :  { %4293 = vmatpush1.bf16.msra.mxu0 %v7917_v12  ;;  %4375 = vmatpush1.bf16.msra.mxu1 %v7920_v13  ;;  %v7979_v12 = vld [vmem:[#allocation8 + $0x6c4] ss:$16 sps:$4 sm:$0xff]   ;;  %v7982_v13 = vld [vmem:[#allocation8 + $0x6cc] ss:$16 sps:$4 sm:$0xff]  }
 0x45c   :  { %4294 = vmatprep.subr.bf16.mxu0 %v7925_v14  ;;  %4376 = vmatprep.subr.bf16.mxu1 %v7928_v15  ;;  %v7977_v14 = vld [vmem:[#allocation8 + $0x6c0] ss:$16 sps:$4 sm:$0xff]   ;;  %v7980_v15 = vld [vmem:[#allocation8 + $0x6c8] ss:$16 sps:$4 sm:$0xff]  }
 0x45f   :  { %4295 = vmatpush1.bf16.msra.mxu0 %v7923_v17  ;;  %4377 = vmatpush1.bf16.msra.mxu1 %v7926_v18  ;;  %v7985_v17 = vld [vmem:[#allocation8 + $0x6e4] ss:$16 sps:$4 sm:$0xff]   ;;  %v7988_v18 = vld [vmem:[#allocation8 + $0x6ec] ss:$16 sps:$4 sm:$0xff]  }
 0x460   :  { %4296 = vmatprep.subr.bf16.mxu0 %v7931_v8  ;;  %4378 = vmatprep.subr.bf16.mxu1 %v7934_v10  ;;  %v7983_v8 = vld [vmem:[#allocation8 + $0x6e0] ss:$16 sps:$4 sm:$0xff]   ;;  %v7986_v10 = vld [vmem:[#allocation8 + $0x6e8] ss:$16 sps:$4 sm:$0xff]  }
 0x463   :  { %4297 = vmatpush1.bf16.msra.mxu0 %v7929_v19  ;;  %4379 = vmatpush1.bf16.msra.mxu1 %v7932_v20  ;;  %v7991_v19 = vld [vmem:[#allocation8 + $0x704] ss:$16 sps:$4 sm:$0xff]   ;;  %v7994_v20 = vld [vmem:[#allocation8 + $0x70c] ss:$16 sps:$4 sm:$0xff]  }
 0x464   :  { %4298 = vmatprep.subr.bf16.mxu0 %v7937_v21  ;;  %4380 = vmatprep.subr.bf16.mxu1 %v7940_v22  ;;  %v7989_v21 = vld [vmem:[#allocation8 + $0x700] ss:$16 sps:$4 sm:$0xff]   ;;  %v7992_v22 = vld [vmem:[#allocation8 + $0x708] ss:$16 sps:$4 sm:$0xff]  }
 0x467   :  { %4299 = vmatpush1.bf16.msra.mxu0 %v7935_v23  ;;  %4381 = vmatpush1.bf16.msra.mxu1 %v7938_v24  ;;  %v7997_v23 = vld [vmem:[#allocation8 + $0x724] ss:$16 sps:$4 sm:$0xff]   ;;  %v8000_v24 = vld [vmem:[#allocation8 + $0x72c] ss:$16 sps:$4 sm:$0xff]  }
 0x468   :  { %4309 = vmatprep.subr.bf16.mxu0 %v7943_v25  ;;  %4391 = vmatprep.subr.bf16.mxu1 %v7946_v54  ;;  %v7995_v25 = vld [vmem:[#allocation8 + $0x720] ss:$16 sps:$4 sm:$0xff]   ;;  %v7998_v54 = vld [vmem:[#allocation8 + $0x728] ss:$16 sps:$4 sm:$0xff]  }
 0x4fd   :  { %v3420_v28 = vpop.f32.mrb[12].mxu0  ;;  %v8838_v29 = vpop.f32.mrb[16].mxu1 }
 0x4fe   :  { %v3421_v30 = vadd.f32 %v3420_v28, %v3209_v26  ;;  %v3422_v31 = vpop.f32.mrb[13].mxu0  ;;  %v3463_v32 = vpop.f32.mrb[17].mxu1  ;;  %v8003_v26 = vld [vmem:[#allocation8 + $0x744] ss:$16 sps:$4 sm:$0xff]   ;;  %v8004_v28 = vld [vmem:[#allocation8 + $0x748] ss:$16 sps:$4 sm:$0xff]  }
 0x4ff   :  { %v3423_v33 = vadd.f32 %v3422_v31, %v3213_v16  ;;  %v3464_v34 = vadd.f32 %v3463_v32, %v3221_v27  ;;  %v3424_v35 = vpop.f32.mrb[14].mxu0  ;;  %v3465_v36 = vpop.f32.mrb[18].mxu1  ;;  %v8006_v16 = vld [vmem:[#allocation8 + $0x74c] ss:$16 sps:$4 sm:$0xff]   ;;  %v8001_v27 = vld [vmem:[#allocation8 + $0x740] ss:$16 sps:$4 sm:$0xff]  }
 0x500   :  { %v3468_v37 = vmax.f32 %v3421_v30, 0.0  ;;  %v3425_v38 = vpop.f32.mrb[15].mxu0  ;;  %v3466_v39 = vpop.f32.mrb[19].mxu1  ;;  %v8009_v30 = vld [vmem:[#allocation8 + $0x764] ss:$16 sps:$4 sm:$0xff]  }
 0x501   :  { %v3469_v40 = vmax.f32 %v3423_v33, 0.0  ;;  %v3471_v41 = vmax.f32 %v3464_v34, 0.0  ;;  %v8012_v31 = vld [vmem:[#allocation8 + $0x76c] ss:$16 sps:$4 sm:$0xff]   ;;  %v8007_v32 = vld [vmem:[#allocation8 + $0x760] ss:$16 sps:$4 sm:$0xff]  }
 0x502   :  { %v3472_v45 = vpack.c.bf16 %v3468_v37, %v3468_v37  ;;  %v8010_v33 = vld [vmem:[#allocation8 + $0x768] ss:$16 sps:$4 sm:$0xff]   ;;  %v8015_v34 = vld [vmem:[#allocation8 + $0x784] ss:$16 sps:$4 sm:$0xff]   ;;  %v8018_v35 = vld [vmem:[#allocation8 + $0x78c] ss:$16 sps:$4 sm:$0xff]  }
 0x503   :  { %v3473_v42 = vpack.c.bf16 %v3469_v40, %v3469_v40  ;;  %v3475_v47 = vpack.c.bf16 %v3471_v41, %v3471_v41  ;;  %v8013_v36 = vld [vmem:[#allocation8 + $0x780] ss:$16 sps:$4 sm:$0xff]   ;;  %v8016_v37 = vld [vmem:[#allocation8 + $0x788] ss:$16 sps:$4 sm:$0xff]   ;;  %v8021_v38 = vld [vmem:[#allocation8 + $0x7a4] ss:$16 sps:$4 sm:$0xff]  }
 0x504   :  { %v8024_v39 = vld [vmem:[#allocation8 + $0x7ac] ss:$16 sps:$4 sm:$0xff]   ;;  %v8019_v40 = vld [vmem:[#allocation8 + $0x7a0] ss:$16 sps:$4 sm:$0xff]   ;;  %v8022_v41 = vld [vmem:[#allocation8 + $0x7a8] ss:$16 sps:$4 sm:$0xff]  }
 0x505   :  { %4300 = vmatprep.mubr.bf16.mxu0 %v3473_v42  ;;  %4382 = vmatprep.mubr.bf16.mxu1 %v3473_v42  ;;  %v3217_v42 = vrot.slane %v8830_v56, %v8814_v4  ;;  %v8039_v56 = vld [vmem:[#allocation13 + $0x4] ss:$28 sps:$4 sm:$0xff]  }
 0x506   :  { %4301 = vmatmul.mubr.bf16.vlgmr.msra.gmra.mrb[16].mxu0 %v3472_v45  ;;  %4383 = vmatmul.mubr.bf16.vlgmr.msra.gmra.mrb[20].mxu1 %v3472_v45  ;;  %v8025_v45 = vld [vmem:[#allocation8 + $0x7c0] ss:$16 sps:$4 sm:$0xff]  }
 0x507   :  { %4310 = vmatpush1.bf16.msra.mxu0 %v7941_v43  ;;  %4392 = vmatpush1.bf16.msra.mxu1 %v7944_v44  ;;  %v8027_v43 = vld [vmem:[#allocation8 + $0x7c4] ss:$16 sps:$4 sm:$0xff]   ;;  %v8030_v44 = vld [vmem:[#allocation8 + $0x7cc] ss:$16 sps:$4 sm:$0xff]  }
 0x508   :  { %4341 = vmatprep.mubr.bf16.mxu0 %v3475_v47  ;;  %4423 = vmatprep.mubr.bf16.mxu1 %v3475_v47  ;;  %v8033_v47 = vld [vmem:[#allocation8 + $0x7e4] ss:$16 sps:$4 sm:$0xff]  }
 0x509   :  { %4311 = vmatprep.subr.bf16.mxu0 %v7949_v0  ;;  %4393 = vmatprep.subr.bf16.mxu1 %v7952_v46  ;;  %v8028_v0 = vld [vmem:[#allocation8 + $0x7c8] ss:$16 sps:$4 sm:$0xff]   ;;  %v3462_v46 = vadd.f32 %v8838_v29, %v3217_v42  ;;  %v8106_v42 = vld [vmem:[#allocation13 + $0x270] ss:$28 sps:$4 sm:$0xff]  }
 0x50a   :  { %v8045_v29 = vld [vmem:[#allocation13 + $0x3c] ss:$28 sps:$4 sm:$0xff]  }
 0x50b   :  { %4312 = vmatpush1.bf16.msra.mxu0 %v7947_v48  ;;  %4394 = vmatpush1.bf16.msra.mxu1 %v7950_v49  ;;  %v8036_v48 = vld [vmem:[#allocation8 + $0x7ec] ss:$16 sps:$4 sm:$0xff]   ;;  %v8031_v49 = vld [vmem:[#allocation8 + $0x7e0] ss:$16 sps:$4 sm:$0xff]  }
 0x50c   :  { %4313 = vmatprep.subr.bf16.mxu0 %v7955_v50  ;;  %4395 = vmatprep.subr.bf16.mxu1 %v7958_v51  ;;  %v8034_v50 = vld [vmem:[#allocation8 + $0x7e8] ss:$16 sps:$4 sm:$0xff]   ;;  %v3470_v51 = vmax.f32 %v3462_v46, 0.0 }
 0x50d   :  { %v8117_v46 = vld [vmem:[#allocation13 + $0x2dc] ss:$28 sps:$4 sm:$0xff]  }
 0x50f   :  { %4314 = vmatpush1.bf16.msra.mxu0 %v7953_v52  ;;  %4396 = vmatpush1.bf16.msra.mxu1 %v7956_v53  ;;  %v8042_v52 = vld [vmem:[#allocation13 + $0xc] ss:$28 sps:$4 sm:$0xff]   ;;  %v8037_v53 = vld [vmem:[#allocation13] ss:$28 sps:$4 sm:$0xff]  }
 0x510   :  { %4315 = vmatprep.subr.bf16.mxu0 %v7961_v59  ;;  %4397 = vmatprep.subr.bf16.mxu1 %v7964_v60  ;;  %v8040_v59 = vld [vmem:[#allocation13 + $0x8] ss:$28 sps:$4 sm:$0xff]   ;;  %v3474_v60 = vpack.c.bf16 %v3470_v51, %v3470_v51  ;;  %v8126_v51 = vld [vmem:[#allocation13 + $0x31c] ss:$28 sps:$4 sm:$0xff]  }
 0x513   :  { %4316 = vmatpush1.bf16.msra.mxu0 %v7959_v61  ;;  %4398 = vmatpush1.bf16.msra.mxu1 %v7962_v62  ;;  %v8048_v61 = vld [vmem:[#allocation13 + $0x44] ss:$28 sps:$4 sm:$0xff]   ;;  %v8043_v62 = vld [vmem:[#allocation13 + $0x38] ss:$28 sps:$4 sm:$0xff]  }
 0x514   :  { %4317 = vmatprep.subr.bf16.mxu0 %v7967_v63  ;;  %4399 = vmatprep.subr.bf16.mxu1 %v7970_v1  ;;  %v8046_v63 = vld [vmem:[#allocation13 + $0x40] ss:$28 sps:$4 sm:$0xff]   ;;  %v8051_v1 = vld [vmem:[#allocation13 + $0x74] ss:$28 sps:$4 sm:$0xff]  }
 0x517   :  { %4318 = vmatpush1.bf16.msra.mxu0 %v7965_v2  ;;  %4400 = vmatpush1.bf16.msra.mxu1 %v7968_v3  ;;  %v8054_v2 = vld [vmem:[#allocation13 + $0x7c] ss:$28 sps:$4 sm:$0xff]   ;;  %v8049_v3 = vld [vmem:[#allocation13 + $0x70] ss:$28 sps:$4 sm:$0xff]  }
 0x518   :  { %4319 = vmatprep.subr.bf16.mxu0 %v7973_v6  ;;  %4401 = vmatprep.subr.bf16.mxu1 %v7976_v7  ;;  %v8052_v6 = vld [vmem:[#allocation13 + $0x78] ss:$28 sps:$4 sm:$0xff]   ;;  %v8057_v7 = vld [vmem:[#allocation13 + $0xac] ss:$28 sps:$4 sm:$0xff]  }
 0x51b   :  { %4320 = vmatpush1.bf16.msra.mxu0 %v7971_v9  ;;  %4402 = vmatpush1.bf16.msra.mxu1 %v7974_v11  ;;  %v8060_v9 = vld [vmem:[#allocation13 + $0xb4] ss:$28 sps:$4 sm:$0xff]   ;;  %v8055_v11 = vld [vmem:[#allocation13 + $0xa8] ss:$28 sps:$4 sm:$0xff]  }
 0x51c   :  { %4321 = vmatprep.subr.bf16.mxu0 %v7979_v12  ;;  %4403 = vmatprep.subr.bf16.mxu1 %v7982_v13  ;;  %v8058_v12 = vld [vmem:[#allocation13 + $0xb0] ss:$28 sps:$4 sm:$0xff]   ;;  %v8063_v13 = vld [vmem:[#allocation13 + $0xe4] ss:$28 sps:$4 sm:$0xff]  }
 0x51f   :  { %4322 = vmatpush1.bf16.msra.mxu0 %v7977_v14  ;;  %4404 = vmatpush1.bf16.msra.mxu1 %v7980_v15  ;;  %v8066_v14 = vld [vmem:[#allocation13 + $0xec] ss:$28 sps:$4 sm:$0xff]   ;;  %v8061_v15 = vld [vmem:[#allocation13 + $0xe0] ss:$28 sps:$4 sm:$0xff]  }
 0x520   :  { %4323 = vmatprep.subr.bf16.mxu0 %v7985_v17  ;;  %4405 = vmatprep.subr.bf16.mxu1 %v7988_v18  ;;  %v8064_v17 = vld [vmem:[#allocation13 + $0xe8] ss:$28 sps:$4 sm:$0xff]   ;;  %v8069_v18 = vld [vmem:[#allocation13 + $0x11c] ss:$28 sps:$4 sm:$0xff]  }
 0x523   :  { %4324 = vmatpush1.bf16.msra.mxu0 %v7983_v8  ;;  %4406 = vmatpush1.bf16.msra.mxu1 %v7986_v10  ;;  %v8072_v8 = vld [vmem:[#allocation13 + $0x124] ss:$28 sps:$4 sm:$0xff]   ;;  %v8067_v10 = vld [vmem:[#allocation13 + $0x118] ss:$28 sps:$4 sm:$0xff]  }
 0x524   :  { %4325 = vmatprep.subr.bf16.mxu0 %v7991_v19  ;;  %4407 = vmatprep.subr.bf16.mxu1 %v7994_v20  ;;  %v8070_v19 = vld [vmem:[#allocation13 + $0x120] ss:$28 sps:$4 sm:$0xff]   ;;  %v8075_v20 = vld [vmem:[#allocation13 + $0x154] ss:$28 sps:$4 sm:$0xff]  }
 0x527   :  { %4326 = vmatpush1.bf16.msra.mxu0 %v7989_v21  ;;  %4408 = vmatpush1.bf16.msra.mxu1 %v7992_v22  ;;  %v8078_v21 = vld [vmem:[#allocation13 + $0x15c] ss:$28 sps:$4 sm:$0xff]   ;;  %v8073_v22 = vld [vmem:[#allocation13 + $0x150] ss:$28 sps:$4 sm:$0xff]  }
 0x528   :  { %4327 = vmatprep.subr.bf16.mxu0 %v7997_v23  ;;  %4409 = vmatprep.subr.bf16.mxu1 %v8000_v24  ;;  %v8076_v23 = vld [vmem:[#allocation13 + $0x158] ss:$28 sps:$4 sm:$0xff]   ;;  %v8081_v24 = vld [vmem:[#allocation13 + $0x18c] ss:$28 sps:$4 sm:$0xff]  }
 0x52b   :  { %4328 = vmatpush1.bf16.msra.mxu0 %v7995_v25  ;;  %4410 = vmatpush1.bf16.msra.mxu1 %v7998_v54  ;;  %v8084_v25 = vld [vmem:[#allocation13 + $0x194] ss:$28 sps:$4 sm:$0xff]   ;;  %v8079_v54 = vld [vmem:[#allocation13 + $0x188] ss:$28 sps:$4 sm:$0xff]  }
 0x52c   :  { %4329 = vmatprep.subr.bf16.mxu0 %v8003_v26  ;;  %4411 = vmatprep.subr.bf16.mxu1 %v8006_v16  ;;  %v8082_v26 = vld [vmem:[#allocation13 + $0x190] ss:$28 sps:$4 sm:$0xff]   ;;  %v8087_v16 = vld [vmem:[#allocation13 + $0x1c4] ss:$28 sps:$4 sm:$0xff]  }
 0x52f   :  { %4330 = vmatpush1.bf16.msra.mxu0 %v8001_v27  ;;  %4412 = vmatpush1.bf16.msra.mxu1 %v8004_v28  ;;  %v8090_v27 = vld [vmem:[#allocation13 + $0x1cc] ss:$28 sps:$4 sm:$0xff]   ;;  %v8085_v28 = vld [vmem:[#allocation13 + $0x1c0] ss:$28 sps:$4 sm:$0xff]  }
 0x530   :  { %4331 = vmatprep.subr.bf16.mxu0 %v8009_v30  ;;  %4413 = vmatprep.subr.bf16.mxu1 %v8012_v31  ;;  %v8088_v30 = vld [vmem:[#allocation13 + $0x1c8] ss:$28 sps:$4 sm:$0xff]   ;;  %v8093_v31 = vld [vmem:[#allocation13 + $0x1fc] ss:$28 sps:$4 sm:$0xff]  }
 0x533   :  { %4332 = vmatpush1.bf16.msra.mxu0 %v8007_v32  ;;  %4414 = vmatpush1.bf16.msra.mxu1 %v8010_v33  ;;  %v8096_v32 = vld [vmem:[#allocation13 + $0x204] ss:$28 sps:$4 sm:$0xff]   ;;  %v8091_v33 = vld [vmem:[#allocation13 + $0x1f8] ss:$28 sps:$4 sm:$0xff]  }
 0x534   :  { %4333 = vmatprep.subr.bf16.mxu0 %v8015_v34  ;;  %4415 = vmatprep.subr.bf16.mxu1 %v8018_v35  ;;  %v8094_v34 = vld [vmem:[#allocation13 + $0x200] ss:$28 sps:$4 sm:$0xff]   ;;  %v8099_v35 = vld [vmem:[#allocation13 + $0x234] ss:$28 sps:$4 sm:$0xff]  }
 0x537   :  { %4334 = vmatpush1.bf16.msra.mxu0 %v8013_v36  ;;  %4416 = vmatpush1.bf16.msra.mxu1 %v8016_v37  ;;  %v8102_v36 = vld [vmem:[#allocation13 + $0x23c] ss:$28 sps:$4 sm:$0xff]   ;;  %v8097_v37 = vld [vmem:[#allocation13 + $0x230] ss:$28 sps:$4 sm:$0xff]  }
 0x538   :  { %4335 = vmatprep.subr.bf16.mxu0 %v8021_v38  ;;  %4417 = vmatprep.subr.bf16.mxu1 %v8024_v39  ;;  %v8100_v38 = vld [vmem:[#allocation13 + $0x238] ss:$28 sps:$4 sm:$0xff]   ;;  %v8105_v39 = vld [vmem:[#allocation13 + $0x26c] ss:$28 sps:$4 sm:$0xff]  }
 0x53b   :  { %4336 = vmatpush1.bf16.msra.mxu0 %v8019_v40  ;;  %4418 = vmatpush1.bf16.msra.mxu1 %v8022_v41  ;;  %v8108_v40 = vld [vmem:[#allocation13 + $0x274] ss:$28 sps:$4 sm:$0xff]   ;;  %v8103_v41 = vld [vmem:[#allocation13 + $0x268] ss:$28 sps:$4 sm:$0xff]  }
 0x53c   :  { %4337 = vmatprep.subr.bf16.mxu0 %v8027_v43  ;;  %4419 = vmatprep.subr.bf16.mxu1 %v8030_v44  ;;  %v8111_v43 = vld [vmem:[#allocation13 + $0x2a4] ss:$28 sps:$4 sm:$0xff]   ;;  %v8114_v44 = vld [vmem:[#allocation13 + $0x2ac] ss:$28 sps:$4 sm:$0xff]  }
 0x53f   :  { %4338 = vmatpush1.bf16.msra.mxu0 %v8025_v45  ;;  %4420 = vmatpush1.bf16.msra.mxu1 %v8028_v0  ;;  %v8109_v45 = vld [vmem:[#allocation13 + $0x2a0] ss:$28 sps:$4 sm:$0xff]   ;;  %v8112_v0 = vld [vmem:[#allocation13 + $0x2a8] ss:$28 sps:$4 sm:$0xff]  }
 0x540   :  { %4339 = vmatprep.subr.bf16.mxu0 %v8033_v47  ;;  %4421 = vmatprep.subr.bf16.mxu1 %v8036_v48  ;;  %v8120_v47 = vld [vmem:[#allocation13 + $0x2e4] ss:$28 sps:$4 sm:$0xff]   ;;  %v8115_v48 = vld [vmem:[#allocation13 + $0x2d8] ss:$28 sps:$4 sm:$0xff]  }
 0x543   :  { %4340 = vmatpush1.bf16.msra.mxu0 %v8031_v49  ;;  %4422 = vmatpush1.bf16.msra.mxu1 %v8034_v50  ;;  %v8118_v49 = vld [vmem:[#allocation13 + $0x2e0] ss:$28 sps:$4 sm:$0xff]   ;;  %v8123_v50 = vld [vmem:[#allocation13 + $0x314] ss:$28 sps:$4 sm:$0xff]  }
 0x544   :  { %5888 = vmatprep.subr.bf16.mxu0 %v8039_v56  ;;  %5970 = vmatprep.subr.bf16.mxu1 %v8042_v52  ;;  %v8121_v56 = vld [vmem:[#allocation13 + $0x310] ss:$28 sps:$4 sm:$0xff]   ;;  %v8124_v52 = vld [vmem:[#allocation13 + $0x318] ss:$28 sps:$4 sm:$0xff]  }
 0x546   :  { %4342 = vmatmul.mubr.bf16.vlgmr.msra.gmra.mrb[16].mxu0 %v3474_v60  ;;  %4424 = vmatmul.mubr.bf16.vlgmr.msra.gmra.mrb[20].mxu1 %v3474_v60  ;;  %v8127_v60 = vld [vmem:[#allocation13 + $0x348] ss:$28 sps:$4 sm:$0xff]  }
 0x547   :  { %5889 = vmatpush1.bf16.msra.mxu0 %v8037_v53  ;;  %5971 = vmatpush1.bf16.msra.mxu1 %v8040_v59  ;;  %v8129_v53 = vld [vmem:[#allocation13 + $0x34c] ss:$28 sps:$4 sm:$0xff]   ;;  %v8132_v59 = vld [vmem:[#allocation13 + $0x354] ss:$28 sps:$4 sm:$0xff]  }
 0x548   :  { %5890 = vmatprep.subr.bf16.mxu0 %v8045_v29  ;;  %5972 = vmatprep.subr.bf16.mxu1 %v8048_v61  ;;  %v8130_v29 = vld [vmem:[#allocation13 + $0x350] ss:$28 sps:$4 sm:$0xff]   ;;  %v8135_v61 = vld [vmem:[#allocation13 + $0x384] ss:$28 sps:$4 sm:$0xff]  }
 0x54b   :  { %5891 = vmatpush1.bf16.msra.mxu0 %v8043_v62  ;;  %5973 = vmatpush1.bf16.msra.mxu1 %v8046_v63  ;;  %v8138_v62 = vld [vmem:[#allocation13 + $0x38c] ss:$28 sps:$4 sm:$0xff]  }
 0x54c   :  { %5892 = vmatprep.subr.bf16.mxu0 %v8051_v1  ;;  %5974 = vmatprep.subr.bf16.mxu1 %v8054_v2  ;;  %v8843_v63 = vld [vmem:[#allocation14 + $0x4] ss:$8 sm:$0xf] }
 0x54d   :  { %v3611_v1 = vrot.slane %v8843_v63, %v8802_v57  ;;  %v3615_v2 = vrot.slane %v8843_v63, %v8805_v58 }
 0x54f   :  { %5893 = vmatpush1.bf16.msra.mxu0 %v8049_v3  ;;  %5975 = vmatpush1.bf16.msra.mxu1 %v8052_v6  ;;  %v3623_v3 = vrot.slane %v8843_v63, %v8817_v5 }
 0x550   :  { %5894 = vmatprep.subr.bf16.mxu0 %v8057_v7  ;;  %5976 = vmatprep.subr.bf16.mxu1 %v8060_v9 }
 0x553   :  { %5895 = vmatpush1.bf16.msra.mxu0 %v8055_v11  ;;  %5977 = vmatpush1.bf16.msra.mxu1 %v8058_v12 }
 0x554   :  { %5896 = vmatprep.subr.bf16.mxu0 %v8063_v13  ;;  %5978 = vmatprep.subr.bf16.mxu1 %v8066_v14 }
 0x557   :  { %5897 = vmatpush1.bf16.msra.mxu0 %v8061_v15  ;;  %5979 = vmatpush1.bf16.msra.mxu1 %v8064_v17 }
 0x558   :  { %5898 = vmatprep.subr.bf16.mxu0 %v8069_v18  ;;  %5980 = vmatprep.subr.bf16.mxu1 %v8072_v8 }
 0x55b   :  { %5899 = vmatpush1.bf16.msra.mxu0 %v8067_v10  ;;  %5981 = vmatpush1.bf16.msra.mxu1 %v8070_v19 }
 0x55c   :  { %5900 = vmatprep.subr.bf16.mxu0 %v8075_v20  ;;  %5982 = vmatprep.subr.bf16.mxu1 %v8078_v21 }
 0x55f   :  { %5901 = vmatpush1.bf16.msra.mxu0 %v8073_v22  ;;  %5983 = vmatpush1.bf16.msra.mxu1 %v8076_v23  ;;  %v8133_v22 = vld [vmem:[#allocation13 + $0x380] ss:$28 sps:$4 sm:$0xff]   ;;  %v8136_v23 = vld [vmem:[#allocation13 + $0x388] ss:$28 sps:$4 sm:$0xff]  }
 0x560   :  { %5902 = vmatprep.subr.bf16.mxu0 %v8081_v24  ;;  %5984 = vmatprep.subr.bf16.mxu1 %v8084_v25  ;;  %v8141_v25 = vld [vmem:[#allocation13 + $0x3bc] ss:$28 sps:$4 sm:$0xff]  }
 0x563   :  { %5903 = vmatpush1.bf16.msra.mxu0 %v8079_v54  ;;  %5985 = vmatpush1.bf16.msra.mxu1 %v8082_v26  ;;  %v8144_v54 = vld [vmem:[#allocation13 + $0x3c4] ss:$28 sps:$4 sm:$0xff]  }
 0x564   :  { %5904 = vmatprep.subr.bf16.mxu0 %v8087_v16  ;;  %5986 = vmatprep.subr.bf16.mxu1 %v8090_v27  ;;  %v8139_v16 = vld [vmem:[#allocation13 + $0x3b8] ss:$28 sps:$4 sm:$0xff]   ;;  %v8142_v27 = vld [vmem:[#allocation13 + $0x3c0] ss:$28 sps:$4 sm:$0xff]  }
 0x567   :  { %5905 = vmatpush1.bf16.msra.mxu0 %v8085_v28  ;;  %5987 = vmatpush1.bf16.msra.mxu1 %v8088_v30  ;;  %v8147_v28 = vld [vmem:[#allocation13 + $0x3f4] ss:$28 sps:$4 sm:$0xff]   ;;  %v8150_v30 = vld [vmem:[#allocation13 + $0x3fc] ss:$28 sps:$4 sm:$0xff]  }
 0x568   :  { %5906 = vmatprep.subr.bf16.mxu0 %v8093_v31  ;;  %5988 = vmatprep.subr.bf16.mxu1 %v8096_v32  ;;  %v8145_v31 = vld [vmem:[#allocation13 + $0x3f0] ss:$28 sps:$4 sm:$0xff]   ;;  %v8148_v32 = vld [vmem:[#allocation13 + $0x3f8] ss:$28 sps:$4 sm:$0xff]  }
 0x56b   :  { %5907 = vmatpush1.bf16.msra.mxu0 %v8091_v33  ;;  %5989 = vmatpush1.bf16.msra.mxu1 %v8094_v34  ;;  %v8153_v33 = vld [vmem:[#allocation13 + $0x42c] ss:$28 sps:$4 sm:$0xff]   ;;  %v8156_v34 = vld [vmem:[#allocation13 + $0x434] ss:$28 sps:$4 sm:$0xff]  }
 0x56c   :  { %5908 = vmatprep.subr.bf16.mxu0 %v8099_v35  ;;  %5990 = vmatprep.subr.bf16.mxu1 %v8102_v36  ;;  %v8151_v35 = vld [vmem:[#allocation13 + $0x428] ss:$28 sps:$4 sm:$0xff]   ;;  %v8154_v36 = vld [vmem:[#allocation13 + $0x430] ss:$28 sps:$4 sm:$0xff]  }
 0x56f   :  { %5909 = vmatpush1.bf16.msra.mxu0 %v8097_v37  ;;  %5991 = vmatpush1.bf16.msra.mxu1 %v8100_v38  ;;  %v8159_v37 = vld [vmem:[#allocation13 + $0x464] ss:$28 sps:$4 sm:$0xff]   ;;  %v8162_v38 = vld [vmem:[#allocation13 + $0x46c] ss:$28 sps:$4 sm:$0xff]  }
 0x570   :  { %5910 = vmatprep.subr.bf16.mxu0 %v8105_v39  ;;  %5992 = vmatprep.subr.bf16.mxu1 %v8108_v40  ;;  %v8157_v39 = vld [vmem:[#allocation13 + $0x460] ss:$28 sps:$4 sm:$0xff]   ;;  %v8160_v40 = vld [vmem:[#allocation13 + $0x468] ss:$28 sps:$4 sm:$0xff]  }
 0x573   :  { %5911 = vmatpush1.bf16.msra.mxu0 %v8103_v41  ;;  %5993 = vmatpush1.bf16.msra.mxu1 %v8106_v42  ;;  %v8165_v41 = vld [vmem:[#allocation13 + $0x49c] ss:$28 sps:$4 sm:$0xff]   ;;  %v8168_v42 = vld [vmem:[#allocation13 + $0x4a4] ss:$28 sps:$4 sm:$0xff]  }
 0x574   :  { %5912 = vmatprep.subr.bf16.mxu0 %v8111_v43  ;;  %5994 = vmatprep.subr.bf16.mxu1 %v8114_v44  ;;  %v8163_v43 = vld [vmem:[#allocation13 + $0x498] ss:$28 sps:$4 sm:$0xff]   ;;  %v8166_v44 = vld [vmem:[#allocation13 + $0x4a0] ss:$28 sps:$4 sm:$0xff]  }
 0x577   :  { %5913 = vmatpush1.bf16.msra.mxu0 %v8109_v45  ;;  %5995 = vmatpush1.bf16.msra.mxu1 %v8112_v0  ;;  %v8171_v45 = vld [vmem:[#allocation13 + $0x4d4] ss:$28 sps:$4 sm:$0xff]   ;;  %v8174_v0 = vld [vmem:[#allocation13 + $0x4dc] ss:$28 sps:$4 sm:$0xff]  }
 0x578   :  { %5914 = vmatprep.subr.bf16.mxu0 %v8117_v46  ;;  %5996 = vmatprep.subr.bf16.mxu1 %v8120_v47  ;;  %v8169_v46 = vld [vmem:[#allocation13 + $0x4d0] ss:$28 sps:$4 sm:$0xff]   ;;  %v8172_v47 = vld [vmem:[#allocation13 + $0x4d8] ss:$28 sps:$4 sm:$0xff]  }
 0x57b   :  { %5915 = vmatpush1.bf16.msra.mxu0 %v8115_v48  ;;  %5997 = vmatpush1.bf16.msra.mxu1 %v8118_v49  ;;  %v8177_v48 = vld [vmem:[#allocation13 + $0x50c] ss:$28 sps:$4 sm:$0xff]   ;;  %v8180_v49 = vld [vmem:[#allocation13 + $0x514] ss:$28 sps:$4 sm:$0xff]  }
 0x57c   :  { %5916 = vmatprep.subr.bf16.mxu0 %v8123_v50  ;;  %5998 = vmatprep.subr.bf16.mxu1 %v8126_v51  ;;  %v8175_v50 = vld [vmem:[#allocation13 + $0x508] ss:$28 sps:$4 sm:$0xff]   ;;  %v8178_v51 = vld [vmem:[#allocation13 + $0x510] ss:$28 sps:$4 sm:$0xff]  }
 0x57f   :  { %5917 = vmatpush1.bf16.msra.mxu0 %v8121_v56  ;;  %5999 = vmatpush1.bf16.msra.mxu1 %v8124_v52  ;;  %v8183_v56 = vld [vmem:[#allocation13 + $0x544] ss:$28 sps:$4 sm:$0xff]   ;;  %v8186_v52 = vld [vmem:[#allocation13 + $0x54c] ss:$28 sps:$4 sm:$0xff]  }
 0x580   :  { %5918 = vmatprep.subr.bf16.mxu0 %v8129_v53  ;;  %6000 = vmatprep.subr.bf16.mxu1 %v8132_v59  ;;  %v8181_v53 = vld [vmem:[#allocation13 + $0x540] ss:$28 sps:$4 sm:$0xff]   ;;  %v8184_v59 = vld [vmem:[#allocation13 + $0x548] ss:$28 sps:$4 sm:$0xff]  }
 0x583   :  { %5919 = vmatpush1.bf16.msra.mxu0 %v8127_v60  ;;  %6001 = vmatpush1.bf16.msra.mxu1 %v8130_v29  ;;  %v8189_v60 = vld [vmem:[#allocation13 + $0x57c] ss:$28 sps:$4 sm:$0xff]   ;;  %v8192_v29 = vld [vmem:[#allocation13 + $0x584] ss:$28 sps:$4 sm:$0xff]  }
 0x584   :  { %5929 = vmatprep.subr.bf16.mxu0 %v8135_v61  ;;  %6011 = vmatprep.subr.bf16.mxu1 %v8138_v62  ;;  %v8187_v61 = vld [vmem:[#allocation13 + $0x578] ss:$28 sps:$4 sm:$0xff]   ;;  %v8190_v62 = vld [vmem:[#allocation13 + $0x580] ss:$28 sps:$4 sm:$0xff]  }
 0x619   :  { %v4343_v6 = vpop.f32.mrb[16].mxu0  ;;  %v8851_v7 = vpop.f32.mrb[20].mxu1 }
 0x61a   :  { %v7156_v9 = vadd.f32 %v4343_v6, %v3611_v1  ;;  %v4345_v11 = vpop.f32.mrb[17].mxu0  ;;  %v4427_v12 = vpop.f32.mrb[21].mxu1  ;;  %v8195_v1 = vld [vmem:[#allocation13 + $0x5b4] ss:$28 sps:$4 sm:$0xff]  }
 0x61b   :  { %v7157_v13 = vadd.f32 %v4345_v11, %v3615_v2  ;;  %v7159_v14 = vadd.f32 %v4427_v12, %v3623_v3  ;;  %v4347_v15 = vpop.f32.mrb[18].mxu0  ;;  %v4429_v17 = vpop.f32.mrb[22].mxu1  ;;  %v8198_v2 = vld [vmem:[#allocation13 + $0x5bc] ss:$28 sps:$4 sm:$0xff]   ;;  %v8193_v3 = vld [vmem:[#allocation13 + $0x5b0] ss:$28 sps:$4 sm:$0xff]  }
 0x61c   :  { %v4432_v18 = vmax.f32 %v7156_v9, 0.0  ;;  %v4348_v8 = vpop.f32.mrb[19].mxu0  ;;  %v4430_v10 = vpop.f32.mrb[23].mxu1  ;;  %v8196_v6 = vld [vmem:[#allocation13 + $0x5b8] ss:$28 sps:$4 sm:$0xff]  }
 0x61d   :  { %v4433_v19 = vmax.f32 %v7157_v13, 0.0  ;;  %v4435_v20 = vmax.f32 %v7159_v14, 0.0  ;;  %v8201_v9 = vld [vmem:[#allocation13 + $0x5ec] ss:$28 sps:$4 sm:$0xff]   ;;  %v8204_v11 = vld [vmem:[#allocation13 + $0x5f4] ss:$28 sps:$4 sm:$0xff]  }
 0x61e   :  { %v8855_v24 = vpack.c.bf16 %v4432_v18, %v4432_v18  ;;  %v8199_v12 = vld [vmem:[#allocation13 + $0x5e8] ss:$28 sps:$4 sm:$0xff]   ;;  %v8202_v13 = vld [vmem:[#allocation13 + $0x5f0] ss:$28 sps:$4 sm:$0xff]   ;;  %v8205_v17 = vld [vmem:[#allocation13 + $0x620] ss:$28 sps:$4 sm:$0xff]  }
 0x61f   :  { %v8853_v21 = vpack.c.bf16 %v4433_v19, %v4433_v19  ;;  %v8859_v26 = vpack.c.bf16 %v4435_v20, %v4435_v20  ;;  %v8207_v14 = vld [vmem:[#allocation13 + $0x624] ss:$28 sps:$4 sm:$0xff]   ;;  %v8210_v15 = vld [vmem:[#allocation13 + $0x62c] ss:$28 sps:$4 sm:$0xff]   ;;  %v8213_v8 = vld [vmem:[#allocation13 + $0x65c] ss:$28 sps:$4 sm:$0xff]  }
 0x620   :  { %v8208_v18 = vld [vmem:[#allocation13 + $0x628] ss:$28 sps:$4 sm:$0xff]   ;;  %v8211_v19 = vld [vmem:[#allocation13 + $0x658] ss:$28 sps:$4 sm:$0xff]   ;;  %v8214_v20 = vld [vmem:[#allocation13 + $0x660] ss:$28 sps:$4 sm:$0xff]  }
 0x621   :  { %5920 = vmatprep.mubr.bf16.mxu0 %v8853_v21  ;;  %6002 = vmatprep.mubr.bf16.mxu1 %v8853_v21  ;;  %v8216_v10 = vld [vmem:[#allocation13 + $0x664] ss:$28 sps:$4 sm:$0xff]  }
 0x622   :  { %5921 = vmatmul.mubr.bf16.vlgmr.msra.gmra.mrb[20].mxu0 %v8855_v24  ;;  %6003 = vmatmul.mubr.bf16.vlgmr.msra.gmra.mrb[24].mxu1 %v8855_v24 }
 0x623   :  { %5930 = vmatpush1.bf16.msra.mxu0 %v8133_v22  ;;  %6012 = vmatpush1.bf16.msra.mxu1 %v8136_v23  ;;  %v3619_v22 = vrot.slane %v8843_v63, %v8814_v4  ;;  %v8219_v23 = vld [vmem:[#allocation13 + $0x694] ss:$28 sps:$4 sm:$0xff]  }
 0x624   :  { %5961 = vmatprep.mubr.bf16.mxu0 %v8859_v26  ;;  %6043 = vmatprep.mubr.bf16.mxu1 %v8859_v26  ;;  %v8231_v63 = vld [vmem:[#allocation13 + $0x14] ss:$28 sps:$4 sm:$0xff]  }
 0x625   :  { %5931 = vmatprep.subr.bf16.mxu0 %v8141_v25  ;;  %6013 = vmatprep.subr.bf16.mxu1 %v8144_v54  ;;  %v8222_v25 = vld [vmem:[#allocation13 + $0x69c] ss:$28 sps:$4 sm:$0xff]   ;;  %v8217_v54 = vld [vmem:[#allocation13 + $0x690] ss:$28 sps:$4 sm:$0xff]  }
 0x627   :  { %5932 = vmatpush1.bf16.msra.mxu0 %v8139_v16  ;;  %6014 = vmatpush1.bf16.msra.mxu1 %v8142_v27  ;;  %v8220_v16 = vld [vmem:[#allocation13 + $0x698] ss:$28 sps:$4 sm:$0xff]   ;;  %v7158_v27 = vadd.f32 %v8851_v7, %v3619_v22  ;;  %v8287_v22 = vld [vmem:[#allocation13 + $0x600] ss:$28 sps:$4 sm:$0xff]  }
 0x628   :  { %5933 = vmatprep.subr.bf16.mxu0 %v8147_v28  ;;  %6015 = vmatprep.subr.bf16.mxu1 %v8150_v30  ;;  %v8225_v28 = vld [vmem:[#allocation13 + $0x6cc] ss:$28 sps:$4 sm:$0xff]   ;;  %v8228_v30 = vld [vmem:[#allocation13 + $0x6d4] ss:$28 sps:$4 sm:$0xff]  }
 0x629   :  { %v8233_v7 = vld [vmem:[#allocation13 + $0x18] ss:$28 sps:$4 sm:$0xff]  }
 0x62b   :  { %5934 = vmatpush1.bf16.msra.mxu0 %v8145_v31  ;;  %6016 = vmatpush1.bf16.msra.mxu1 %v8148_v32  ;;  %v8223_v31 = vld [vmem:[#allocation13 + $0x6c8] ss:$28 sps:$4 sm:$0xff]   ;;  %v8226_v32 = vld [vmem:[#allocation13 + $0x6d0] ss:$28 sps:$4 sm:$0xff]  }
 0x62c   :  { %5935 = vmatprep.subr.bf16.mxu0 %v8153_v33  ;;  %6017 = vmatprep.subr.bf16.mxu1 %v8156_v34  ;;  %v4434_v33 = vmax.f32 %v7158_v27, 0.0  ;;  %v8232_v34 = vld [vmem:[#allocation13 + $0x1d8] ss:$28 sps:$4 sm:$0xff]   ;;  %v8289_v27 = vld [vmem:[#allocation13 + $0x2b0] ss:$28 sps:$4 sm:$0xff]  }
 0x62f   :  { %5936 = vmatpush1.bf16.msra.mxu0 %v8151_v35  ;;  %6018 = vmatpush1.bf16.msra.mxu1 %v8154_v36  ;;  %v8229_v35 = vld [vmem:[#allocation13 + $0x10] ss:$28 sps:$4 sm:$0xff]   ;;  %v8868_v36 = vpack.c.bf16 %v4434_v33, %v4434_v33 }
 0x630   :  { %5937 = vmatprep.subr.bf16.mxu0 %v8159_v37  ;;  %6019 = vmatprep.subr.bf16.mxu1 %v8162_v38  ;;  %v8236_v37 = vld [vmem:[#allocation13 + $0x4c] ss:$28 sps:$4 sm:$0xff]  }
 0x631   :  { %v8237_v38 = vld [vmem:[#allocation13 + $0x210] ss:$28 sps:$4 sm:$0xff]  }
 0x632   :  { %v8298_v33 = vld [vmem:[#allocation13 + $0x4b0] ss:$28 sps:$4 sm:$0xff]  }
 0x633   :  { %5938 = vmatpush1.bf16.msra.mxu0 %v8157_v39  ;;  %6020 = vmatpush1.bf16.msra.mxu1 %v8160_v40  ;;  %v8234_v39 = vld [vmem:[#allocation13 + $0x48] ss:$28 sps:$4 sm:$0xff]   ;;  %v8238_v40 = vld [vmem:[#allocation13 + $0x50] ss:$28 sps:$4 sm:$0xff]  }
 0x634   :  { %5939 = vmatprep.subr.bf16.mxu0 %v8165_v41  ;;  %6021 = vmatprep.subr.bf16.mxu1 %v8168_v42  ;;  %v8241_v41 = vld [vmem:[#allocation13 + $0x84] ss:$28 sps:$4 sm:$0xff]  }
 0x635   :  { %v8242_v42 = vld [vmem:[#allocation13 + $0x248] ss:$28 sps:$4 sm:$0xff]  }
 0x637   :  { %5940 = vmatpush1.bf16.msra.mxu0 %v8163_v43  ;;  %6022 = vmatpush1.bf16.msra.mxu1 %v8166_v44  ;;  %v8239_v43 = vld [vmem:[#allocation13 + $0x80] ss:$28 sps:$4 sm:$0xff]   ;;  %v8243_v44 = vld [vmem:[#allocation13 + $0x88] ss:$28 sps:$4 sm:$0xff]  }
 0x638   :  { %5941 = vmatprep.subr.bf16.mxu0 %v8171_v45  ;;  %6023 = vmatprep.subr.bf16.mxu1 %v8174_v0  ;;  %v8246_v45 = vld [vmem:[#allocation13 + $0xbc] ss:$28 sps:$4 sm:$0xff]  }
 0x639   :  { %v8247_v0 = vld [vmem:[#allocation13 + $0x280] ss:$28 sps:$4 sm:$0xff]  }
 0x63b   :  { %5942 = vmatpush1.bf16.msra.mxu0 %v8169_v46  ;;  %6024 = vmatpush1.bf16.msra.mxu1 %v8172_v47  ;;  %v8244_v46 = vld [vmem:[#allocation13 + $0xb8] ss:$28 sps:$4 sm:$0xff]   ;;  %v8248_v47 = vld [vmem:[#allocation13 + $0xc0] ss:$28 sps:$4 sm:$0xff]  }
 0x63c   :  { %5943 = vmatprep.subr.bf16.mxu0 %v8177_v48  ;;  %6025 = vmatprep.subr.bf16.mxu1 %v8180_v49  ;;  %v8251_v48 = vld [vmem:[#allocation13 + $0xf4] ss:$28 sps:$4 sm:$0xff]  }
 0x63d   :  { %v8249_v49 = vld [vmem:[#allocation13 + $0xf0] ss:$28 sps:$4 sm:$0xff]  }
 0x63f   :  { %5944 = vmatpush1.bf16.msra.mxu0 %v8175_v50  ;;  %6026 = vmatpush1.bf16.msra.mxu1 %v8178_v51  ;;  %v8253_v50 = vld [vmem:[#allocation13 + $0xf8] ss:$28 sps:$4 sm:$0xff]   ;;  %v8256_v51 = vld [vmem:[#allocation13 + $0x12c] ss:$28 sps:$4 sm:$0xff]  }
 0x640   :  { %5945 = vmatprep.subr.bf16.mxu0 %v8183_v56  ;;  %6027 = vmatprep.subr.bf16.mxu1 %v8186_v52  ;;  %v8257_v56 = vld [vmem:[#allocation13 + $0x2f0] ss:$28 sps:$4 sm:$0xff]   ;;  %v8254_v52 = vld [vmem:[#allocation13 + $0x128] ss:$28 sps:$4 sm:$0xff]  }
 0x643   :  { %5946 = vmatpush1.bf16.msra.mxu0 %v8181_v53  ;;  %6028 = vmatpush1.bf16.msra.mxu1 %v8184_v59  ;;  %v8258_v53 = vld [vmem:[#allocation13 + $0x130] ss:$28 sps:$4 sm:$0xff]   ;;  %v8261_v59 = vld [vmem:[#allocation13 + $0x164] ss:$28 sps:$4 sm:$0xff]  }
 0x644   :  { %5947 = vmatprep.subr.bf16.mxu0 %v8189_v60  ;;  %6029 = vmatprep.subr.bf16.mxu1 %v8192_v29  ;;  %v8262_v60 = vld [vmem:[#allocation13 + $0x328] ss:$28 sps:$4 sm:$0xff]   ;;  %v8259_v29 = vld [vmem:[#allocation13 + $0x160] ss:$28 sps:$4 sm:$0xff]  }
 0x647   :  { %5948 = vmatpush1.bf16.msra.mxu0 %v8187_v61  ;;  %6030 = vmatpush1.bf16.msra.mxu1 %v8190_v62  ;;  %v8263_v61 = vld [vmem:[#allocation13 + $0x168] ss:$28 sps:$4 sm:$0xff]   ;;  %v8266_v62 = vld [vmem:[#allocation13 + $0x19c] ss:$28 sps:$4 sm:$0xff]  }
 0x648   :  { %5949 = vmatprep.subr.bf16.mxu0 %v8195_v1  ;;  %6031 = vmatprep.subr.bf16.mxu1 %v8198_v2  ;;  %v8267_v1 = vld [vmem:[#allocation13 + $0x360] ss:$28 sps:$4 sm:$0xff]   ;;  %v8264_v2 = vld [vmem:[#allocation13 + $0x198] ss:$28 sps:$4 sm:$0xff]  }
 0x64b   :  { %5950 = vmatpush1.bf16.msra.mxu0 %v8193_v3  ;;  %6032 = vmatpush1.bf16.msra.mxu1 %v8196_v6  ;;  %v8268_v3 = vld [vmem:[#allocation13 + $0x1a0] ss:$28 sps:$4 sm:$0xff]   ;;  %v8271_v6 = vld [vmem:[#allocation13 + $0x1d4] ss:$28 sps:$4 sm:$0xff]  }
 0x64c   :  { %5951 = vmatprep.subr.bf16.mxu0 %v8201_v9  ;;  %6033 = vmatprep.subr.bf16.mxu1 %v8204_v11  ;;  %v8272_v9 = vld [vmem:[#allocation13 + $0x558] ss:$28 sps:$4 sm:$0xff]   ;;  %v8269_v11 = vld [vmem:[#allocation13 + $0x1d0] ss:$28 sps:$4 sm:$0xff]  }
 0x64f   :  { %5952 = vmatpush1.bf16.msra.mxu0 %v8199_v12  ;;  %6034 = vmatpush1.bf16.msra.mxu1 %v8202_v13  ;;  %v8273_v12 = vld [vmem:[#allocation13 + $0x398] ss:$28 sps:$4 sm:$0xff]   ;;  %v8276_v13 = vld [vmem:[#allocation13 + $0x20c] ss:$28 sps:$4 sm:$0xff]  }
 0x650   :  { %5953 = vmatprep.subr.bf16.mxu0 %v8207_v14  ;;  %6035 = vmatprep.subr.bf16.mxu1 %v8210_v15  ;;  %v8277_v14 = vld [vmem:[#allocation13 + $0x590] ss:$28 sps:$4 sm:$0xff]   ;;  %v8274_v15 = vld [vmem:[#allocation13 + $0x208] ss:$28 sps:$4 sm:$0xff]  }
 0x653   :  { %5954 = vmatpush1.bf16.msra.mxu0 %v8205_v17  ;;  %6036 = vmatpush1.bf16.msra.mxu1 %v8208_v18  ;;  %v8278_v17 = vld [vmem:[#allocation13 + $0x3d0] ss:$28 sps:$4 sm:$0xff]   ;;  %v8281_v18 = vld [vmem:[#allocation13 + $0x244] ss:$28 sps:$4 sm:$0xff]  }
 0x654   :  { %5955 = vmatprep.subr.bf16.mxu0 %v8213_v8  ;;  %6037 = vmatprep.subr.bf16.mxu1 %v8216_v10  ;;  %v8282_v8 = vld [vmem:[#allocation13 + $0x5c8] ss:$28 sps:$4 sm:$0xff]   ;;  %v8279_v10 = vld [vmem:[#allocation13 + $0x240] ss:$28 sps:$4 sm:$0xff]  }
 0x657   :  { %5956 = vmatpush1.bf16.msra.mxu0 %v8211_v19  ;;  %6038 = vmatpush1.bf16.msra.mxu1 %v8214_v20  ;;  %v8283_v19 = vld [vmem:[#allocation13 + $0x408] ss:$28 sps:$4 sm:$0xff]   ;;  %v8286_v20 = vld [vmem:[#allocation13 + $0x27c] ss:$28 sps:$4 sm:$0xff]  }
 0x658   :  { %5957 = vmatprep.subr.bf16.mxu0 %v8219_v23  ;;  %6039 = vmatprep.subr.bf16.mxu1 %v8222_v25  ;;  %v8284_v23 = vld [vmem:[#allocation13 + $0x278] ss:$28 sps:$4 sm:$0xff]   ;;  %v8288_v25 = vld [vmem:[#allocation13 + $0x440] ss:$28 sps:$4 sm:$0xff]  }
 0x65b   :  { %5958 = vmatpush1.bf16.msra.mxu0 %v8217_v54  ;;  %6040 = vmatpush1.bf16.msra.mxu1 %v8220_v16  ;;  %v8291_v54 = vld [vmem:[#allocation13 + $0x2b4] ss:$28 sps:$4 sm:$0xff]  }
 0x65c   :  { %5959 = vmatprep.subr.bf16.mxu0 %v8225_v28  ;;  %6041 = vmatprep.subr.bf16.mxu1 %v8228_v30  ;;  %v8292_v16 = vld [vmem:[#allocation13 + $0x638] ss:$28 sps:$4 sm:$0xff]   ;;  %v8296_v30 = vld [vmem:[#allocation13 + $0x2ec] ss:$28 sps:$4 sm:$0xff]  }
 0x65d   :  { %v8293_v28 = vld [vmem:[#allocation13 + $0x478] ss:$28 sps:$4 sm:$0xff]  }
 0x65f   :  { %5960 = vmatpush1.bf16.msra.mxu0 %v8223_v31  ;;  %6042 = vmatpush1.bf16.msra.mxu1 %v8226_v32  ;;  %v8297_v31 = vld [vmem:[#allocation13 + $0x670] ss:$28 sps:$4 sm:$0xff]   ;;  %v8294_v32 = vld [vmem:[#allocation13 + $0x2e8] ss:$28 sps:$4 sm:$0xff]  }
 0x660   :  { %6052 = vmatprep.subr.bf16.mxu0 %v8231_v63  ;;  %7102 = vmatprep.subr.bf16.mxu1 %v8232_v34  ;;  %v8301_v63 = vld [vmem:[#allocation13 + $0x324] ss:$28 sps:$4 sm:$0xff]  }
 0x661   :  { %v8302_v34 = vld [vmem:[#allocation13 + $0x6a8] ss:$28 sps:$4 sm:$0xff]  }
 0x662   :  { %5962 = vmatmul.mubr.bf16.vlgmr.msra.gmra.mrb[20].mxu0 %v8868_v36  ;;  %6044 = vmatmul.mubr.bf16.vlgmr.msra.gmra.mrb[24].mxu1 %v8868_v36 }
 0x663   :  { %6053 = vmatpush1.bf16.msra.mxu0 %v8229_v35  ;;  %6084 = vmatprep.mubr.bf16.mxu0 %v8853_v21  ;;  %v8299_v35 = vld [vmem:[#allocation13 + $0x320] ss:$28 sps:$4 sm:$0xff]  }
 0x664   :  { %7103 = vmatpush3.bf16.msra.mxu1 %v8233_v7  ;;  %6166 = vmatprep.mubr.bf16.mxu1 %v8853_v21  ;;  %v8252_v21 = vld [vmem:[#allocation13 + $0x2b8] ss:$28 sps:$4 sm:$0xff]   ;;  %v8303_v7 = vld [vmem:[#allocation13 + $0x4e8] ss:$28 sps:$4 sm:$0xff]  }
 0x665   :  { %6054 = vmatprep.subr.bf16.mxu0 %v8236_v37  ;;  %7104 = vmatprep.subr.bf16.mxu1 %v8237_v38  ;;  %v8306_v37 = vld [vmem:[#allocation13 + $0x35c] ss:$28 sps:$4 sm:$0xff]  }
 0x666   :  { %v8307_v38 = vld [vmem:[#allocation13 + $0x6e0] ss:$28 sps:$4 sm:$0xff]  }
 0x667   :  { %6055 = vmatpush1.bf16.msra.mxu0 %v8234_v39  ;;  %v8304_v39 = vld [vmem:[#allocation13 + $0x358] ss:$28 sps:$4 sm:$0xff]  }
 0x668   :  { %7105 = vmatpush3.bf16.msra.mxu1 %v8238_v40  ;;  %6056 = vmatprep.subr.bf16.mxu0 %v8241_v41  ;;  %v8308_v40 = vld [vmem:[#allocation13 + $0x520] ss:$28 sps:$4 sm:$0xff]   ;;  %v8311_v41 = vld [vmem:[#allocation13 + $0x394] ss:$28 sps:$4 sm:$0xff]  }
 0x669   :  { %7106 = vmatprep.subr.bf16.mxu1 %v8242_v42  ;;  %v8309_v42 = vld [vmem:[#allocation13 + $0x390] ss:$28 sps:$4 sm:$0xff]  }
 0x66b   :  { %6057 = vmatpush1.bf16.msra.mxu0 %v8239_v43  ;;  %v8314_v43 = vld [vmem:[#allocation13 + $0x3cc] ss:$28 sps:$4 sm:$0xff]  }
 0x66c   :  { %7107 = vmatpush3.bf16.msra.mxu1 %v8243_v44  ;;  %6058 = vmatprep.subr.bf16.mxu0 %v8246_v45  ;;  %v8312_v44 = vld [vmem:[#allocation13 + $0x3c8] ss:$28 sps:$4 sm:$0xff]  }
 0x66d   :  { %7108 = vmatprep.subr.bf16.mxu1 %v8247_v0  ;;  %v8317_v45 = vld [vmem:[#allocation13 + $0x404] ss:$28 sps:$4 sm:$0xff]  }
 0x66e   :  { %v8315_v0 = vld [vmem:[#allocation13 + $0x400] ss:$28 sps:$4 sm:$0xff]  }
 0x66f   :  { %6059 = vmatpush1.bf16.msra.mxu0 %v8244_v46  ;;  %v8320_v46 = vld [vmem:[#allocation13 + $0x43c] ss:$28 sps:$4 sm:$0xff]  }
 0x670   :  { %7109 = vmatpush3.bf16.msra.mxu1 %v8248_v47  ;;  %6060 = vmatprep.subr.bf16.mxu0 %v8251_v48  ;;  %v8318_v47 = vld [vmem:[#allocation13 + $0x438] ss:$28 sps:$4 sm:$0xff]  }
 0x671   :  { %7110 = vmatprep.subr.bf16.mxu1 %v8252_v21  ;;  %v8323_v48 = vld [vmem:[#allocation13 + $0x474] ss:$28 sps:$4 sm:$0xff]  }
 0x672   :  { %v8321_v21 = vld [vmem:[#allocation13 + $0x470] ss:$28 sps:$4 sm:$0xff]  }
 0x673   :  { %6061 = vmatpush1.bf16.msra.mxu0 %v8249_v49  ;;  %v8324_v49 = vld [vmem:[#allocation13 + $0x4a8] ss:$28 sps:$4 sm:$0xff]  }
 0x674   :  { %7111 = vmatpush3.bf16.msra.mxu1 %v8253_v50  ;;  %6062 = vmatprep.subr.bf16.mxu0 %v8256_v51  ;;  %v8329_v50 = vld [vmem:[#allocation13 + $0x4e4] ss:$28 sps:$4 sm:$0xff]   ;;  %v8332_v51 = vld [vmem:[#allocation13 + $0x51c] ss:$28 sps:$4 sm:$0xff]  }
 0x675   :  { %7112 = vmatprep.subr.bf16.mxu1 %v8257_v56  ;;  %v8330_v56 = vld [vmem:[#allocation13 + $0x518] ss:$28 sps:$4 sm:$0xff]  }
 0x677   :  { %6063 = vmatpush1.bf16.msra.mxu0 %v8254_v52  ;;  %v8335_v52 = vld [vmem:[#allocation13 + $0x554] ss:$28 sps:$4 sm:$0xff]  }
 0x678   :  { %7113 = vmatpush3.bf16.msra.mxu1 %v8258_v53  ;;  %6064 = vmatprep.subr.bf16.mxu0 %v8261_v59  ;;  %v8333_v53 = vld [vmem:[#allocation13 + $0x550] ss:$28 sps:$4 sm:$0xff]  }
 0x679   :  { %7114 = vmatprep.subr.bf16.mxu1 %v8262_v60  ;;  %v8338_v59 = vld [vmem:[#allocation13 + $0x58c] ss:$28 sps:$4 sm:$0xff]  }
 0x67a   :  { %v8336_v60 = vld [vmem:[#allocation13 + $0x588] ss:$28 sps:$4 sm:$0xff]  }
 0x67b   :  { %6065 = vmatpush1.bf16.msra.mxu0 %v8259_v29  ;;  %v8341_v29 = vld [vmem:[#allocation13 + $0x5c4] ss:$28 sps:$4 sm:$0xff]  }
 0x67c   :  { %7115 = vmatpush3.bf16.msra.mxu1 %v8263_v61  ;;  %6066 = vmatprep.subr.bf16.mxu0 %v8266_v62  ;;  %v8339_v61 = vld [vmem:[#allocation13 + $0x5c0] ss:$28 sps:$4 sm:$0xff]  }
 0x67d   :  { %7116 = vmatprep.subr.bf16.mxu1 %v8267_v1  ;;  %v8344_v62 = vld [vmem:[#allocation13 + $0x5fc] ss:$28 sps:$4 sm:$0xff]  }
 0x67e   :  { %v8342_v1 = vld [vmem:[#allocation13 + $0x5f8] ss:$28 sps:$4 sm:$0xff]  }
 0x67f   :  { %6067 = vmatpush1.bf16.msra.mxu0 %v8264_v2  ;;  %v8347_v2 = vld [vmem:[#allocation13 + $0x634] ss:$28 sps:$4 sm:$0xff]  }
 0x680   :  { %7117 = vmatpush3.bf16.msra.mxu1 %v8268_v3  ;;  %6068 = vmatprep.subr.bf16.mxu0 %v8271_v6  ;;  %v8345_v3 = vld [vmem:[#allocation13 + $0x630] ss:$28 sps:$4 sm:$0xff]  }
 0x681   :  { %7124 = vmatprep.subr.bf16.mxu1 %v8272_v9  ;;  %v8350_v6 = vld [vmem:[#allocation13 + $0x66c] ss:$28 sps:$4 sm:$0xff]  }
 0x682   :  { %v8348_v9 = vld [vmem:[#allocation13 + $0x668] ss:$28 sps:$4 sm:$0xff]  }
 0x683   :  { %6167 = vmatmul.mubr.bf16.vlgmr.msra.gmra.mrb[28].mxu1 %v8855_v24  ;;  %6069 = vmatpush1.bf16.msra.mxu0 %v8269_v11  ;;  %v8353_v11 = vld [vmem:[#allocation13 + $0x6a4] ss:$28 sps:$4 sm:$0xff]  }
 0x684   :  { %7125 = vmatpush3.bf16.msra.mxu1 %v8273_v12  ;;  %6206 = vmatprep.mubr.bf16.mxu1 %v8859_v26  ;;  %v8351_v12 = vld [vmem:[#allocation13 + $0x6a0] ss:$28 sps:$4 sm:$0xff]  }
 0x685   :  { %6070 = vmatprep.subr.bf16.mxu0 %v8276_v13  ;;  %7126 = vmatprep.subr.bf16.mxu1 %v8277_v14  ;;  %v8356_v13 = vld [vmem:[#allocation13 + $0x6dc] ss:$28 sps:$4 sm:$0xff]  }
 0x686   :  { %v8354_v14 = vld [vmem:[#allocation13 + $0x6d8] ss:$28 sps:$4 sm:$0xff]  }
 0x687   :  { %6071 = vmatpush1.bf16.msra.mxu0 %v8274_v15  ;;  %v4697_v15 = vld [vmem:[#allocation14 + $0x5] ss:$8 sm:$0xf] }
 0x688   :  { %7127 = vmatpush3.bf16.msra.mxu1 %v8278_v17  ;;  %6072 = vmatprep.subr.bf16.mxu0 %v8281_v18  ;;  %v4698_v17 = vld [vmem:[#allocation14 + $0x5] ss:$8 sm:$0xf0] }
 0x689   :  { %7128 = vmatprep.subr.bf16.mxu1 %v8282_v8  ;;  %v8880_v18 = vor.u32 %v4698_v17, %v4697_v15 }
 0x68b   :  { %6073 = vmatpush1.bf16.msra.mxu0 %v8279_v10  ;;  %v4704_v8 = vrot.slane %v8880_v18, %v8802_v57  ;;  %v4712_v10 = vrot.slane %v8880_v18, %v8814_v4 }
 0x68c   :  { %7129 = vmatpush3.bf16.msra.mxu1 %v8283_v19  ;;  %6074 = vmatprep.subr.bf16.mxu0 %v8286_v20  ;;  %v4708_v19 = vrot.slane %v8880_v18, %v8805_v58  ;;  %v4716_v20 = vrot.slane %v8880_v18, %v8817_v5 }
 0x68d   :  { %7130 = vmatprep.subr.bf16.mxu1 %v8287_v22 }
 0x68f   :  { %6075 = vmatpush1.bf16.msra.mxu0 %v8284_v23 }
 0x690   :  { %7131 = vmatpush3.bf16.msra.mxu1 %v8288_v25  ;;  %6076 = vmatprep.subr.bf16.mxu0 %v8291_v54 }
 0x691   :  { %7132 = vmatprep.subr.bf16.mxu1 %v8292_v16 }
 0x693   :  { %6077 = vmatpush1.bf16.msra.mxu0 %v8289_v27 }
 0x694   :  { %7133 = vmatpush3.bf16.msra.mxu1 %v8293_v28  ;;  %6078 = vmatprep.subr.bf16.mxu0 %v8296_v30 }
 0x695   :  { %7134 = vmatprep.subr.bf16.mxu1 %v8297_v31 }
 0x697   :  { %6079 = vmatpush1.bf16.msra.mxu0 %v8294_v32 }
 0x698   :  { %7135 = vmatpush3.bf16.msra.mxu1 %v8298_v33  ;;  %6080 = vmatprep.subr.bf16.mxu0 %v8301_v63 }
 0x699   :  { %7136 = vmatprep.subr.bf16.mxu1 %v8302_v34 }
 0x69b   :  { %6081 = vmatpush1.bf16.msra.mxu0 %v8299_v35 }
 0x69c   :  { %7137 = vmatpush3.bf16.msra.mxu1 %v8303_v7  ;;  %6082 = vmatprep.subr.bf16.mxu0 %v8306_v37 }
 0x69d   :  { %7138 = vmatprep.subr.bf16.mxu1 %v8307_v38 }
 0x69f   :  { %6083 = vmatpush1.bf16.msra.mxu0 %v8304_v39 }
 0x6a0   :  { %7139 = vmatpush3.bf16.msra.mxu1 %v8308_v40  ;;  %6093 = vmatprep.subr.bf16.mxu0 %v8311_v41 }
 0x6a2   :  { %6085 = vmatmul.mubr.bf16.vlgmr.msra.gmra.mrb[24].mxu0 %v8855_v24  ;;  %v8326_v24 = vld [vmem:[#allocation13 + $0x4ac] ss:$28 sps:$4 sm:$0xff]  }
 0x6a3   :  { %6207 = vmatmul.mubr.bf16.vlgmr.msra.gmra.mrb[32].mxu1 %v8868_v36  ;;  %6094 = vmatpush1.bf16.msra.mxu0 %v8309_v42 }
 0x6a4   :  { %6125 = vmatprep.mubr.bf16.mxu0 %v8859_v26  ;;  %6095 = vmatprep.subr.bf16.mxu0 %v8314_v43  ;;  %v8327_v26 = vld [vmem:[#allocation13 + $0x4e0] ss:$28 sps:$4 sm:$0xff]  }
 0x6a7   :  { %6096 = vmatpush1.bf16.msra.mxu0 %v8312_v44 }
 0x6a8   :  { %6097 = vmatprep.subr.bf16.mxu0 %v8317_v45 }
 0x6ab   :  { %6098 = vmatpush1.bf16.msra.mxu0 %v8315_v0 }
 0x6ac   :  { %6099 = vmatprep.subr.bf16.mxu0 %v8320_v46 }
 0x6af   :  { %6100 = vmatpush1.bf16.msra.mxu0 %v8318_v47 }
 0x6b0   :  { %6101 = vmatprep.subr.bf16.mxu0 %v8323_v48 }
 0x6b3   :  { %6102 = vmatpush1.bf16.msra.mxu0 %v8321_v21 }
 0x6b4   :  { %6103 = vmatprep.subr.bf16.mxu0 %v8326_v24 }
 0x6b7   :  { %6104 = vmatpush1.bf16.msra.mxu0 %v8324_v49 }
 0x6b8   :  { %6105 = vmatprep.subr.bf16.mxu0 %v8329_v50 }
 0x6bb   :  { %6106 = vmatpush1.bf16.msra.mxu0 %v8327_v26  ;;  %v4727_v26 = vsub.s32 6, %v8797_v55 }
 0x6bc   :  { %6107 = vmatprep.subr.bf16.mxu0 %v8332_v51 }
 0x6bd   :  { %v4728_v51 = vrot.slane %v8880_v18, %v4727_v26 }
 0x6bf   :  { %6108 = vmatpush1.bf16.msra.mxu0 %v8330_v56 }
 0x6c0   :  { %6109 = vmatprep.subr.bf16.mxu0 %v8335_v52 }
 0x6c3   :  { %6110 = vmatpush1.bf16.msra.mxu0 %v8333_v53 }
 0x6c4   :  { %6111 = vmatprep.subr.bf16.mxu0 %v8338_v59 }
 0x6c7   :  { %6112 = vmatpush1.bf16.msra.mxu0 %v8336_v60 }
 0x6c8   :  { %6113 = vmatprep.subr.bf16.mxu0 %v8341_v29 }
 0x6cb   :  { %6114 = vmatpush1.bf16.msra.mxu0 %v8339_v61 }
 0x6cc   :  { %6115 = vmatprep.subr.bf16.mxu0 %v8344_v62 }
 0x6cf   :  { %6116 = vmatpush1.bf16.msra.mxu0 %v8342_v1 }
 0x6d0   :  { %6117 = vmatprep.subr.bf16.mxu0 %v8347_v2 }
 0x6d3   :  { %6118 = vmatpush1.bf16.msra.mxu0 %v8345_v3 }
 0x6d4   :  { %6119 = vmatprep.subr.bf16.mxu0 %v8350_v6 }
 0x6d7   :  { %6120 = vmatpush1.bf16.msra.mxu0 %v8348_v9  ;;  %v4719_v9 = vsub.s32 4, %v8797_v55 }
 0x6d8   :  { %6121 = vmatprep.subr.bf16.mxu0 %v8353_v11  ;;  %v4723_v11 = vsub.s32 5, %v8797_v55 }
 0x6db   :  { %6122 = vmatpush1.bf16.msra.mxu0 %v8351_v12  ;;  %v4720_v12 = vrot.slane %v8880_v18, %v4719_v9 }
 0x6dc   :  { %6123 = vmatprep.subr.bf16.mxu0 %v8356_v13  ;;  %v4724_v13 = vrot.slane %v8880_v18, %v4723_v11 }
 0x6df   :  { %6124 = vmatpush1.bf16.msra.mxu0 %v8354_v14 }
 0x6e2   :  { %6126 = vmatmul.mubr.bf16.vlgmr.msra.gmra.mrb[24].mxu0 %v8868_v36 }
 0x735   :  { %v5963_v22 = vpop.f32.mrb[20].mxu0  ;;  %v6045_v23 = vpop.f32.mrb[24].mxu1 }
 0x736   :  { %v7160_v25 = vadd.f32 %v5963_v22, %v4704_v8  ;;  %v7162_v36 = vadd.f32 %v6045_v23, %v4712_v10  ;;  %v5965_v54 = vpop.f32.mrb[21].mxu0  ;;  %v6047_v16 = vpop.f32.mrb[25].mxu1 }
 0x737   :  { %v7161_v27 = vadd.f32 %v5965_v54, %v4708_v19  ;;  %v7163_v28 = vadd.f32 %v6047_v16, %v4716_v20  ;;  %v5967_v30 = vpop.f32.mrb[22].mxu0  ;;  %v6049_v31 = vpop.f32.mrb[26].mxu1 }
 0x738   :  { %v6214_v57 = vsub.f32 0.0, %v7160_v25  ;;  %v6216_v32 = vsub.f32 0.0, %v7162_v36  ;;  %v5968_v33 = vpop.f32.mrb[23].mxu0  ;;  %v6050_v4 = vpop.f32.mrb[27].mxu1 }
 0x739   :  { %v6215_v63 = vsub.f32 0.0, %v7161_v27  ;;  %v6217_v34 = vsub.f32 0.0, %v7163_v28 }
 0x73a   :  { %v6221_v58 = vmul.f32 1.442695, %v6214_v57  ;;  %v6225_v35 = vmul.f32 1.442695, %v6216_v32 }
 0x73b   :  { %v6223_v7 = vmul.f32 1.442695, %v6215_v63  ;;  %v6227_v5 = vmul.f32 1.442695, %v6217_v34 }
 0x73c   :  { %8357 = vpow2.f32 %v6221_v58 }
 0x73d   :  { %8359 = vpow2.f32 %v6225_v35 }
 0x73e   :  { %8361 = vpow2.f32 %v6223_v7 }
 0x73f   :  { %8363 = vpow2.f32 %v6227_v5 }
 0x746   :  { %v8358_v37 = vpop.eup %8357 }
 0x747   :  { %v8360_v38 = vpop.eup %8359  ;;  %v6235_v39 = vadd.f32 1.0, %v8358_v37 }
 0x748   :  { %v8362_v40 = vpop.eup %8361  ;;  %v6237_v41 = vadd.f32 1.0, %v8360_v38 }
 0x749   :  { %v8364_v42 = vpop.eup %8363  ;;  %8365 = vrcp.f32 %v6235_v39  ;;  %v6236_v43 = vadd.f32 1.0, %v8362_v40 }
 0x74a   :  { %8367 = vrcp.f32 %v6237_v41  ;;  %v6238_v44 = vadd.f32 1.0, %v8364_v42 }
 0x74b   :  { %8369 = vrcp.f32 %v6236_v43 }
 0x74c   :  { %8371 = vrcp.f32 %v6238_v44 }
 0x753   :  { %v8366_v45 = vpop.eup %8365 }
 0x754   :  { %v8368_v0 = vpop.eup %8367  ;;  %6256 = vst [vmem:[#allocation16] sm:$0xff] %v8366_v45 }
 0x755   :  { %v8370_v46 = vpop.eup %8369  ;;  %6258 = vst [vmem:[#allocation16 + $0x10] sm:$0xff] %v8368_v0 }
 0x756   :  { %v8372_v47 = vpop.eup %8371  ;;  %6257 = vst [vmem:[#allocation16 + $0x8] sm:$0xff] %v8370_v46  ;;  %v7118_v48 = vpop.f32.mrb[28].mxu1 }
 0x757   :  { %6259 = vst [vmem:[#allocation16 + $0x18] sm:$0xff] %v8372_v47  ;;  %v7119_v21 = vpop.f32.mrb[29].mxu1 }
 0x758   :  { %v7120_v24 = vadd.f32 %v7119_v21, %v7118_v48  ;;  %v7121_v49 = vpop.f32.mrb[30].mxu1 }
 0x759   :  { %v7122_v50 = vpop.f32.mrb[31].mxu1 }
 0x75a   :  { %v6169_v53 = vadd.f32 %v7120_v24, %v4728_v51 }
 0x776   :  { %v7140_v56 = vpop.f32.mrb[32].mxu1 }
 0x777   :  { %v7141_v52 = vpop.f32.mrb[33].mxu1 }
 0x778   :  { %v7142_v59 = vadd.f32 %v7141_v52, %v7140_v56  ;;  %v7143_v60 = vpop.f32.mrb[34].mxu1 }
 0x779   :  { %v7144_v29 = vpop.f32.mrb[35].mxu1 }
 0x77a   :  { %v6209_v61 = vadd.f32 %v7142_v59, %v6169_v53 }
 0x77c   :  { %v6220_v62 = vsub.f32 0.0, %v6209_v61 }
 0x77e   :  { %v6233_v1 = vmul.f32 1.442695, %v6220_v62 }
 0x780   :  { %8373 = vpow2.f32 %v6233_v1 }
 0x78a   :  { %v8374_v2 = vpop.eup %8373 }
 0x78b   :  { %v6241_v3 = vadd.f32 1.0, %v8374_v2 }
 0x78d   :  { %8375 = vrcp.f32 %v6241_v3 }
 0x797   :  { %v8376_v6 = vpop.eup %8375 }
 0x798   :  { %6262 = vst [vmem:[#allocation16 + $0x30] sm:$0xff] %v8376_v6 }
 0x7b5   :  { %v6127_v14 = vpop.f32.mrb[24].mxu0 }
 0x7b6   :  { %v7164_v15 = vadd.f32 %v6127_v14, %v4720_v12  ;;  %v6129_v17 = vpop.f32.mrb[25].mxu0 }
 0x7b7   :  { %v7165_v8 = vadd.f32 %v6129_v17, %v4724_v13  ;;  %v6131_v10 = vpop.f32.mrb[26].mxu0 }
 0x7b8   :  { %v6218_v19 = vsub.f32 0.0, %v7164_v15  ;;  %v6132_v20 = vpop.f32.mrb[27].mxu0 }
 0x7b9   :  { %v6219_v22 = vsub.f32 0.0, %v7165_v8 }
 0x7ba   :  { %v6229_v23 = vmul.f32 1.442695, %v6218_v19 }
 0x7bb   :  { %v6231_v25 = vmul.f32 1.442695, %v6219_v22 }
 0x7bc   :  { %8377 = vpow2.f32 %v6229_v23 }
 0x7bd   :  { %8379 = vpow2.f32 %v6231_v25 }
 0x7c6   :  { %v8378_v36 = vpop.eup %8377 }
 0x7c7   :  { %v8380_v54 = vpop.eup %8379  ;;  %v6239_v16 = vadd.f32 1.0, %v8378_v36 }
 0x7c8   :  { %v6240_v55 = vadd.f32 1.0, %v8380_v54 }
 0x7c9   :  { %8381 = vrcp.f32 %v6239_v16 }
 0x7ca   :  { %8383 = vrcp.f32 %v6240_v55 }
 0x7d3   :  { %v8382_v18 = vpop.eup %8381 }
 0x7d4   :  { %v8384_v27 = vpop.eup %8383  ;;  %6260 = vst [vmem:[#allocation16 + $0x20] sm:$0xff] %v8382_v18 }
 0x7d5   :  { %6261 = vst [vmem:[#allocation16 + $0x28] sm:$0xff] %v8384_v27 }
 0x7d6   :  { %8573 = shalt.err (!%p8570_p12)
}
 0x7d7   :  { %s8574_s20 = scalar_lea.hbm %s8916_s8, 1024 }
 0x7d8   :  { %p8575_p13 = scmp.ne.s32.totalorder %s8916_s8, %s8574_s20  ;;  %p8578_p0 = scmp.lt.u32.totalorder %s8574_s20, %s8916_s8 }
 0x7da   :  { %p8580_p1 = pnand %p8578_p0, %p8575_p13 }
 0x7dc   :  { %8583 = shalt.err (!%p8580_p1)
}
 0x7dd   :  { %6273 = dma.vmem_to_hbm [thread:$0]  %s6271_s28, 1024, %s8916_s8, [#allocation4]  }
 0x7de   :  { %8594 = dma.done.wait [#allocation4], 1024  }
 0x7df   :  { %8595 = vsyncadd [#allocation4], 4294966272 }
 0x7e0   :  { %6277 = vsyncpa [#allocation3], 1 }
 0x7e1   :  { %6278 = vsyncpa [#allocation6], 1 }
 0x7e2   :  { %6279 = vsyncpa [#allocation9], 1 }
 0x7e3   :  { %6280 = vsyncpa [#allocation12], 1 }
 0x7e4   :  { %6281 = vsyncpa [#allocation15], 1 }
 0x7e5   :  { %6282 = vsyncpa [#allocation4], 1 }

</bundles_post_ra>
